<compile_context>
chip_gen: v5e
topology: v5e:2x2
jax: 0.10.0
libtpu: 0.0.40
codegen_flags: <defaults>
</compile_context>

<pallas_src>
import numpy as np
import jax
import jax.numpy as jnp
from jax.experimental import pallas as pl
from jax.experimental.pallas import tpu as pltpu

# Small, module-consistent shapes.
B, C_IN, H, W = 2, 4, 16, 16
C_OUT = 8                    # conv output channels
K = 3                        # conv kernel size (padding=1 -> same spatial size)
N_CLASSES = 2                # FocalLoss(class_num=2)
HW = H * W
Hp, Wp = H + 2, W + 2        # zero-padded spatial size
N_PAD_ROWS = B * Hp * Wp     # 648 rows of the padded NHWC-flat input
N_ROWS = N_PAD_ROWS - 2 * Wp - 2   # 610: rows for which all 9 shifted reads are in-bounds
BN_EPS = 1e-5

# Row offsets of the 9 conv taps in the padded row-major layout.
SHIFT_OFFSETS = [kh * Wp + kw for kh in range(K) for kw in range(K)]

# Packed parameter layout (one lane-dense f32 array, shape (W_ROWS, 128)):
#   rows [0, 36)       cols [0, 8)   : BN-folded conv weights, shift-major (9, C_IN, C_OUT)
#   row  ROW_BC        cols [0, 8)   : BN-folded conv bias
#   row  ROW_BL        cols [0, 2)   : Linear bias
#   rows [ROW_WL, +8)  cols [0, 2)   : Linear weight (C_OUT, 2), pre-scaled by 1/HW
ROW_BC = K * K * C_IN        # 36
ROW_BL = ROW_BC + 1          # 37
ROW_WL = 40
W_ROWS = ROW_WL + C_OUT      # 48
LANES = 128
OUT_ROWS = 8                 # lane/sublane-dense output slab (sliced to (B, 2) outside)


def confidence_kernel(x_ref, w_ref, pool_ref, out_ref):
    # ---- Conv2d(4->8, k=3, pad=1) as 9 shifted sub-matmuls on the MXU ----
    # (BatchNorm eval-mode affine already folded into w_ref / its bias row.)
    acc = jnp.dot(x_ref[pl.ds(SHIFT_OFFSETS[0], N_ROWS), :],
                  w_ref[pl.ds(0, C_IN), pl.ds(0, C_OUT)],
                  preferred_element_type=jnp.float32)              # (N_ROWS, C_OUT)
    for s in range(1, K * K):
        acc = acc + jnp.dot(x_ref[pl.ds(SHIFT_OFFSETS[s], N_ROWS), :],
                            w_ref[pl.ds(s * C_IN, C_IN), pl.ds(0, C_OUT)],
                            preferred_element_type=jnp.float32)

    # ---- folded conv+BN bias, ReLU ----
    bias = w_ref[pl.ds(ROW_BC, 1), pl.ds(0, C_OUT)]                 # (1, C_OUT)
    y = jnp.maximum(acc + bias, 0.0)                                # (N_ROWS, C_OUT)

    # ---- global average pool as a mask matmul (MXU); invalid rows are masked ----
    # pool_ref is (8, N_ROWS); rows >= B are all-zero, 1/HW scale folded into wl.
    pooled = jnp.dot(pool_ref[...], y, preferred_element_type=jnp.float32)   # (8, C_OUT)

    # ---- Linear(C_OUT -> 2), lane-dense (8, 128) output slab ----
    wl = w_ref[pl.ds(ROW_WL, C_OUT), :]                             # (C_OUT, 128)
    bl = w_ref[pl.ds(ROW_BL, 1), :]                                 # (1, 128)
    out_ref[...] = jnp.dot(pooled, wl, preferred_element_type=jnp.float32) + bl


def init_raw_params(key):
    """Raw (PyTorch-style) parameters, initialized like ConfidenceTrainer.init_params."""
    k_conv, k_lin = jax.random.split(key)
    # Conv2d: xavier_uniform_ weight, bias = 0.1
    fan_in, fan_out = C_IN * K * K, C_OUT * K * K
    limit = (6.0 / (fan_in + fan_out)) ** 0.5
    wc = jax.random.uniform(k_conv, (C_OUT, C_IN, K, K), jnp.float32,
                            minval=-limit, maxval=limit)
    bc = jnp.full((C_OUT,), 0.1, jnp.float32)
    # BatchNorm2d: weight=1, bias=0, running_mean=0, running_var=1 (eval mode)
    gamma = jnp.ones((C_OUT,), jnp.float32)
    beta = jnp.zeros((C_OUT,), jnp.float32)
    mean = jnp.zeros((C_OUT,), jnp.float32)
    var = jnp.ones((C_OUT,), jnp.float32)
    # Linear: weight ~ N(0, 0.01), bias = 0
    wl = 0.01 * jax.random.normal(k_lin, (N_CLASSES, C_OUT), jnp.float32)
    bl = jnp.zeros((N_CLASSES,), jnp.float32)
    return wc, bc, gamma, beta, mean, var, wl, bl


def pack_params(wc, bc, gamma, beta, mean, var, wl, bl):
    """Fold BN + pool scale into the weights and pack everything lane-dense."""
    s = gamma / jnp.sqrt(var + BN_EPS)                                  # (C_OUT,)
    # per-shift conv weight blocks, shift index = kh*K + kw, block layout (C_IN, C_OUT)
    wc_shift = jnp.stack([wc[:, :, kh, kw].T
                          for kh in range(K) for kw in range(K)])       # (9, C_IN, C_OUT)
    wc_bn = (wc_shift * s[None, None, :]).reshape(K * K * C_IN, C_OUT)  # (36, C_OUT)
    bc_bn = (bc - mean) * s + beta                                      # (C_OUT,)
    wl_scaled = wl.T / float(HW)                                        # (C_OUT, 2), pool scale folded

    wpack = jnp.zeros((W_ROWS, LANES), jnp.float32)
    wpack = wpack.at[0:K * K * C_IN, 0:C_OUT].set(wc_bn)
    wpack = wpack.at[ROW_BC, 0:C_OUT].set(bc_bn)
    wpack = wpack.at[ROW_BL, 0:N_CLASSES].set(bl)
    wpack = wpack.at[ROW_WL:ROW_WL + C_OUT, 0:N_CLASSES].set(wl_scaled)
    return wpack


def make_pool_matrix():
    """(8, N_ROWS) mask selecting the HxW valid conv-output rows of each batch."""
    m = np.zeros((OUT_ROWS, N_ROWS), np.float32)
    for b in range(B):
        base = b * Hp * Wp
        for h in range(H):
            m[b, base + h * Wp: base + h * Wp + W] = 1.0
    return jnp.asarray(m)


@jax.jit
def confidence_forward(x, wpack, pool_mat):
    # Only cheap layout work outside the kernel: zero-pad + NCHW -> (B*Hp*Wp, C).
    xf = x.astype(jnp.float32)
    xp = jnp.pad(xf, ((0, 0), (0, 0), (1, 1), (1, 1)))                  # (B, C, Hp, Wp)
    xrows = xp.transpose(0, 2, 3, 1).reshape(N_PAD_ROWS, C_IN)          # (648, 4)

    out = pl.pallas_call(
        confidence_kernel,
        out_shape=jax.ShapeDtypeStruct((OUT_ROWS, LANES), jnp.float32),
        in_specs=[
            pl.BlockSpec(memory_space=pltpu.MemorySpace.VMEM),          # padded input rows
            pl.BlockSpec(memory_space=pltpu.MemorySpace.VMEM),          # packed params
            pl.BlockSpec(memory_space=pltpu.MemorySpace.VMEM),          # pool mask
        ],
        out_specs=pl.BlockSpec(memory_space=pltpu.MemorySpace.VMEM),
    )(xrows, wpack, pool_mat)
    return out[:B, :N_CLASSES]


def reference_forward(x, wc, bc, gamma, beta, mean, var, wl, bl):
    """Plain-JAX reference (unfolded math) for sanity checking."""
    xf = x.astype(jnp.float32)
    conv = jax.lax.conv_general_dilated(
        xf, wc, window_strides=(1, 1), padding="SAME",
        dimension_numbers=("NCHW", "OIHW", "NCHW")) + bc[None, :, None, None]
    s = gamma / jnp.sqrt(var + BN_EPS)
    y = (conv - mean[None, :, None, None]) * s[None, :, None, None] + beta[None, :, None, None]
    y = jnp.maximum(y, 0.0)
    pooled = y.mean(axis=(2, 3))                                        # (B, C_OUT)
    return pooled @ wl.T + bl[None, :]


if __name__ == "__main__":
    key = jax.random.PRNGKey(0)
    k_x, k_p = jax.random.split(key)
    x = jax.random.normal(k_x, (B, C_IN, H, W), jnp.float32)            # NCHW like PyTorch

    raw = init_raw_params(k_p)
    wpack = pack_params(*raw)       # one-time fold/pack (BN, pool scale, biases)
    pool_mat = make_pool_matrix()   # one-time constant mask

    out = confidence_forward(x, wpack, pool_mat)
    out = jax.block_until_ready(out)

    ref = reference_forward(x, *raw)
    assert out.shape == (B, N_CLASSES)
    assert jnp.allclose(out, ref, atol=1e-4, rtol=1e-4), (out, ref)
    print("KERNEL_OK")
</pallas_src>

<mosaic_0001>
module attributes {stable_mosaic.version = 11 : i64} {
  func.func @confidence_kernel(%arg0: memref<648x4xf32, #tpu.memory_space<vmem>>, %arg1: memref<48x128xf32, #tpu.memory_space<vmem>>, %arg2: memref<8x610xf32, #tpu.memory_space<vmem>>, %arg3: memref<8x128xf32, #tpu.memory_space<vmem>>) attributes {dimension_semantics = [], scalar_prefetch = 0 : i64, scratch_operands = 0 : i64, tpu.core_type = #tpu.core_type<tc>} {
    %c0 = arith.constant 0 : index
    %c0_0 = arith.constant 0 : index
    %0 = vector.load %arg0[%c0, %c0_0] : memref<648x4xf32, #tpu.memory_space<vmem>>, vector<610x4xf32>
    %c0_1 = arith.constant 0 : index
    %c0_2 = arith.constant 0 : index
    %1 = vector.load %arg1[%c0_1, %c0_2] : memref<48x128xf32, #tpu.memory_space<vmem>>, vector<4x8xf32>
    %cst = arith.constant dense<0.000000e+00> : vector<610x8xf32>
    %2 = tpu.matmul %0, %1, %cst {dimension_numbers = #tpu.dot_dimension_numbers<[1], [0], [0], [1], [0, 0, 1, 1], [], []>} : vector<610x4xf32>, vector<4x8xf32>, vector<610x8xf32> -> vector<610x8xf32>
    %c1 = arith.constant 1 : index
    %c0_3 = arith.constant 0 : index
    %3 = vector.load %arg0[%c1, %c0_3] : memref<648x4xf32, #tpu.memory_space<vmem>>, vector<610x4xf32>
    %c4 = arith.constant 4 : index
    %c0_4 = arith.constant 0 : index
    %4 = vector.load %arg1[%c4, %c0_4] : memref<48x128xf32, #tpu.memory_space<vmem>>, vector<4x8xf32>
    %cst_5 = arith.constant dense<0.000000e+00> : vector<610x8xf32>
    %5 = tpu.matmul %3, %4, %cst_5 {dimension_numbers = #tpu.dot_dimension_numbers<[1], [0], [0], [1], [0, 0, 1, 1], [], []>} : vector<610x4xf32>, vector<4x8xf32>, vector<610x8xf32> -> vector<610x8xf32>
    %6 = arith.addf %2, %5 : vector<610x8xf32>
    %c2 = arith.constant 2 : index
    %c0_6 = arith.constant 0 : index
    %7 = vector.load %arg0[%c2, %c0_6] : memref<648x4xf32, #tpu.memory_space<vmem>>, vector<610x4xf32>
    %c8 = arith.constant 8 : index
    %c0_7 = arith.constant 0 : index
    %8 = vector.load %arg1[%c8, %c0_7] : memref<48x128xf32, #tpu.memory_space<vmem>>, vector<4x8xf32>
    %cst_8 = arith.constant dense<0.000000e+00> : vector<610x8xf32>
    %9 = tpu.matmul %7, %8, %cst_8 {dimension_numbers = #tpu.dot_dimension_numbers<[1], [0], [0], [1], [0, 0, 1, 1], [], []>} : vector<610x4xf32>, vector<4x8xf32>, vector<610x8xf32> -> vector<610x8xf32>
    %10 = arith.addf %6, %9 : vector<610x8xf32>
    %c18 = arith.constant 18 : index
    %c0_9 = arith.constant 0 : index
    %11 = vector.load %arg0[%c18, %c0_9] : memref<648x4xf32, #tpu.memory_space<vmem>>, vector<610x4xf32>
    %c12 = arith.constant 12 : index
    %c0_10 = arith.constant 0 : index
    %12 = vector.load %arg1[%c12, %c0_10] : memref<48x128xf32, #tpu.memory_space<vmem>>, vector<4x8xf32>
    %cst_11 = arith.constant dense<0.000000e+00> : vector<610x8xf32>
    %13 = tpu.matmul %11, %12, %cst_11 {dimension_numbers = #tpu.dot_dimension_numbers<[1], [0], [0], [1], [0, 0, 1, 1], [], []>} : vector<610x4xf32>, vector<4x8xf32>, vector<610x8xf32> -> vector<610x8xf32>
    %14 = arith.addf %10, %13 : vector<610x8xf32>
    %c19 = arith.constant 19 : index
    %c0_12 = arith.constant 0 : index
    %15 = vector.load %arg0[%c19, %c0_12] : memref<648x4xf32, #tpu.memory_space<vmem>>, vector<610x4xf32>
    %c16 = arith.constant 16 : index
    %c0_13 = arith.constant 0 : index
    %16 = vector.load %arg1[%c16, %c0_13] : memref<48x128xf32, #tpu.memory_space<vmem>>, vector<4x8xf32>
    %cst_14 = arith.constant dense<0.000000e+00> : vector<610x8xf32>
    %17 = tpu.matmul %15, %16, %cst_14 {dimension_numbers = #tpu.dot_dimension_numbers<[1], [0], [0], [1], [0, 0, 1, 1], [], []>} : vector<610x4xf32>, vector<4x8xf32>, vector<610x8xf32> -> vector<610x8xf32>
    %18 = arith.addf %14, %17 : vector<610x8xf32>
    %c20 = arith.constant 20 : index
    %c0_15 = arith.constant 0 : index
    %19 = vector.load %arg0[%c20, %c0_15] : memref<648x4xf32, #tpu.memory_space<vmem>>, vector<610x4xf32>
    %c20_16 = arith.constant 20 : index
    %c0_17 = arith.constant 0 : index
    %20 = vector.load %arg1[%c20_16, %c0_17] : memref<48x128xf32, #tpu.memory_space<vmem>>, vector<4x8xf32>
    %cst_18 = arith.constant dense<0.000000e+00> : vector<610x8xf32>
    %21 = tpu.matmul %19, %20, %cst_18 {dimension_numbers = #tpu.dot_dimension_numbers<[1], [0], [0], [1], [0, 0, 1, 1], [], []>} : vector<610x4xf32>, vector<4x8xf32>, vector<610x8xf32> -> vector<610x8xf32>
    %22 = arith.addf %18, %21 : vector<610x8xf32>
    %c36 = arith.constant 36 : index
    %c0_19 = arith.constant 0 : index
    %23 = vector.load %arg0[%c36, %c0_19] : memref<648x4xf32, #tpu.memory_space<vmem>>, vector<610x4xf32>
    %c24 = arith.constant 24 : index
    %c0_20 = arith.constant 0 : index
    %24 = vector.load %arg1[%c24, %c0_20] : memref<48x128xf32, #tpu.memory_space<vmem>>, vector<4x8xf32>
    %cst_21 = arith.constant dense<0.000000e+00> : vector<610x8xf32>
    %25 = tpu.matmul %23, %24, %cst_21 {dimension_numbers = #tpu.dot_dimension_numbers<[1], [0], [0], [1], [0, 0, 1, 1], [], []>} : vector<610x4xf32>, vector<4x8xf32>, vector<610x8xf32> -> vector<610x8xf32>
    %26 = arith.addf %22, %25 : vector<610x8xf32>
    %c37 = arith.constant 37 : index
    %c0_22 = arith.constant 0 : index
    %27 = vector.load %arg0[%c37, %c0_22] : memref<648x4xf32, #tpu.memory_space<vmem>>, vector<610x4xf32>
    %c28 = arith.constant 28 : index
    %c0_23 = arith.constant 0 : index
    %28 = vector.load %arg1[%c28, %c0_23] : memref<48x128xf32, #tpu.memory_space<vmem>>, vector<4x8xf32>
    %cst_24 = arith.constant dense<0.000000e+00> : vector<610x8xf32>
    %29 = tpu.matmul %27, %28, %cst_24 {dimension_numbers = #tpu.dot_dimension_numbers<[1], [0], [0], [1], [0, 0, 1, 1], [], []>} : vector<610x4xf32>, vector<4x8xf32>, vector<610x8xf32> -> vector<610x8xf32>
    %30 = arith.addf %26, %29 : vector<610x8xf32>
    %c38 = arith.constant 38 : index
    %c0_25 = arith.constant 0 : index
    %31 = vector.load %arg0[%c38, %c0_25] : memref<648x4xf32, #tpu.memory_space<vmem>>, vector<610x4xf32>
    %c32 = arith.constant 32 : index
    %c0_26 = arith.constant 0 : index
    %32 = vector.load %arg1[%c32, %c0_26] : memref<48x128xf32, #tpu.memory_space<vmem>>, vector<4x8xf32>
    %cst_27 = arith.constant dense<0.000000e+00> : vector<610x8xf32>
    %33 = tpu.matmul %31, %32, %cst_27 {dimension_numbers = #tpu.dot_dimension_numbers<[1], [0], [0], [1], [0, 0, 1, 1], [], []>} : vector<610x4xf32>, vector<4x8xf32>, vector<610x8xf32> -> vector<610x8xf32>
    %34 = arith.addf %30, %33 : vector<610x8xf32>
    %c36_28 = arith.constant 36 : index
    %c0_29 = arith.constant 0 : index
    %35 = vector.load %arg1[%c36_28, %c0_29] : memref<48x128xf32, #tpu.memory_space<vmem>>, vector<1x8xf32>
    %36 = vector.broadcast %35 : vector<1x8xf32> to vector<610x8xf32>
    %37 = arith.addf %34, %36 : vector<610x8xf32>
    %cst_30 = arith.constant 0.000000e+00 : f32
    %38 = vector.broadcast %cst_30 : f32 to vector<610x8xf32>
    %39 = arith.maximumf %37, %38 : vector<610x8xf32>
    %c0_31 = arith.constant 0 : index
    %c0_32 = arith.constant 0 : index
    %40 = vector.load %arg2[%c0_31, %c0_32] : memref<8x610xf32, #tpu.memory_space<vmem>>, vector<8x610xf32>
    %cst_33 = arith.constant dense<0.000000e+00> : vector<8x8xf32>
    %41 = tpu.matmul %40, %39, %cst_33 {dimension_numbers = #tpu.dot_dimension_numbers<[1], [0], [0], [1], [0, 0, 1, 1], [], []>} : vector<8x610xf32>, vector<610x8xf32>, vector<8x8xf32> -> vector<8x8xf32>
    %c40 = arith.constant 40 : index
    %c0_34 = arith.constant 0 : index
    %42 = vector.load %arg1[%c40, %c0_34] : memref<48x128xf32, #tpu.memory_space<vmem>>, vector<8x128xf32>
    %c37_35 = arith.constant 37 : index
    %c0_36 = arith.constant 0 : index
    %43 = vector.load %arg1[%c37_35, %c0_36] : memref<48x128xf32, #tpu.memory_space<vmem>>, vector<1x128xf32>
    %cst_37 = arith.constant dense<0.000000e+00> : vector<8x128xf32>
    %44 = tpu.matmul %41, %42, %cst_37 {dimension_numbers = #tpu.dot_dimension_numbers<[1], [0], [0], [1], [0, 0, 1, 1], [], []>} : vector<8x8xf32>, vector<8x128xf32>, vector<8x128xf32> -> vector<8x128xf32>
    %45 = vector.broadcast %43 : vector<1x128xf32> to vector<8x128xf32>
    %46 = arith.addf %44, %45 : vector<8x128xf32>
    %c0_38 = arith.constant 0 : index
    %c0_39 = arith.constant 0 : index
    %47 = vector.load %arg3[%c0_38, %c0_39] : memref<8x128xf32, #tpu.memory_space<vmem>>, vector<8x128xf32>
    tpu.vector_store %arg3[%c0_38, %c0_39], %46 {strides = array<i32>} : memref<8x128xf32, #tpu.memory_space<vmem>>, vector<8x128xf32>,
    return
  }
}

</mosaic_0001>

<bundles_post_ra>
// kernel: confidence_forward.1
= control target key start
LH: loop header
LB: loop body
LE: loop exit
PB: predicated region body
PF: predicated region fallthrough
CT: control target
= control target key end

     0   :  { %vm402_vm0 = vcmask 1043456   ;;  %vm170_vm1 = vcmask 31744   ;;  %vm5760_vm2 = vcmask 1041408   ;;  %vm5756_vm3 = vcmask 801792   ;;  %s10284_s1 = inlined_call_operand.vmem [shape: f32[48,128], index: 1, kind: input, shape index: {}]   ;;  %s10285_s0 = inlined_call_operand.vmem [shape: f32[648,4], index: 0, kind: input, shape index: {}]   ;;  %s10286_s2 = inlined_call_operand.vmem [shape: f32[8,610], index: 2, kind: input, shape index: {}]   ;;  %s10287_s3 = inlined_call_operand.vmem [shape: f32[8,128], index: 3, kind: output, shape index: {}]  }
   0x1   :  { %v169_v0 = vld [vmem:[%s10284_s1 + $0x4] sm:$0xf]  ;;  %v114_v2 = vld [vmem:[%s10285_s0 + $0xb1] sm:$0xff]  ;;  %v131_v3 = vld [vmem:[%s10285_s0 + $0x139] sm:$0xff]  ;;  %vm5867_vm4 = vcmask 64512  }
   0x2   :  { %5896 = vmatpush.msk.msra.mxu0 %vm402_vm0, %v169_v0  ;;  %6601 = vmatpush.msk.msra.mxu1 %vm402_vm0, %v169_v0  ;;  %v92_v1 = vld [vmem:[%s10285_s0 + $0x1] sm:$0xff]  ;;  %v149_v4 = vld [vmem:[%s10285_s0 + $0x1c9] sm:$0xff]  ;;  %v115_v6 = vld [vmem:[%s10285_s0 + $0xb9] sm:$0xff] }
   0x3   :  { %6602 = vmatpush.msk.msra.mxu2 %vm402_vm0, %v169_v0  ;;  %6603 = vmatpush.msk.msra.mxu3 %vm402_vm0, %v169_v0  ;;  %v93_v5 = vld [vmem:[%s10285_s0 + $0x9] sm:$0xff]  ;;  %v132_v7 = vld [vmem:[%s10285_s0 + $0x141] sm:$0xff]  ;;  %v150_v8 = vld [vmem:[%s10285_s0 + $0x1d1] sm:$0xff] }
   0x4   :  { %5897 = vmatmul.msk.f32.vlgmr.msra.gmra.mxu0 %vm170_vm1, %v92_v1  ;;  %5919 = vmatmul.msk.f32.vlgmr.msra.gmra.mxu1 %vm170_vm1, %v114_v2  ;;  %v94_v9 = vld [vmem:[%s10285_s0 + $0x11] sm:$0xff]  ;;  %v116_v10 = vld [vmem:[%s10285_s0 + $0xc1] sm:$0xff]  ;;  %v133_v11 = vld [vmem:[%s10285_s0 + $0x149] sm:$0xff] }
   0x5   :  { %5936 = vmatmul.msk.f32.vlgmr.msra.gmra.mxu2 %vm170_vm1, %v131_v3  ;;  %5954 = vmatmul.msk.f32.vlgmr.msra.gmra.mxu3 %vm170_vm1, %v149_v4  ;;  %v151_v12 = vld [vmem:[%s10285_s0 + $0x1d9] sm:$0xff]  ;;  %v117_v14 = vld [vmem:[%s10285_s0 + $0xc9] sm:$0xff]  ;;  %v134_v15 = vld [vmem:[%s10285_s0 + $0x151] sm:$0xff] }
   0x6   :  { %v95_v13 = vld [vmem:[%s10285_s0 + $0x19] sm:$0xff]  ;;  %v152_v16 = vld [vmem:[%s10285_s0 + $0x1e1] sm:$0xff]  ;;  %v118_v18 = vld [vmem:[%s10285_s0 + $0xd1] sm:$0xff] }
   0x7   :  { %v96_v17 = vld [vmem:[%s10285_s0 + $0x21] sm:$0xff]  ;;  %v135_v19 = vld [vmem:[%s10285_s0 + $0x159] sm:$0xff]  ;;  %v153_v20 = vld [vmem:[%s10285_s0 + $0x1e9] sm:$0xff] }
   0x8   :  { %v97_v21 = vld [vmem:[%s10285_s0 + $0x29] sm:$0xff]  ;;  %v119_v22 = vld [vmem:[%s10285_s0 + $0xd9] sm:$0xff]  ;;  %v136_v23 = vld [vmem:[%s10285_s0 + $0x161] sm:$0xff] }
   0x9   :  { %v154_v24 = vld [vmem:[%s10285_s0 + $0x1f1] sm:$0xff]  ;;  %v120_v26 = vld [vmem:[%s10285_s0 + $0xe1] sm:$0xff]  ;;  %v137_v27 = vld [vmem:[%s10285_s0 + $0x169] sm:$0xff] }
   0xa   :  { %v98_v25 = vld [vmem:[%s10285_s0 + $0x31] sm:$0xff]  ;;  %v155_v28 = vld [vmem:[%s10285_s0 + $0x1f9] sm:$0xff]  ;;  %v121_v30 = vld [vmem:[%s10285_s0 + $0xe9] sm:$0xff] }
   0xb   :  { %v99_v29 = vld [vmem:[%s10285_s0 + $0x39] sm:$0xff]  ;;  %v138_v31 = vld [vmem:[%s10285_s0 + $0x171] sm:$0xff]  ;;  %v156_v32 = vld [vmem:[%s10285_s0 + $0x201] sm:$0xff] }
   0xc   :  { %5898 = vmatmul.msk.f32.gmra.mxu0 %vm170_vm1, %v93_v5  ;;  %5920 = vmatmul.msk.f32.gmra.mxu1 %vm170_vm1, %v115_v6  ;;  %v100_v33 = vld [vmem:[%s10285_s0 + $0x41] sm:$0xff]  ;;  %v122_v34 = vld [vmem:[%s10285_s0 + $0xf1] sm:$0xff]  ;;  %v139_v35 = vld [vmem:[%s10285_s0 + $0x179] sm:$0xff] }
   0xd   :  { %5937 = vmatmul.msk.f32.gmra.mxu2 %vm170_vm1, %v132_v7  ;;  %5955 = vmatmul.msk.f32.gmra.mxu3 %vm170_vm1, %v150_v8  ;;  %v157_v36 = vld [vmem:[%s10285_s0 + $0x209] sm:$0xff]  ;;  %v123_v38 = vld [vmem:[%s10285_s0 + $0xf9] sm:$0xff]  ;;  %v140_v39 = vld [vmem:[%s10285_s0 + $0x181] sm:$0xff] }
   0xe   :  { %v101_v37 = vld [vmem:[%s10285_s0 + $0x49] sm:$0xff]  ;;  %v158_v40 = vld [vmem:[%s10285_s0 + $0x211] sm:$0xff]  ;;  %v124_v42 = vld [vmem:[%s10285_s0 + $0x101] sm:$0xff] }
   0xf   :  { %v102_v41 = vld [vmem:[%s10285_s0 + $0x51] sm:$0xff]  ;;  %v141_v43 = vld [vmem:[%s10285_s0 + $0x189] sm:$0xff]  ;;  %v159_v44 = vld [vmem:[%s10285_s0 + $0x219] sm:$0xff] }
  0x10   :  { %v103_v45 = vld [vmem:[%s10285_s0 + $0x59] sm:$0xff]  ;;  %v125_v46 = vld [vmem:[%s10285_s0 + $0x109] sm:$0xff]  ;;  %v142_v47 = vld [vmem:[%s10285_s0 + $0x191] sm:$0xff] }
  0x11   :  { %v160_v48 = vld [vmem:[%s10285_s0 + $0x221] sm:$0xff]  ;;  %v126_v50 = vld [vmem:[%s10285_s0 + $0x111] sm:$0xff]  ;;  %v143_v51 = vld [vmem:[%s10285_s0 + $0x199] sm:$0xff] }
  0x12   :  { %v104_v49 = vld [vmem:[%s10285_s0 + $0x61] sm:$0xff]  ;;  %v161_v52 = vld [vmem:[%s10285_s0 + $0x229] sm:$0xff]  ;;  %v127_v54 = vld [vmem:[%s10285_s0 + $0x119] sm:$0xff] }
  0x13   :  { %v105_v53 = vld [vmem:[%s10285_s0 + $0x69] sm:$0xff]  ;;  %v91_v55 = vld [vmem:[%s10284_s1] sm:$0xf]  ;;  %v162_v57 = vld [vmem:[%s10285_s0 + $0x231] sm:$0xff] }
  0x14   :  { %5899 = vmatmul.msk.f32.gmra.mxu0 %vm170_vm1, %v94_v9  ;;  %5921 = vmatmul.msk.f32.gmra.mxu1 %vm170_vm1, %v116_v10  ;;  %v144_v56 = vld [vmem:[%s10285_s0 + $0x1a1] sm:$0xff]  ;;  %v106_v58 = vld [vmem:[%s10285_s0 + $0x71] sm:$0xff]  ;;  %v145_v61 = vld [vmem:[%s10285_s0 + $0x1a9] sm:$0xff] }
  0x15   :  { %5938 = vmatmul.msk.f32.gmra.mxu2 %vm170_vm1, %v133_v11  ;;  %5956 = vmatmul.msk.f32.gmra.mxu3 %vm170_vm1, %v151_v12  ;;  %v128_v59 = vld [vmem:[%s10285_s0 + $0x121] sm:$0xff]  ;;  %v163_v62 = vld [vmem:[%s10285_s0 + $0x239] sm:$0xff]  ;;  %v129_v0 = vld [vmem:[%s10285_s0 + $0x129] sm:$0xff] }
  0x16   :  { %5974 = vmatpush.msk.msrb.mxu1 %vm402_vm0, %v91_v55  ;;  %v1213_v60 = vld [vmem:[%s10284_s1 + $0x8] sm:$0xf]  ;;  %v107_v63 = vld [vmem:[%s10285_s0 + $0x79] sm:$0xff]  ;;  %v146_v1 = vld [vmem:[%s10285_s0 + $0x1b1] sm:$0xff] }
  0x17   :  { %6052 = vmatpush.msk.msrb.mxu2 %vm402_vm0, %v1213_v60  ;;  %v164_v2 = vld [vmem:[%s10285_s0 + $0x241] sm:$0xff]  ;;  %v130_v6 = vld [vmem:[%s10285_s0 + $0x131] sm:$0xff]  ;;  %v1850_v7 = vld [vmem:[%s10284_s1 + $0xc] sm:$0xf] }
  0x18   :  { %v108_v5 = vld [vmem:[%s10285_s0 + $0x81] sm:$0xff]  ;;  %v147_v8 = vld [vmem:[%s10285_s0 + $0x1b9] sm:$0xff]  ;;  %v165_v9 = vld [vmem:[%s10285_s0 + $0x249] sm:$0xff]  ;;  %6130 = vmatpush.msk.msrb.mxu3 %vm402_vm0, %v1850_v7 }
  0x19   :  { %v1140_v55 = vld [vmem:[%s10285_s0 + $0x22] sm:$0xff]  ;;  %v20_v60 = vld [vmem:[%s10285_s0 + $0x30] sm:$0xff] }
  0x1a   :  { %v1142_v7 = vld [vmem:[%s10285_s0 + $0x32] sm:$0xff] }
  0x1c   :  { %5900 = vmatmul.msk.f32.gmra.mxu0 %vm170_vm1, %v95_v13  ;;  %5922 = vmatmul.msk.f32.gmra.mxu1 %vm170_vm1, %v117_v14  ;;  %v109_v14 = vld [vmem:[%s10285_s0 + $0x89] sm:$0xff] }
  0x1d   :  { %5939 = vmatmul.msk.f32.gmra.mxu2 %vm170_vm1, %v134_v15  ;;  %5957 = vmatmul.msk.f32.gmra.mxu3 %vm170_vm1, %v152_v16  ;;  %v14_v15 = vld [vmem:[%s10285_s0] sm:$0xff] }
  0x1e   :  { %v148_v16 = vld [vmem:[%s10285_s0 + $0x1c1] sm:$0xff] }
  0x24   :  { %5901 = vmatmul.msk.f32.gmra.mxu0 %vm170_vm1, %v96_v17  ;;  %5923 = vmatmul.msk.f32.gmra.mxu1 %vm170_vm1, %v118_v18  ;;  %v166_v17 = vld [vmem:[%s10285_s0 + $0x251] sm:$0xff] }
  0x25   :  { %5940 = vmatmul.msk.f32.gmra.mxu2 %vm170_vm1, %v135_v19  ;;  %5958 = vmatmul.msk.f32.gmra.mxu3 %vm170_vm1, %v153_v20 }
  0x2c   :  { %5902 = vmatmul.msk.f32.gmra.mxu0 %vm170_vm1, %v97_v21  ;;  %5924 = vmatmul.msk.f32.gmra.mxu1 %vm170_vm1, %v119_v22  ;;  %v110_v22 = vld [vmem:[%s10285_s0 + $0x91] sm:$0xff] }
  0x2d   :  { %5941 = vmatmul.msk.f32.gmra.mxu2 %vm170_vm1, %v136_v23  ;;  %5959 = vmatmul.msk.f32.gmra.mxu3 %vm170_vm1, %v154_v24  ;;  %v15_v23 = vld [vmem:[%s10285_s0 + $0x8] sm:$0xff]  ;;  %v2487_v24 = vld [vmem:[%s10284_s1 + $0x10] sm:$0xf] }
  0x2e   :  { %6208 = vmatpush.msk.msrb.mxu0 %vm402_vm0, %v2487_v24 }
  0x34   :  { %5903 = vmatmul.msk.f32.gmra.mxu0 %vm170_vm1, %v98_v25  ;;  %5925 = vmatmul.msk.f32.gmra.mxu1 %vm170_vm1, %v120_v26  ;;  %v167_v25 = vld [vmem:[%s10285_s0 + $0x259] sm:$0xff]  ;;  %v1136_v26 = vld [vmem:[%s10285_s0 + $0x2] sm:$0xff] }
  0x35   :  { %5942 = vmatmul.msk.f32.gmra.mxu2 %vm170_vm1, %v137_v27  ;;  %5960 = vmatmul.msk.f32.gmra.mxu3 %vm170_vm1, %v155_v28 }
  0x3c   :  { %5904 = vmatmul.msk.f32.gmra.mxu0 %vm170_vm1, %v99_v29  ;;  %5926 = vmatmul.msk.f32.gmra.mxu1 %vm170_vm1, %v121_v30 }
  0x3d   :  { %5943 = vmatmul.msk.f32.gmra.mxu2 %vm170_vm1, %v138_v31  ;;  %5961 = vmatmul.msk.f32.gmra.mxu3 %vm170_vm1, %v156_v32  ;;  %v111_v31 = vld [vmem:[%s10285_s0 + $0x99] sm:$0xff]  ;;  %v16_v32 = vld [vmem:[%s10285_s0 + $0x10] sm:$0xff] }
  0x44   :  { %5905 = vmatmul.msk.f32.gmra.mxu0 %vm170_vm1, %v100_v33  ;;  %5927 = vmatmul.msk.f32.gmra.mxu1 %vm170_vm1, %v122_v34  ;;  %v168_v33 = vld [vmem:[%s10285_s0 + $0x261] sm:$0x3]  ;;  %v1137_v34 = vld [vmem:[%s10285_s0 + $0xa] sm:$0xff] }
  0x45   :  { %5944 = vmatmul.msk.f32.gmra.mxu2 %vm170_vm1, %v139_v35  ;;  %5962 = vmatmul.msk.f32.gmra.mxu3 %vm170_vm1, %v157_v36 }
  0x4c   :  { %5906 = vmatmul.msk.f32.gmra.mxu0 %vm170_vm1, %v101_v37  ;;  %5928 = vmatmul.msk.f32.gmra.mxu1 %vm170_vm1, %v123_v38 }
  0x4d   :  { %5945 = vmatmul.msk.f32.gmra.mxu2 %vm170_vm1, %v140_v39  ;;  %5963 = vmatmul.msk.f32.gmra.mxu3 %vm170_vm1, %v158_v40  ;;  %v112_v39 = vld [vmem:[%s10285_s0 + $0xa1] sm:$0xff]  ;;  %v17_v40 = vld [vmem:[%s10285_s0 + $0x18] sm:$0xff] }
  0x54   :  { %5907 = vmatmul.msk.f32.gmra.mxu0 %vm170_vm1, %v102_v41  ;;  %5929 = vmatmul.msk.f32.gmra.mxu1 %vm170_vm1, %v124_v42  ;;  %v1138_v41 = vld [vmem:[%s10285_s0 + $0x12] sm:$0xff] }
  0x55   :  { %5946 = vmatmul.msk.f32.gmra.mxu2 %vm170_vm1, %v141_v43  ;;  %5964 = vmatmul.msk.f32.gmra.mxu3 %vm170_vm1, %v159_v44 }
  0x5c   :  { %5908 = vmatmul.msk.f32.gmra.mxu0 %vm170_vm1, %v103_v45  ;;  %5930 = vmatmul.msk.f32.gmra.mxu1 %vm170_vm1, %v125_v46  ;;  %v113_v46 = vld [vmem:[%s10285_s0 + $0xa9] sm:$0xff] }
  0x5d   :  { %5947 = vmatmul.msk.f32.gmra.mxu2 %vm170_vm1, %v142_v47  ;;  %5965 = vmatmul.msk.f32.gmra.mxu3 %vm170_vm1, %v160_v48  ;;  %v18_v47 = vld [vmem:[%s10285_s0 + $0x20] sm:$0xff] }
  0x5e   :  { %v1139_v48 = vld [vmem:[%s10285_s0 + $0x1a] sm:$0xff] }
  0x64   :  { %5909 = vmatmul.msk.f32.gmra.mxu0 %vm170_vm1, %v104_v49  ;;  %5931 = vmatmul.msk.f32.gmra.mxu1 %vm170_vm1, %v126_v50 }
  0x65   :  { %5948 = vmatmul.msk.f32.gmra.mxu2 %vm170_vm1, %v143_v51  ;;  %5966 = vmatmul.msk.f32.gmra.mxu3 %vm170_vm1, %v161_v52 }
  0x6c   :  { %5910 = vmatmul.msk.f32.gmra.mxu0 %vm170_vm1, %v105_v53  ;;  %5932 = vmatmul.msk.f32.gmra.mxu1 %vm170_vm1, %v127_v54  ;;  %v19_v53 = vld [vmem:[%s10285_s0 + $0x28] sm:$0xff]  ;;  %v2410_v54 = vld [vmem:[%s10285_s0 + $0x13] sm:$0xff] }
  0x6d   :  { %5949 = vmatmul.msk.f32.gmra.mxu2 %vm170_vm1, %v144_v56  ;;  %5967 = vmatmul.msk.f32.gmra.mxu3 %vm170_vm1, %v162_v57 }
  0x74   :  { %5911 = vmatmul.msk.f32.gmra.mxu0 %vm170_vm1, %v106_v58  ;;  %5933 = vmatmul.msk.f32.gmra.mxu1 %vm170_vm1, %v128_v59 }
  0x75   :  { %5950 = vmatmul.msk.f32.gmra.mxu2 %vm170_vm1, %v145_v61  ;;  %5968 = vmatmul.msk.f32.gmra.mxu3 %vm170_vm1, %v163_v62  ;;  %v2411_v61 = vld [vmem:[%s10285_s0 + $0x1b] sm:$0xff]  ;;  %v1141_v62 = vld [vmem:[%s10285_s0 + $0x2a] sm:$0xff] }
  0x7c   :  { %5912 = vmatmul.msk.f32.gmra.mxu0 %vm170_vm1, %v107_v63  ;;  %5934 = vmatmul.msk.f32.gmra.mxu1 %vm170_vm1, %v129_v0 }
  0x7d   :  { %5951 = vmatmul.msk.f32.gmra.mxu2 %vm170_vm1, %v146_v1  ;;  %5969 = vmatmul.msk.f32.gmra.mxu3 %vm170_vm1, %v164_v2 }
  0x81   :  { %v6898_v3 = vpop.f32.mrf.mxu0  ;;  %v6900_v4 = vpop.f32.mrf.mxu1 }
  0x84   :  { %5913 = vmatmul.msk.f32.gmra.mxu0 %vm170_vm1, %v108_v5  ;;  %5935 = vmatmul.msk.f32.gmra.mxu1 %vm170_vm1, %v130_v6  ;;  %v21_v5 = vld [vmem:[%s10285_s0 + $0x38] sm:$0xff]  ;;  %v2412_v6 = vld [vmem:[%s10285_s0 + $0x23] sm:$0xff] }
  0x85   :  { %5952 = vmatmul.msk.f32.gmra.mxu2 %vm170_vm1, %v147_v8  ;;  %5970 = vmatmul.msk.f32.gmra.mxu3 %vm170_vm1, %v165_v9 }
  0x88   :  { %v6922_v10 = vpop.f32.mrf.mxu2  ;;  %v6924_v11 = vpop.f32.mrf.mxu3 }
  0x89   :  { %10288 = vst [vmem:[#allocation2_spill] sm:$0xff] %v6924_v11  ;;  %v6926_v12 = vpop.f32.mrf.mxu0  ;;  %v6928_v13 = vpop.f32.mrf.mxu1  ;;  %v32_v11 = vld [vmem:[%s10285_s0 + $0x90] sm:$0xff] }
  0x8c   :  { %5914 = vmatmul.msk.f32.gmra.mxu0 %vm170_vm1, %v109_v14  ;;  %5975 = vmatmul.msk.f32.vlgmr.msrb.gmra.mxu1 %vm170_vm1, %v14_v15 }
  0x8d   :  { %5953 = vmatmul.msk.f32.gmra.mxu2 %vm170_vm1, %v148_v16  ;;  %5971 = vmatmul.msk.f32.gmra.mxu3 %vm170_vm1, %v166_v17  ;;  %v22_v16 = vld [vmem:[%s10285_s0 + $0x40] sm:$0xff]  ;;  %v2413_v17 = vld [vmem:[%s10285_s0 + $0x2b] sm:$0xff] }
  0x90   :  { %v6946_v18 = vpop.f32.mrf.mxu2  ;;  %v6948_v19 = vpop.f32.mrf.mxu3 }
  0x91   :  { %10289 = vst [vmem:[#allocation3_spill] sm:$0xff] %v6948_v19  ;;  %v6950_v20 = vpop.f32.mrf.mxu0  ;;  %v6952_v21 = vpop.f32.mrf.mxu1 }
  0x94   :  { %5915 = vmatmul.msk.f32.gmra.mxu0 %vm170_vm1, %v110_v22  ;;  %5976 = vmatmul.msk.f32.gmra.mxu1 %vm170_vm1, %v15_v23  ;;  %v1143_v22 = vld [vmem:[%s10285_s0 + $0x3a] sm:$0xff] }
  0x95   :  { %5972 = vmatmul.msk.f32.gmra.mxu3 %vm170_vm1, %v167_v25  ;;  %6053 = vmatmul.msk.f32.vlgmr.msrb.gmra.mxu2 %vm170_vm1, %v1136_v26 }
  0x98   :  { %v6974_v27 = vpop.f32.mrf.mxu2  ;;  %v6976_v28 = vpop.f32.mrf.mxu3 }
  0x99   :  { %10290 = vst [vmem:[#allocation4_spill] sm:$0xff] %v6976_v28  ;;  %v6978_v29 = vpop.f32.mrf.mxu0  ;;  %v6980_v30 = vpop.f32.mrf.mxu1 }
  0x9c   :  { %5916 = vmatmul.msk.f32.gmra.mxu0 %vm170_vm1, %v111_v31  ;;  %5977 = vmatmul.msk.f32.gmra.mxu1 %vm170_vm1, %v16_v32  ;;  %v23_v31 = vld [vmem:[%s10285_s0 + $0x48] sm:$0xff]  ;;  %v2414_v32 = vld [vmem:[%s10285_s0 + $0x33] sm:$0xff] }
  0x9d   :  { %5973 = vmatmul.msk.f32.gmra.mxu3 %vm170_vm1, %v168_v33  ;;  %6054 = vmatmul.msk.f32.gmra.mxu2 %vm170_vm1, %v1137_v34  ;;  %v1144_v33 = vld [vmem:[%s10285_s0 + $0x42] sm:$0xff] }
  0xa0   :  { %v6998_v35 = vpop.f32.mrf.mxu2  ;;  %v7000_v36 = vpop.f32.mrf.mxu3 }
  0xa1   :  { %10291 = vst [vmem:[#allocation5_spill] sm:$0xff] %v7000_v36  ;;  %v7002_v37 = vpop.f32.mrf.mxu0  ;;  %v7004_v38 = vpop.f32.mrf.mxu1  ;;  %v31_v36 = vld [vmem:[%s10285_s0 + $0x88] sm:$0xff] }
  0xa4   :  { %5917 = vmatmul.msk.f32.gmra.mxu0 %vm170_vm1, %v112_v39  ;;  %5978 = vmatmul.msk.f32.gmra.mxu1 %vm170_vm1, %v17_v40 }
  0xa5   :  { %6055 = vmatmul.msk.f32.gmra.mxu2 %vm170_vm1, %v1138_v41  ;;  %6131 = vmatmul.msk.f32.vlgmr.msrb.gmra.mxu3 %vm170_vm1, %v1138_v41 }
  0xa8   :  { %v7019_v42 = vpop.f32.mrf.mxu2  ;;  %v7021_v43 = vpop.f32.mrf.mxu3 }
  0xa9   :  { %10292 = vst [vmem:[#allocation6_spill] sm:$0xff] %v7021_v43  ;;  %v7023_v44 = vpop.f32.mrf.mxu0  ;;  %v7025_v45 = vpop.f32.mrf.mxu1 }
  0xac   :  { %5918 = vmatmul.msk.f32.gmra.mxu0 %vm170_vm1, %v113_v46  ;;  %5979 = vmatmul.msk.f32.gmra.mxu1 %vm170_vm1, %v18_v47  ;;  %v24_v46 = vld [vmem:[%s10285_s0 + $0x50] sm:$0xff]  ;;  %v2415_v47 = vld [vmem:[%s10285_s0 + $0x3b] sm:$0xff] }
  0xad   :  { %6056 = vmatmul.msk.f32.gmra.mxu2 %vm170_vm1, %v1139_v48  ;;  %6132 = vmatmul.msk.f32.gmra.mxu3 %vm170_vm1, %v1139_v48  ;;  %v1145_v48 = vld [vmem:[%s10285_s0 + $0x4a] sm:$0xff] }
  0xb0   :  { %v7040_v49 = vpop.f32.mrf.mxu2  ;;  %v7042_v50 = vpop.f32.mrf.mxu3 }
  0xb1   :  { %10293 = vst [vmem:[#allocation7_spill] sm:$0xff] %v7042_v50  ;;  %v7044_v51 = vpop.f32.mrf.mxu0  ;;  %v7046_v52 = vpop.f32.mrf.mxu1 }
  0xb4   :  { %5980 = vmatmul.msk.f32.gmra.mxu1 %vm170_vm1, %v19_v53  ;;  %6209 = vmatmul.msk.f32.vlgmr.msrb.gmra.mxu0 %vm170_vm1, %v2410_v54 }
  0xb5   :  { %6057 = vmatmul.msk.f32.gmra.mxu2 %vm170_vm1, %v1140_v55  ;;  %6133 = vmatmul.msk.f32.gmra.mxu3 %vm170_vm1, %v1140_v55 }
  0xb8   :  { %v7061_v56 = vpop.f32.mrf.mxu2  ;;  %v7063_v57 = vpop.f32.mrf.mxu3 }
  0xb9   :  { %10294 = vst [vmem:[#allocation8_spill] sm:$0xff] %v7063_v57  ;;  %v7065_v58 = vpop.f32.mrf.mxu0  ;;  %v7067_v59 = vpop.f32.mrf.mxu1  ;;  %v30_v57 = vld [vmem:[%s10285_s0 + $0x80] sm:$0xff] }
  0xbc   :  { %5981 = vmatmul.msk.f32.gmra.mxu1 %vm170_vm1, %v20_v60  ;;  %6210 = vmatmul.msk.f32.gmra.mxu0 %vm170_vm1, %v2411_v61  ;;  %v25_v61 = vld [vmem:[%s10285_s0 + $0x58] sm:$0xff] }
  0xbd   :  { %6058 = vmatmul.msk.f32.gmra.mxu2 %vm170_vm1, %v1141_v62  ;;  %6134 = vmatmul.msk.f32.gmra.mxu3 %vm170_vm1, %v1141_v62  ;;  %v2416_v62 = vld [vmem:[%s10285_s0 + $0x43] sm:$0xff] }
  0xc0   :  { %v7082_v63 = vpop.f32.mrf.mxu2  ;;  %v7084_v0 = vpop.f32.mrf.mxu3 }
  0xc1   :  { %10295 = vst [vmem:[#allocation9_spill] sm:$0xff] %v7084_v0  ;;  %v7086_v1 = vpop.f32.mrf.mxu0  ;;  %v7088_v2 = vpop.f32.mrf.mxu1 }
  0xc4   :  { %5982 = vmatmul.msk.f32.gmra.mxu1 %vm170_vm1, %v21_v5  ;;  %6211 = vmatmul.msk.f32.gmra.mxu0 %vm170_vm1, %v2412_v6  ;;  %v1146_v5 = vld [vmem:[%s10285_s0 + $0x52] sm:$0xff] }
  0xc5   :  { %6059 = vmatmul.msk.f32.gmra.mxu2 %vm170_vm1, %v1142_v7  ;;  %6135 = vmatmul.msk.f32.gmra.mxu3 %vm170_vm1, %v1142_v7 }
  0xc8   :  { %v7103_v8 = vpop.f32.mrf.mxu2  ;;  %v7105_v9 = vpop.f32.mrf.mxu3 }
  0xc9   :  { %10296 = vst [vmem:[#allocation10_spill] sm:$0xff] %v7105_v9  ;;  %v7107_v14 = vpop.f32.mrf.mxu0  ;;  %v7109_v15 = vpop.f32.mrf.mxu1 }
  0xcc   :  { %5983 = vmatmul.msk.f32.gmra.mxu1 %vm170_vm1, %v22_v16  ;;  %6212 = vmatmul.msk.f32.gmra.mxu0 %vm170_vm1, %v2413_v17 }
  0xcd   :  { %6060 = vmatmul.msk.f32.gmra.mxu2 %vm170_vm1, %v1143_v22  ;;  %6136 = vmatmul.msk.f32.gmra.mxu3 %vm170_vm1, %v1143_v22  ;;  %v26_v22 = vld [vmem:[%s10285_s0 + $0x60] sm:$0xff] }
  0xd0   :  { %v7124_v23 = vpop.f32.mrf.mxu2  ;;  %v7126_v24 = vpop.f32.mrf.mxu3 }
  0xd1   :  { %10297 = vst [vmem:[#allocation11_spill] sm:$0xff] %v7126_v24  ;;  %v7128_v25 = vpop.f32.mrf.mxu0  ;;  %v7130_v26 = vpop.f32.mrf.mxu1  ;;  %v29_v24 = vld [vmem:[%s10285_s0 + $0x78] sm:$0xff] }
  0xd4   :  { %5984 = vmatmul.msk.f32.gmra.mxu1 %vm170_vm1, %v23_v31  ;;  %6213 = vmatmul.msk.f32.gmra.mxu0 %vm170_vm1, %v2414_v32  ;;  %v2417_v31 = vld [vmem:[%s10285_s0 + $0x4b] sm:$0xff]  ;;  %v1147_v32 = vld [vmem:[%s10285_s0 + $0x5a] sm:$0xff] }
  0xd5   :  { %6061 = vmatmul.msk.f32.gmra.mxu2 %vm170_vm1, %v1144_v33  ;;  %6137 = vmatmul.msk.f32.gmra.mxu3 %vm170_vm1, %v1144_v33 }
  0xd8   :  { %v7145_v34 = vpop.f32.mrf.mxu2  ;;  %v7147_v39 = vpop.f32.mrf.mxu3 }
  0xd9   :  { %10298 = vst [vmem:[#allocation12_spill] sm:$0xff] %v7145_v34  ;;  %v7149_v40 = vpop.f32.mrf.mxu0  ;;  %v7151_v41 = vpop.f32.mrf.mxu1 }
  0xda   :  { %10299 = vst [vmem:[#allocation13_spill] sm:$0xff] %v7147_v39 }
  0xdc   :  { %5985 = vmatmul.msk.f32.gmra.mxu1 %vm170_vm1, %v24_v46  ;;  %6214 = vmatmul.msk.f32.gmra.mxu0 %vm170_vm1, %v2415_v47 }
  0xdd   :  { %6062 = vmatmul.msk.f32.gmra.mxu2 %vm170_vm1, %v1145_v48  ;;  %6138 = vmatmul.msk.f32.gmra.mxu3 %vm170_vm1, %v1145_v48 }
  0xe0   :  { %v7166_v53 = vpop.f32.mrf.mxu2  ;;  %v7168_v54 = vpop.f32.mrf.mxu3 }
  0xe1   :  { %10300 = vst [vmem:[#allocation14_spill] sm:$0xff] %v7166_v53  ;;  %v7170_v55 = vpop.f32.mrf.mxu0  ;;  %v7172_v60 = vpop.f32.mrf.mxu1 }
  0xe2   :  { %10301 = vst [vmem:[#allocation15_spill] sm:$0xff] %v7168_v54 }
  0xe4   :  { %5986 = vmatmul.msk.f32.gmra.mxu1 %vm170_vm1, %v25_v61  ;;  %6215 = vmatmul.msk.f32.gmra.mxu0 %vm170_vm1, %v2416_v62  ;;  %v27_v61 = vld [vmem:[%s10285_s0 + $0x68] sm:$0xff]  ;;  %v2418_v62 = vld [vmem:[%s10285_s0 + $0x53] sm:$0xff] }
  0xe5   :  { %6063 = vmatmul.msk.f32.gmra.mxu2 %vm170_vm1, %v1146_v5  ;;  %6139 = vmatmul.msk.f32.gmra.mxu3 %vm170_vm1, %v1146_v5  ;;  %v1148_v5 = vld [vmem:[%s10285_s0 + $0x62] sm:$0xff] }
  0xe8   :  { %v7187_v6 = vpop.f32.mrf.mxu2  ;;  %v7189_v7 = vpop.f32.mrf.mxu3 }
  0xe9   :  { %10302 = vst [vmem:[#allocation16_spill] sm:$0xff] %v7187_v6  ;;  %v7191_v16 = vpop.f32.mrf.mxu0  ;;  %v7193_v17 = vpop.f32.mrf.mxu1 }
  0xea   :  { %10303 = vst [vmem:[#allocation17_spill] sm:$0xff] %v7189_v7  ;;  %v28_v7 = vld [vmem:[%s10285_s0 + $0x70] sm:$0xff] }
  0xec   :  { %5987 = vmatmul.msk.f32.gmra.mxu1 %vm170_vm1, %v26_v22  ;;  %6216 = vmatmul.msk.f32.gmra.mxu0 %vm170_vm1, %v2417_v31 }
  0xed   :  { %6064 = vmatmul.msk.f32.gmra.mxu2 %vm170_vm1, %v1147_v32  ;;  %6140 = vmatmul.msk.f32.gmra.mxu3 %vm170_vm1, %v1147_v32 }
  0xf0   :  { %v7208_v33 = vpop.f32.mrf.mxu2  ;;  %v7210_v46 = vpop.f32.mrf.mxu3 }
  0xf1   :  { %10304 = vst [vmem:[#allocation18_spill] sm:$0xff] %v7208_v33  ;;  %v7212_v47 = vpop.f32.mrf.mxu0  ;;  %v7214_v48 = vpop.f32.mrf.mxu1 }
  0xf2   :  { %10305 = vst [vmem:[#allocation19_spill] sm:$0xff] %v7210_v46 }
  0xf4   :  { %5988 = vmatmul.msk.f32.gmra.mxu1 %vm170_vm1, %v27_v61  ;;  %6217 = vmatmul.msk.f32.gmra.mxu0 %vm170_vm1, %v2418_v62  ;;  %v2419_v61 = vld [vmem:[%s10285_s0 + $0x5b] sm:$0xff]  ;;  %v1149_v62 = vld [vmem:[%s10285_s0 + $0x6a] sm:$0xff] }
  0xf5   :  { %6065 = vmatmul.msk.f32.gmra.mxu2 %vm170_vm1, %v1148_v5  ;;  %6141 = vmatmul.msk.f32.gmra.mxu3 %vm170_vm1, %v1148_v5 }
  0xf8   :  { %v7229_v22 = vpop.f32.mrf.mxu2  ;;  %v7231_v31 = vpop.f32.mrf.mxu3 }
  0xf9   :  { %10306 = vst [vmem:[#allocation20_spill] sm:$0xff] %v7229_v22  ;;  %v7233_v32 = vpop.f32.mrf.mxu0  ;;  %v7235_v46 = vpop.f32.mrf.mxu1 }
  0xfa   :  { %10307 = vst [vmem:[#allocation21_spill] sm:$0xff] %v7231_v31 }
  0xfc   :  { %5989 = vmatmul.msk.f32.gmra.mxu1 %vm170_vm1, %v28_v7  ;;  %6218 = vmatmul.msk.f32.gmra.mxu0 %vm170_vm1, %v2419_v61  ;;  %v2420_v7 = vld [vmem:[%s10285_s0 + $0x63] sm:$0xff]  ;;  %v1150_v61 = vld [vmem:[%s10285_s0 + $0x72] sm:$0xff] }
  0xfd   :  { %6066 = vmatmul.msk.f32.gmra.mxu2 %vm170_vm1, %v1149_v62  ;;  %6142 = vmatmul.msk.f32.gmra.mxu3 %vm170_vm1, %v1149_v62 }
 0x100   :  { %v7250_v5 = vpop.f32.mrf.mxu2  ;;  %v7252_v31 = vpop.f32.mrf.mxu3 }
 0x101   :  { %10308 = vst [vmem:[#allocation22_spill] sm:$0xff] %v7250_v5  ;;  %v7254_v54 = vpop.f32.mrf.mxu0  ;;  %v7256_v39 = vpop.f32.mrf.mxu1  ;;  %v33_v5 = vld [vmem:[%s10285_s0 + $0x98] sm:$0xff] }
 0x102   :  { %10309 = vst [vmem:[#allocation23_spill] sm:$0xff] %v7252_v31 }
 0x104   :  { %5990 = vmatmul.msk.f32.gmra.mxu1 %vm170_vm1, %v29_v24  ;;  %6219 = vmatmul.msk.f32.gmra.mxu0 %vm170_vm1, %v2420_v7  ;;  %v2421_v24 = vld [vmem:[%s10285_s0 + $0x6b] sm:$0xff]  ;;  %v1151_v7 = vld [vmem:[%s10285_s0 + $0x7a] sm:$0xff] }
 0x105   :  { %6067 = vmatmul.msk.f32.gmra.mxu2 %vm170_vm1, %v1150_v61  ;;  %6143 = vmatmul.msk.f32.gmra.mxu3 %vm170_vm1, %v1150_v61 }
 0x108   :  { %v7271_v62 = vpop.f32.mrf.mxu2  ;;  %v7273_v31 = vpop.f32.mrf.mxu3 }
 0x109   :  { %10310 = vst [vmem:[#allocation24_spill] sm:$0xff] %v7271_v62  ;;  %v7275_v9 = vpop.f32.mrf.mxu0  ;;  %v905_v0 = vpop.f32.mrf.mxu1 }
 0x10a   :  { %10311 = vst [vmem:[#allocation25_spill] sm:$0xff] %v7273_v31 }
 0x10c   :  { %5991 = vmatmul.msk.f32.gmra.mxu1 %vm170_vm1, %v30_v57  ;;  %6220 = vmatmul.msk.f32.gmra.mxu0 %vm170_vm1, %v2421_v24  ;;  %v2422_v57 = vld [vmem:[%s10285_s0 + $0x73] sm:$0xff]  ;;  %v1152_v24 = vld [vmem:[%s10285_s0 + $0x82] sm:$0xff] }
 0x10d   :  { %6068 = vmatmul.msk.f32.gmra.mxu2 %vm170_vm1, %v1151_v7  ;;  %6144 = vmatmul.msk.f32.gmra.mxu3 %vm170_vm1, %v1151_v7 }
 0x110   :  { %v7290_v61 = vpop.f32.mrf.mxu2  ;;  %v7292_v31 = vpop.f32.mrf.mxu3 }
 0x111   :  { %10312 = vst [vmem:[#allocation26_spill] sm:$0xff] %v7290_v61  ;;  %v7294_v50 = vpop.f32.mrf.mxu0  ;;  %v908_v43 = vpop.f32.mrf.mxu1 }
 0x112   :  { %10313 = vst [vmem:[#allocation27_spill] sm:$0xff] %v7292_v31 }
 0x114   :  { %5992 = vmatmul.msk.f32.gmra.mxu1 %vm170_vm1, %v31_v36  ;;  %6221 = vmatmul.msk.f32.gmra.mxu0 %vm170_vm1, %v2422_v57  ;;  %v2423_v36 = vld [vmem:[%s10285_s0 + $0x7b] sm:$0xff]  ;;  %v1153_v57 = vld [vmem:[%s10285_s0 + $0x8a] sm:$0xff] }
 0x115   :  { %6069 = vmatmul.msk.f32.gmra.mxu2 %vm170_vm1, %v1152_v24  ;;  %6145 = vmatmul.msk.f32.gmra.mxu3 %vm170_vm1, %v1152_v24 }
 0x118   :  { %v7309_v7 = vpop.f32.mrf.mxu3  ;;  %v1465_v31 = vpop.f32.mrf.mxu2 }
 0x119   :  { %10314 = vst [vmem:[#allocation28_spill] sm:$0xff] %v7309_v7  ;;  %v7311_v28 = vpop.f32.mrf.mxu0  ;;  %v911_v19 = vpop.f32.mrf.mxu1 }
 0x11c   :  { %5993 = vmatmul.msk.f32.gmra.mxu1 %vm170_vm1, %v32_v11  ;;  %6222 = vmatmul.msk.f32.gmra.mxu0 %vm170_vm1, %v2423_v36  ;;  %v2424_v11 = vld [vmem:[%s10285_s0 + $0x83] sm:$0xff]  ;;  %v1154_v36 = vld [vmem:[%s10285_s0 + $0x92] sm:$0xff] }
 0x11d   :  { %6070 = vmatmul.msk.f32.gmra.mxu2 %vm170_vm1, %v1153_v57  ;;  %6146 = vmatmul.msk.f32.gmra.mxu3 %vm170_vm1, %v1153_v57  ;;  %v906_v57 = vadd.f32 %v905_v0, %v6898_v3  ;;  %v2425_v3 = vld [vmem:[%s10285_s0 + $0x8b] sm:$0xff]  ;;  %v1155_v0 = vld [vmem:[%s10285_s0 + $0x9a] sm:$0xff] }
 0x120   :  { %v7326_v24 = vpop.f32.mrf.mxu3  ;;  %v1468_v7 = vpop.f32.mrf.mxu2 }
 0x121   :  { %10315 = vst [vmem:[#allocation29_spill] sm:$0xff] %v7326_v24  ;;  %v7328_v61 = vpop.f32.mrf.mxu0  ;;  %v914_v62 = vpop.f32.mrf.mxu1  ;;  %v1696_v24 = vadd.f32 %v1465_v31, %v906_v57 }
 0x124   :  { %5994 = vmatmul.msk.f32.gmra.mxu1 %vm170_vm1, %v33_v5  ;;  %6223 = vmatmul.msk.f32.gmra.mxu0 %vm170_vm1, %v2424_v11  ;;  %v34_v5 = vld [vmem:[%s10285_s0 + $0xa0] sm:$0xff] }
 0x125   :  { %6071 = vmatmul.msk.f32.gmra.mxu2 %vm170_vm1, %v1154_v36  ;;  %6147 = vmatmul.msk.f32.gmra.mxu3 %vm170_vm1, %v1154_v36 }
 0x128   :  { %v1471_v22 = vpop.f32.mrf.mxu2  ;;  %v2102_v33 = vpop.f32.mrf.mxu3 }
 0x129   :  { %v7344_v6 = vadd.f32 %v2102_v33, %v1696_v24  ;;  %v7346_v53 = vpop.f32.mrf.mxu0  ;;  %v917_v34 = vpop.f32.mrf.mxu1  ;;  %v909_v33 = vadd.f32 %v908_v43, %v6926_v12  ;;  %v2426_v12 = vld [vmem:[%s10285_s0 + $0x93] sm:$0xff]  ;;  %v1156_v43 = vld [vmem:[%s10285_s0 + $0xa2] sm:$0xff] }
 0x12b   :  { %10316 = vst [vmem:[#allocation30_spill] sm:$0xff] %v7344_v6  ;;  %v1697_v31 = vadd.f32 %v1468_v7, %v909_v33  ;;  %v912_v7 = vadd.f32 %v911_v19, %v6950_v20  ;;  %v2427_v19 = vld [vmem:[%s10285_s0 + $0x9b] sm:$0xff]  ;;  %v1157_v20 = vld [vmem:[%s10285_s0 + $0xaa] sm:$0xff] }
 0x12c   :  { %5995 = vmatmul.msk.f32.gmra.mxu1 %vm170_vm1, %v34_v5  ;;  %6224 = vmatmul.msk.f32.gmra.mxu0 %vm170_vm1, %v2425_v3  ;;  %v35_v5 = vld [vmem:[%s10285_s0 + $0xa8] sm:$0xff] }
 0x12d   :  { %6072 = vmatmul.msk.f32.gmra.mxu2 %vm170_vm1, %v1155_v0  ;;  %6148 = vmatmul.msk.f32.gmra.mxu3 %vm170_vm1, %v1155_v0  ;;  %v1698_v3 = vadd.f32 %v1471_v22, %v912_v7  ;;  %v915_v22 = vadd.f32 %v914_v62, %v6978_v29  ;;  %v2428_v29 = vld [vmem:[%s10285_s0 + $0xa3] sm:$0xff]  ;;  %v1158_v62 = vld [vmem:[%s10285_s0 + $0xb2] sm:$0xff] }
 0x130   :  { %v1474_v24 = vpop.f32.mrf.mxu2  ;;  %v2105_v11 = vpop.f32.mrf.mxu3 }
 0x131   :  { %v7362_v36 = vadd.f32 %v2105_v11, %v1697_v31  ;;  %v920_v57 = vpop.f32.mrf.mxu1  ;;  %v7364_v6 = vpop.f32.mrf.mxu0 }
 0x133   :  { %10317 = vst [vmem:[#allocation31_spill] sm:$0xff] %v7362_v36 }
 0x134   :  { %5996 = vmatmul.msk.f32.gmra.mxu1 %vm170_vm1, %v35_v5  ;;  %6225 = vmatmul.msk.f32.gmra.mxu0 %vm170_vm1, %v2426_v12  ;;  %v36_v5 = vld [vmem:[%s10285_s0 + $0xb0] sm:$0xff]  ;;  %v1699_v12 = vadd.f32 %v1474_v24, %v915_v22  ;;  %v918_v24 = vadd.f32 %v917_v34, %v7002_v37  ;;  %v1159_v34 = vld [vmem:[%s10285_s0 + $0xba] sm:$0xff] }
 0x135   :  { %6073 = vmatmul.msk.f32.gmra.mxu2 %vm170_vm1, %v1156_v43  ;;  %6149 = vmatmul.msk.f32.gmra.mxu3 %vm170_vm1, %v1156_v43  ;;  %v2429_v37 = vld [vmem:[%s10285_s0 + $0xab] sm:$0xff] }
 0x138   :  { %v1477_v0 = vpop.f32.mrf.mxu2  ;;  %v2108_v33 = vpop.f32.mrf.mxu3 }
 0x139   :  { %v7380_v31 = vadd.f32 %v2108_v33, %v1698_v3  ;;  %v923_v11 = vpop.f32.mrf.mxu1  ;;  %v7382_v36 = vpop.f32.mrf.mxu0 }
 0x13b   :  { %10318 = vst [vmem:[#allocation32_spill] sm:$0xff] %v7380_v31 }
 0x13c   :  { %5997 = vmatmul.msk.f32.gmra.mxu1 %vm170_vm1, %v36_v5  ;;  %6226 = vmatmul.msk.f32.gmra.mxu0 %vm170_vm1, %v2427_v19  ;;  %v37_v5 = vld [vmem:[%s10285_s0 + $0xb8] sm:$0xff]  ;;  %v1700_v19 = vadd.f32 %v1477_v0, %v918_v24  ;;  %v921_v0 = vadd.f32 %v920_v57, %v7023_v44  ;;  %v1160_v57 = vld [vmem:[%s10285_s0 + $0xc2] sm:$0xff] }
 0x13d   :  { %6074 = vmatmul.msk.f32.gmra.mxu2 %vm170_vm1, %v1157_v20  ;;  %6150 = vmatmul.msk.f32.gmra.mxu3 %vm170_vm1, %v1157_v20  ;;  %v2430_v44 = vld [vmem:[%s10285_s0 + $0xb3] sm:$0xff] }
 0x140   :  { %v1480_v43 = vpop.f32.mrf.mxu2  ;;  %v2111_v7 = vpop.f32.mrf.mxu3 }
 0x141   :  { %v7398_v3 = vadd.f32 %v2111_v7, %v1699_v12  ;;  %v926_v33 = vpop.f32.mrf.mxu1  ;;  %v7400_v31 = vpop.f32.mrf.mxu0 }
 0x143   :  { %10319 = vst [vmem:[#allocation33_spill] sm:$0xff] %v7398_v3 }
 0x144   :  { %5998 = vmatmul.msk.f32.gmra.mxu1 %vm170_vm1, %v37_v5  ;;  %6227 = vmatmul.msk.f32.gmra.mxu0 %vm170_vm1, %v2428_v29  ;;  %v38_v5 = vld [vmem:[%s10285_s0 + $0xc0] sm:$0xff]  ;;  %v1701_v29 = vadd.f32 %v1480_v43, %v921_v0  ;;  %v924_v43 = vadd.f32 %v923_v11, %v7044_v51  ;;  %v1161_v11 = vld [vmem:[%s10285_s0 + $0xca] sm:$0xff] }
 0x145   :  { %6075 = vmatmul.msk.f32.gmra.mxu2 %vm170_vm1, %v1158_v62  ;;  %6151 = vmatmul.msk.f32.gmra.mxu3 %vm170_vm1, %v1158_v62  ;;  %v2431_v51 = vld [vmem:[%s10285_s0 + $0xbb] sm:$0xff] }
 0x148   :  { %v1483_v20 = vpop.f32.mrf.mxu2  ;;  %v2114_v22 = vpop.f32.mrf.mxu3 }
 0x149   :  { %v7416_v12 = vadd.f32 %v2114_v22, %v1700_v19  ;;  %v929_v7 = vpop.f32.mrf.mxu1  ;;  %v7418_v3 = vpop.f32.mrf.mxu0 }
 0x14b   :  { %10320 = vst [vmem:[#allocation34_spill] sm:$0xff] %v7416_v12 }
 0x14c   :  { %5999 = vmatmul.msk.f32.gmra.mxu1 %vm170_vm1, %v38_v5  ;;  %6228 = vmatmul.msk.f32.gmra.mxu0 %vm170_vm1, %v2429_v37  ;;  %v39_v5 = vld [vmem:[%s10285_s0 + $0xc8] sm:$0xff]  ;;  %v1702_v37 = vadd.f32 %v1483_v20, %v924_v43  ;;  %v927_v20 = vadd.f32 %v926_v33, %v7065_v58  ;;  %v1162_v33 = vld [vmem:[%s10285_s0 + $0xd2] sm:$0xff] }
 0x14d   :  { %6076 = vmatmul.msk.f32.gmra.mxu2 %vm170_vm1, %v1159_v34  ;;  %6152 = vmatmul.msk.f32.gmra.mxu3 %vm170_vm1, %v1159_v34  ;;  %v2432_v58 = vld [vmem:[%s10285_s0 + $0xc3] sm:$0xff] }
 0x150   :  { %v1486_v62 = vpop.f32.mrf.mxu2  ;;  %v2117_v24 = vpop.f32.mrf.mxu3 }
 0x151   :  { %v7434_v19 = vadd.f32 %v2117_v24, %v1701_v29  ;;  %v932_v22 = vpop.f32.mrf.mxu1  ;;  %v7436_v12 = vpop.f32.mrf.mxu0 }
 0x153   :  { %10321 = vst [vmem:[#allocation35_spill] sm:$0xff] %v7434_v19 }
 0x154   :  { %6000 = vmatmul.msk.f32.gmra.mxu1 %vm170_vm1, %v39_v5  ;;  %6229 = vmatmul.msk.f32.gmra.mxu0 %vm170_vm1, %v2430_v44  ;;  %v40_v5 = vld [vmem:[%s10285_s0 + $0xd0] sm:$0xff]  ;;  %v1703_v44 = vadd.f32 %v1486_v62, %v927_v20  ;;  %v930_v62 = vadd.f32 %v929_v7, %v7086_v1  ;;  %v1163_v7 = vld [vmem:[%s10285_s0 + $0xda] sm:$0xff] }
 0x155   :  { %6077 = vmatmul.msk.f32.gmra.mxu2 %vm170_vm1, %v1160_v57  ;;  %6153 = vmatmul.msk.f32.gmra.mxu3 %vm170_vm1, %v1160_v57  ;;  %v2433_v1 = vld [vmem:[%s10285_s0 + $0xcb] sm:$0xff] }
 0x158   :  { %v1489_v34 = vpop.f32.mrf.mxu2  ;;  %v2120_v0 = vpop.f32.mrf.mxu3 }
 0x159   :  { %v7452_v29 = vadd.f32 %v2120_v0, %v1702_v37  ;;  %v935_v24 = vpop.f32.mrf.mxu1  ;;  %v7454_v19 = vpop.f32.mrf.mxu0 }
 0x15b   :  { %10322 = vst [vmem:[#allocation36_spill] sm:$0xff] %v7452_v29 }
 0x15c   :  { %6001 = vmatmul.msk.f32.gmra.mxu1 %vm170_vm1, %v40_v5  ;;  %6230 = vmatmul.msk.f32.gmra.mxu0 %vm170_vm1, %v2431_v51  ;;  %v41_v5 = vld [vmem:[%s10285_s0 + $0xd8] sm:$0xff]  ;;  %v1704_v51 = vadd.f32 %v1489_v34, %v930_v62  ;;  %v933_v34 = vadd.f32 %v932_v22, %v7107_v14  ;;  %v1164_v22 = vld [vmem:[%s10285_s0 + $0xe2] sm:$0xff] }
 0x15d   :  { %6078 = vmatmul.msk.f32.gmra.mxu2 %vm170_vm1, %v1161_v11  ;;  %6154 = vmatmul.msk.f32.gmra.mxu3 %vm170_vm1, %v1161_v11  ;;  %v2434_v14 = vld [vmem:[%s10285_s0 + $0xd3] sm:$0xff] }
 0x160   :  { %v1492_v57 = vpop.f32.mrf.mxu2  ;;  %v2123_v43 = vpop.f32.mrf.mxu3 }
 0x161   :  { %v7470_v37 = vadd.f32 %v2123_v43, %v1703_v44  ;;  %v938_v0 = vpop.f32.mrf.mxu1  ;;  %v7472_v29 = vpop.f32.mrf.mxu0 }
 0x163   :  { %10323 = vst [vmem:[#allocation37_spill] sm:$0xff] %v7470_v37 }
 0x164   :  { %6002 = vmatmul.msk.f32.gmra.mxu1 %vm170_vm1, %v41_v5  ;;  %6231 = vmatmul.msk.f32.gmra.mxu0 %vm170_vm1, %v2432_v58  ;;  %v42_v5 = vld [vmem:[%s10285_s0 + $0xe0] sm:$0xff]  ;;  %v1705_v58 = vadd.f32 %v1492_v57, %v933_v34  ;;  %v936_v57 = vadd.f32 %v935_v24, %v7128_v25  ;;  %v1165_v24 = vld [vmem:[%s10285_s0 + $0xea] sm:$0xff] }
 0x165   :  { %6079 = vmatmul.msk.f32.gmra.mxu2 %vm170_vm1, %v1162_v33  ;;  %6155 = vmatmul.msk.f32.gmra.mxu3 %vm170_vm1, %v1162_v33  ;;  %v2435_v25 = vld [vmem:[%s10285_s0 + $0xdb] sm:$0xff] }
 0x168   :  { %v1495_v11 = vpop.f32.mrf.mxu2  ;;  %v2126_v20 = vpop.f32.mrf.mxu3 }
 0x169   :  { %v7488_v44 = vadd.f32 %v2126_v20, %v1704_v51  ;;  %v941_v43 = vpop.f32.mrf.mxu1  ;;  %v7490_v37 = vpop.f32.mrf.mxu0 }
 0x16b   :  { %10324 = vst [vmem:[#allocation38_spill] sm:$0xff] %v7488_v44 }
 0x16c   :  { %6003 = vmatmul.msk.f32.gmra.mxu1 %vm170_vm1, %v42_v5  ;;  %6232 = vmatmul.msk.f32.gmra.mxu0 %vm170_vm1, %v2433_v1  ;;  %v43_v5 = vld [vmem:[%s10285_s0 + $0xe8] sm:$0xff]  ;;  %v1706_v1 = vadd.f32 %v1495_v11, %v936_v57  ;;  %v939_v11 = vadd.f32 %v938_v0, %v7149_v40  ;;  %v1166_v0 = vld [vmem:[%s10285_s0 + $0xf2] sm:$0xff] }
 0x16d   :  { %6080 = vmatmul.msk.f32.gmra.mxu2 %vm170_vm1, %v1163_v7  ;;  %6156 = vmatmul.msk.f32.gmra.mxu3 %vm170_vm1, %v1163_v7  ;;  %v2436_v40 = vld [vmem:[%s10285_s0 + $0xe3] sm:$0xff] }
 0x170   :  { %v1498_v33 = vpop.f32.mrf.mxu2  ;;  %v2129_v62 = vpop.f32.mrf.mxu3 }
 0x171   :  { %v7506_v51 = vadd.f32 %v2129_v62, %v1705_v58  ;;  %v944_v20 = vpop.f32.mrf.mxu1  ;;  %v7508_v44 = vpop.f32.mrf.mxu0 }
 0x173   :  { %10325 = vst [vmem:[#allocation39_spill] sm:$0xff] %v7506_v51 }
 0x174   :  { %6004 = vmatmul.msk.f32.gmra.mxu1 %vm170_vm1, %v43_v5  ;;  %6233 = vmatmul.msk.f32.gmra.mxu0 %vm170_vm1, %v2434_v14  ;;  %v44_v5 = vld [vmem:[%s10285_s0 + $0xf0] sm:$0xff]  ;;  %v1707_v14 = vadd.f32 %v1498_v33, %v939_v11  ;;  %v942_v33 = vadd.f32 %v941_v43, %v7170_v55  ;;  %v1167_v43 = vld [vmem:[%s10285_s0 + $0xfa] sm:$0xff] }
 0x175   :  { %6081 = vmatmul.msk.f32.gmra.mxu2 %vm170_vm1, %v1164_v22  ;;  %6157 = vmatmul.msk.f32.gmra.mxu3 %vm170_vm1, %v1164_v22  ;;  %v2437_v55 = vld [vmem:[%s10285_s0 + $0xeb] sm:$0xff] }
 0x178   :  { %v1501_v7 = vpop.f32.mrf.mxu2  ;;  %v2132_v34 = vpop.f32.mrf.mxu3 }
 0x179   :  { %v7524_v58 = vadd.f32 %v2132_v34, %v1706_v1  ;;  %v947_v62 = vpop.f32.mrf.mxu1  ;;  %v7526_v51 = vpop.f32.mrf.mxu0 }
 0x17a   :  { %10327 = vst [vmem:[#allocation41_spill] sm:$0xff] %v7526_v51 }
 0x17b   :  { %10326 = vst [vmem:[#allocation40_spill] sm:$0xff] %v7524_v58 }
 0x17c   :  { %6005 = vmatmul.msk.f32.gmra.mxu1 %vm170_vm1, %v44_v5  ;;  %6234 = vmatmul.msk.f32.gmra.mxu0 %vm170_vm1, %v2435_v25  ;;  %v45_v5 = vld [vmem:[%s10285_s0 + $0xf8] sm:$0xff]  ;;  %v1708_v25 = vadd.f32 %v1501_v7, %v942_v33  ;;  %v945_v7 = vadd.f32 %v944_v20, %v7191_v16  ;;  %v1168_v20 = vld [vmem:[%s10285_s0 + $0x102] sm:$0xff] }
 0x17d   :  { %6082 = vmatmul.msk.f32.gmra.mxu2 %vm170_vm1, %v1165_v24  ;;  %6158 = vmatmul.msk.f32.gmra.mxu3 %vm170_vm1, %v1165_v24  ;;  %v2438_v16 = vld [vmem:[%s10285_s0 + $0xf3] sm:$0xff] }
 0x180   :  { %v1504_v22 = vpop.f32.mrf.mxu2  ;;  %v2135_v57 = vpop.f32.mrf.mxu3 }
 0x181   :  { %v7542_v1 = vadd.f32 %v2135_v57, %v1707_v14  ;;  %v950_v34 = vpop.f32.mrf.mxu1  ;;  %v7544_v51 = vpop.f32.mrf.mxu0 }
 0x182   :  { %10329 = vst [vmem:[#allocation43_spill] sm:$0xff] %v7544_v51 }
 0x183   :  { %10328 = vst [vmem:[#allocation42_spill] sm:$0xff] %v7542_v1 }
 0x184   :  { %6006 = vmatmul.msk.f32.gmra.mxu1 %vm170_vm1, %v45_v5  ;;  %6235 = vmatmul.msk.f32.gmra.mxu0 %vm170_vm1, %v2436_v40  ;;  %v46_v5 = vld [vmem:[%s10285_s0 + $0x100] sm:$0xff]  ;;  %v1709_v40 = vadd.f32 %v1504_v22, %v945_v7  ;;  %v948_v22 = vadd.f32 %v947_v62, %v7212_v47  ;;  %v1169_v62 = vld [vmem:[%s10285_s0 + $0x10a] sm:$0xff] }
 0x185   :  { %6083 = vmatmul.msk.f32.gmra.mxu2 %vm170_vm1, %v1166_v0  ;;  %6159 = vmatmul.msk.f32.gmra.mxu3 %vm170_vm1, %v1166_v0  ;;  %v2439_v47 = vld [vmem:[%s10285_s0 + $0xfb] sm:$0xff] }
 0x188   :  { %v1507_v24 = vpop.f32.mrf.mxu2  ;;  %v2138_v11 = vpop.f32.mrf.mxu3 }
 0x189   :  { %v7560_v14 = vadd.f32 %v2138_v11, %v1708_v25  ;;  %v953_v57 = vpop.f32.mrf.mxu1  ;;  %v7562_v51 = vpop.f32.mrf.mxu0 }
 0x18a   :  { %10331 = vst [vmem:[#allocation45_spill] sm:$0xff] %v7562_v51 }
 0x18b   :  { %10330 = vst [vmem:[#allocation44_spill] sm:$0xff] %v7560_v14 }
 0x18c   :  { %6007 = vmatmul.msk.f32.gmra.mxu1 %vm170_vm1, %v46_v5  ;;  %6236 = vmatmul.msk.f32.gmra.mxu0 %vm170_vm1, %v2437_v55  ;;  %v47_v5 = vld [vmem:[%s10285_s0 + $0x108] sm:$0xff]  ;;  %v1710_v55 = vadd.f32 %v1507_v24, %v948_v22  ;;  %v951_v24 = vadd.f32 %v950_v34, %v7233_v32  ;;  %v1170_v34 = vld [vmem:[%s10285_s0 + $0x112] sm:$0xff] }
 0x18d   :  { %6084 = vmatmul.msk.f32.gmra.mxu2 %vm170_vm1, %v1167_v43  ;;  %6160 = vmatmul.msk.f32.gmra.mxu3 %vm170_vm1, %v1167_v43  ;;  %v2440_v32 = vld [vmem:[%s10285_s0 + $0x103] sm:$0xff] }
 0x190   :  { %v1510_v0 = vpop.f32.mrf.mxu2  ;;  %v2141_v33 = vpop.f32.mrf.mxu3 }
 0x191   :  { %v7578_v25 = vadd.f32 %v2141_v33, %v1709_v40  ;;  %v956_v11 = vpop.f32.mrf.mxu1  ;;  %v7580_v58 = vpop.f32.mrf.mxu0 }
 0x192   :  { %10332 = vst [vmem:[#allocation46_spill] sm:$0xff] %v7580_v58 }
 0x194   :  { %6008 = vmatmul.msk.f32.gmra.mxu1 %vm170_vm1, %v47_v5  ;;  %6237 = vmatmul.msk.f32.gmra.mxu0 %vm170_vm1, %v2438_v16  ;;  %v48_v5 = vld [vmem:[%s10285_s0 + $0x110] sm:$0xff]  ;;  %v1711_v16 = vadd.f32 %v1510_v0, %v951_v24  ;;  %v954_v0 = vadd.f32 %v953_v57, %v7254_v54  ;;  %v1171_v57 = vld [vmem:[%s10285_s0 + $0x11a] sm:$0xff] }
 0x195   :  { %6085 = vmatmul.msk.f32.gmra.mxu2 %vm170_vm1, %v1168_v20  ;;  %6161 = vmatmul.msk.f32.gmra.mxu3 %vm170_vm1, %v1168_v20  ;;  %v2441_v54 = vld [vmem:[%s10285_s0 + $0x10b] sm:$0xff] }
 0x198   :  { %v1513_v43 = vpop.f32.mrf.mxu2  ;;  %v2144_v7 = vpop.f32.mrf.mxu3 }
 0x199   :  { %v7596_v40 = vadd.f32 %v2144_v7, %v1710_v55  ;;  %v959_v33 = vpop.f32.mrf.mxu1  ;;  %v7598_v51 = vpop.f32.mrf.mxu0 }
 0x19a   :  { %10333 = vst [vmem:[#allocation47_spill] sm:$0xff] %v7598_v51 }
 0x19c   :  { %6009 = vmatmul.msk.f32.gmra.mxu1 %vm170_vm1, %v48_v5  ;;  %6238 = vmatmul.msk.f32.gmra.mxu0 %vm170_vm1, %v2439_v47  ;;  %v49_v5 = vld [vmem:[%s10285_s0 + $0x118] sm:$0xff]  ;;  %v1712_v47 = vadd.f32 %v1513_v43, %v954_v0  ;;  %v957_v43 = vadd.f32 %v956_v11, %v7275_v9  ;;  %v1172_v11 = vld [vmem:[%s10285_s0 + $0x122] sm:$0xff] }
 0x19d   :  { %6086 = vmatmul.msk.f32.gmra.mxu2 %vm170_vm1, %v1169_v62  ;;  %6162 = vmatmul.msk.f32.gmra.mxu3 %vm170_vm1, %v1169_v62  ;;  %v2442_v9 = vld [vmem:[%s10285_s0 + $0x113] sm:$0xff] }
 0x1a0   :  { %v1516_v20 = vpop.f32.mrf.mxu2  ;;  %v2147_v22 = vpop.f32.mrf.mxu3 }
 0x1a1   :  { %v7614_v55 = vadd.f32 %v2147_v22, %v1711_v16  ;;  %v962_v7 = vpop.f32.mrf.mxu1  ;;  %v7616_v1 = vpop.f32.mrf.mxu0 }
 0x1a4   :  { %6010 = vmatmul.msk.f32.gmra.mxu1 %vm170_vm1, %v49_v5  ;;  %6239 = vmatmul.msk.f32.gmra.mxu0 %vm170_vm1, %v2440_v32  ;;  %v50_v5 = vld [vmem:[%s10285_s0 + $0x120] sm:$0xff]  ;;  %v1713_v32 = vadd.f32 %v1516_v20, %v957_v43  ;;  %v960_v20 = vadd.f32 %v959_v33, %v7294_v50  ;;  %v1173_v33 = vld [vmem:[%s10285_s0 + $0x12a] sm:$0xff] }
 0x1a5   :  { %6087 = vmatmul.msk.f32.gmra.mxu2 %vm170_vm1, %v1170_v34  ;;  %6163 = vmatmul.msk.f32.gmra.mxu3 %vm170_vm1, %v1170_v34  ;;  %v2443_v50 = vld [vmem:[%s10285_s0 + $0x11b] sm:$0xff] }
 0x1a8   :  { %v1519_v62 = vpop.f32.mrf.mxu2  ;;  %v2150_v24 = vpop.f32.mrf.mxu3 }
 0x1a9   :  { %v7632_v16 = vadd.f32 %v2150_v24, %v1712_v47  ;;  %v965_v22 = vpop.f32.mrf.mxu1  ;;  %v7634_v58 = vpop.f32.mrf.mxu0 }
 0x1ac   :  { %6011 = vmatmul.msk.f32.gmra.mxu1 %vm170_vm1, %v50_v5  ;;  %6240 = vmatmul.msk.f32.gmra.mxu0 %vm170_vm1, %v2441_v54  ;;  %v51_v5 = vld [vmem:[%s10285_s0 + $0x128] sm:$0xff]  ;;  %v1714_v54 = vadd.f32 %v1519_v62, %v960_v20  ;;  %v963_v62 = vadd.f32 %v962_v7, %v7311_v28  ;;  %v1174_v7 = vld [vmem:[%s10285_s0 + $0x132] sm:$0xff] }
 0x1ad   :  { %6088 = vmatmul.msk.f32.gmra.mxu2 %vm170_vm1, %v1171_v57  ;;  %6164 = vmatmul.msk.f32.gmra.mxu3 %vm170_vm1, %v1171_v57  ;;  %v2444_v28 = vld [vmem:[%s10285_s0 + $0x123] sm:$0xff] }
 0x1b0   :  { %v1522_v34 = vpop.f32.mrf.mxu2  ;;  %v2153_v0 = vpop.f32.mrf.mxu3 }
 0x1b1   :  { %v7650_v47 = vadd.f32 %v2153_v0, %v1713_v32  ;;  %v968_v24 = vpop.f32.mrf.mxu1  ;;  %v7652_v14 = vpop.f32.mrf.mxu0 }
 0x1b4   :  { %6012 = vmatmul.msk.f32.gmra.mxu1 %vm170_vm1, %v51_v5  ;;  %6241 = vmatmul.msk.f32.gmra.mxu0 %vm170_vm1, %v2442_v9  ;;  %v52_v5 = vld [vmem:[%s10285_s0 + $0x130] sm:$0xff]  ;;  %v1715_v9 = vadd.f32 %v1522_v34, %v963_v62  ;;  %v966_v34 = vadd.f32 %v965_v22, %v7328_v61  ;;  %v1175_v22 = vld [vmem:[%s10285_s0 + $0x13a] sm:$0xff] }
 0x1b5   :  { %6089 = vmatmul.msk.f32.gmra.mxu2 %vm170_vm1, %v1172_v11  ;;  %6165 = vmatmul.msk.f32.gmra.mxu3 %vm170_vm1, %v1172_v11  ;;  %v2445_v61 = vld [vmem:[%s10285_s0 + $0x12b] sm:$0xff] }
 0x1b8   :  { %v1525_v57 = vpop.f32.mrf.mxu2  ;;  %v2156_v43 = vpop.f32.mrf.mxu3 }
 0x1b9   :  { %v7668_v32 = vadd.f32 %v2156_v43, %v1714_v54  ;;  %v971_v0 = vpop.f32.mrf.mxu1  ;;  %v7670_v51 = vpop.f32.mrf.mxu0 }
 0x1bb   :  { %10334 = vst [vmem:[#allocation48_spill] sm:$0xff] %v7668_v32 }
 0x1bc   :  { %6013 = vmatmul.msk.f32.gmra.mxu1 %vm170_vm1, %v52_v5  ;;  %6242 = vmatmul.msk.f32.gmra.mxu0 %vm170_vm1, %v2443_v50  ;;  %v53_v5 = vld [vmem:[%s10285_s0 + $0x138] sm:$0xff]  ;;  %v1716_v50 = vadd.f32 %v1525_v57, %v966_v34  ;;  %v969_v57 = vadd.f32 %v968_v24, %v7346_v53  ;;  %v1176_v24 = vld [vmem:[%s10285_s0 + $0x142] sm:$0xff] }
 0x1bd   :  { %6090 = vmatmul.msk.f32.gmra.mxu2 %vm170_vm1, %v1173_v33  ;;  %6166 = vmatmul.msk.f32.gmra.mxu3 %vm170_vm1, %v1173_v33  ;;  %v2446_v53 = vld [vmem:[%s10285_s0 + $0x133] sm:$0xff] }
 0x1c0   :  { %v1528_v11 = vpop.f32.mrf.mxu2  ;;  %v2159_v20 = vpop.f32.mrf.mxu3 }
 0x1c1   :  { %v7686_v54 = vadd.f32 %v2159_v20, %v1715_v9  ;;  %v974_v43 = vpop.f32.mrf.mxu1  ;;  %v7688_v32 = vpop.f32.mrf.mxu0 }
 0x1c3   :  { %10335 = vst [vmem:[#allocation49_spill] sm:$0xff] %v7686_v54 }
 0x1c4   :  { %6014 = vmatmul.msk.f32.gmra.mxu1 %vm170_vm1, %v53_v5  ;;  %6243 = vmatmul.msk.f32.gmra.mxu0 %vm170_vm1, %v2444_v28  ;;  %v54_v5 = vld [vmem:[%s10285_s0 + $0x140] sm:$0xff]  ;;  %v1717_v28 = vadd.f32 %v1528_v11, %v969_v57  ;;  %v972_v11 = vadd.f32 %v971_v0, %v6900_v4  ;;  %v1177_v0 = vld [vmem:[%s10285_s0 + $0x14a] sm:$0xff] }
 0x1c5   :  { %6091 = vmatmul.msk.f32.gmra.mxu2 %vm170_vm1, %v1174_v7  ;;  %6167 = vmatmul.msk.f32.gmra.mxu3 %vm170_vm1, %v1174_v7  ;;  %v2447_v4 = vld [vmem:[%s10285_s0 + $0x13b] sm:$0xff] }
 0x1c8   :  { %v1531_v33 = vpop.f32.mrf.mxu2  ;;  %v2162_v62 = vpop.f32.mrf.mxu3 }
 0x1c9   :  { %v7704_v9 = vadd.f32 %v2162_v62, %v1716_v50  ;;  %v977_v20 = vpop.f32.mrf.mxu1  ;;  %v7706_v54 = vpop.f32.mrf.mxu0 }
 0x1cb   :  { %10336 = vst [vmem:[#allocation50_spill] sm:$0xff] %v7704_v9 }
 0x1cc   :  { %6015 = vmatmul.msk.f32.gmra.mxu1 %vm170_vm1, %v54_v5  ;;  %6244 = vmatmul.msk.f32.gmra.mxu0 %vm170_vm1, %v2445_v61  ;;  %v55_v5 = vld [vmem:[%s10285_s0 + $0x148] sm:$0xff]  ;;  %v1718_v61 = vadd.f32 %v1531_v33, %v972_v11  ;;  %v975_v33 = vadd.f32 %v974_v43, %v6928_v13  ;;  %v1178_v43 = vld [vmem:[%s10285_s0 + $0x152] sm:$0xff] }
 0x1cd   :  { %6092 = vmatmul.msk.f32.gmra.mxu2 %vm170_vm1, %v1175_v22  ;;  %6168 = vmatmul.msk.f32.gmra.mxu3 %vm170_vm1, %v1175_v22  ;;  %v2448_v13 = vld [vmem:[%s10285_s0 + $0x143] sm:$0xff] }
 0x1d0   :  { %v1534_v7 = vpop.f32.mrf.mxu2  ;;  %v2165_v34 = vpop.f32.mrf.mxu3 }
 0x1d1   :  { %v7722_v50 = vadd.f32 %v2165_v34, %v1717_v28  ;;  %v980_v62 = vpop.f32.mrf.mxu1  ;;  %v7724_v9 = vpop.f32.mrf.mxu0 }
 0x1d3   :  { %10337 = vst [vmem:[#allocation51_spill] sm:$0xff] %v7722_v50 }
 0x1d4   :  { %6016 = vmatmul.msk.f32.gmra.mxu1 %vm170_vm1, %v55_v5  ;;  %6245 = vmatmul.msk.f32.gmra.mxu0 %vm170_vm1, %v2446_v53  ;;  %v56_v5 = vld [vmem:[%s10285_s0 + $0x150] sm:$0xff]  ;;  %v1719_v53 = vadd.f32 %v1534_v7, %v975_v33  ;;  %v978_v7 = vadd.f32 %v977_v20, %v6952_v21  ;;  %v1179_v20 = vld [vmem:[%s10285_s0 + $0x15a] sm:$0xff] }
 0x1d5   :  { %6093 = vmatmul.msk.f32.gmra.mxu2 %vm170_vm1, %v1176_v24  ;;  %6169 = vmatmul.msk.f32.gmra.mxu3 %vm170_vm1, %v1176_v24  ;;  %v2449_v21 = vld [vmem:[%s10285_s0 + $0x14b] sm:$0xff] }
 0x1d8   :  { %v1537_v22 = vpop.f32.mrf.mxu2  ;;  %v2168_v57 = vpop.f32.mrf.mxu3 }
 0x1d9   :  { %v7740_v28 = vadd.f32 %v2168_v57, %v1718_v61  ;;  %v983_v34 = vpop.f32.mrf.mxu1  ;;  %v7742_v50 = vpop.f32.mrf.mxu0 }
 0x1db   :  { %10338 = vst [vmem:[#allocation52_spill] sm:$0xff] %v7740_v28 }
 0x1dc   :  { %6017 = vmatmul.msk.f32.gmra.mxu1 %vm170_vm1, %v56_v5  ;;  %6246 = vmatmul.msk.f32.gmra.mxu0 %vm170_vm1, %v2447_v4  ;;  %v57_v5 = vld [vmem:[%s10285_s0 + $0x158] sm:$0xff]  ;;  %v1720_v4 = vadd.f32 %v1537_v22, %v978_v7  ;;  %v981_v22 = vadd.f32 %v980_v62, %v6980_v30  ;;  %v1180_v62 = vld [vmem:[%s10285_s0 + $0x162] sm:$0xff] }
 0x1dd   :  { %6094 = vmatmul.msk.f32.gmra.mxu2 %vm170_vm1, %v1177_v0  ;;  %6170 = vmatmul.msk.f32.gmra.mxu3 %vm170_vm1, %v1177_v0  ;;  %v2450_v30 = vld [vmem:[%s10285_s0 + $0x153] sm:$0xff] }
 0x1e0   :  { %v1540_v24 = vpop.f32.mrf.mxu2  ;;  %v2171_v11 = vpop.f32.mrf.mxu3 }
 0x1e1   :  { %v7758_v61 = vadd.f32 %v2171_v11, %v1719_v53  ;;  %v986_v57 = vpop.f32.mrf.mxu1  ;;  %v7760_v28 = vpop.f32.mrf.mxu0 }
 0x1e2   :  { %10340 = vst [vmem:[#allocation54_spill] sm:$0xff] %v7760_v28 }
 0x1e3   :  { %10339 = vst [vmem:[#allocation53_spill] sm:$0xff] %v7758_v61 }
 0x1e4   :  { %6018 = vmatmul.msk.f32.gmra.mxu1 %vm170_vm1, %v57_v5  ;;  %6247 = vmatmul.msk.f32.gmra.mxu0 %vm170_vm1, %v2448_v13  ;;  %v58_v5 = vld [vmem:[%s10285_s0 + $0x160] sm:$0xff]  ;;  %v1721_v13 = vadd.f32 %v1540_v24, %v981_v22  ;;  %v984_v24 = vadd.f32 %v983_v34, %v7004_v38  ;;  %v60_v38 = vld [vmem:[%s10285_s0 + $0x170] sm:$0xff] }
 0x1e5   :  { %6095 = vmatmul.msk.f32.gmra.mxu2 %vm170_vm1, %v1178_v43  ;;  %6171 = vmatmul.msk.f32.gmra.mxu3 %vm170_vm1, %v1178_v43  ;;  %v2451_v34 = vld [vmem:[%s10285_s0 + $0x15b] sm:$0xff] }
 0x1e8   :  { %v1543_v0 = vpop.f32.mrf.mxu2  ;;  %v2174_v33 = vpop.f32.mrf.mxu3 }
 0x1e9   :  { %v7776_v53 = vadd.f32 %v2174_v33, %v1720_v4  ;;  %v989_v11 = vpop.f32.mrf.mxu1  ;;  %v7778_v61 = vpop.f32.mrf.mxu0 }
 0x1ea   :  { %10342 = vst [vmem:[#allocation56_spill] sm:$0xff] %v7778_v61 }
 0x1eb   :  { %10341 = vst [vmem:[#allocation55_spill] sm:$0xff] %v7776_v53 }
 0x1ec   :  { %6019 = vmatmul.msk.f32.gmra.mxu1 %vm170_vm1, %v58_v5  ;;  %6248 = vmatmul.msk.f32.gmra.mxu0 %vm170_vm1, %v2449_v21  ;;  %v59_v5 = vld [vmem:[%s10285_s0 + $0x168] sm:$0xff]  ;;  %v3761_v21 = vld [vmem:[%s10284_s1 + $0x18] sm:$0xf] }
 0x1ed   :  { %6096 = vmatmul.msk.f32.gmra.mxu2 %vm170_vm1, %v1179_v20  ;;  %6172 = vmatmul.msk.f32.gmra.mxu3 %vm170_vm1, %v1179_v20  ;;  %v1722_v20 = vadd.f32 %v1543_v0, %v984_v24  ;;  %v1181_v0 = vld [vmem:[%s10285_s0 + $0x16a] sm:$0xff]  ;;  %v987_v24 = vadd.f32 %v986_v57, %v7025_v45  ;;  %v5035_v57 = vld [vmem:[%s10284_s1 + $0x20] sm:$0xf] }
 0x1ee   :  { %6364 = vmatpush.msk.msra.mxu2 %vm402_vm0, %v3761_v21  ;;  %v2452_v45 = vld [vmem:[%s10285_s0 + $0x163] sm:$0xff]  ;;  %6520 = vmatpush.msk.msra.mxu0 %vm402_vm0, %v5035_v57 }
 0x1f0   :  { %v1546_v43 = vpop.f32.mrf.mxu2  ;;  %v2177_v7 = vpop.f32.mrf.mxu3 }
 0x1f1   :  { %v7794_v4 = vadd.f32 %v2177_v7, %v1721_v13  ;;  %v992_v33 = vpop.f32.mrf.mxu1  ;;  %v7796_v61 = vpop.f32.mrf.mxu0  ;;  %v1723_v21 = vadd.f32 %v1546_v43, %v987_v24  ;;  %v1182_v43 = vld [vmem:[%s10285_s0 + $0x172] sm:$0xff] }
 0x1f2   :  { %10344 = vst [vmem:[#allocation58_spill] sm:$0xff] %v7796_v61 }
 0x1f3   :  { %10343 = vst [vmem:[#allocation57_spill] sm:$0xff] %v7794_v4 }
 0x1f4   :  { %6020 = vmatmul.msk.f32.gmra.mxu1 %vm170_vm1, %v59_v5  ;;  %6249 = vmatmul.msk.f32.gmra.mxu0 %vm170_vm1, %v2450_v30  ;;  %v4398_v30 = vld [vmem:[%s10284_s1 + $0x1c] sm:$0xf] }
 0x1f5   :  { %6097 = vmatmul.msk.f32.gmra.mxu2 %vm170_vm1, %v1180_v62  ;;  %6173 = vmatmul.msk.f32.gmra.mxu3 %vm170_vm1, %v1180_v62  ;;  %v3124_v62 = vld [vmem:[%s10284_s1 + $0x14] sm:$0xf] }
 0x1f6   :  { %6442 = vmatpush.msk.msra.mxu3 %vm402_vm0, %v4398_v30  ;;  %6286 = vmatpush.msk.msra.mxu1 %vm402_vm0, %v3124_v62 }
 0x1f8   :  { %v1549_v22 = vpop.f32.mrf.mxu2  ;;  %v2180_v13 = vpop.f32.mrf.mxu3 }
 0x1f9   :  { %v7816_v7 = vadd.f32 %v2180_v13, %v1722_v20  ;;  %v995_v5 = vpop.f32.mrf.mxu1  ;;  %v7818_v4 = vpop.f32.mrf.mxu0 }
 0x1fa   :  { %10346 = vst [vmem:[#allocation60_spill] sm:$0xff] %v7818_v4 }
 0x1fb   :  { %10345 = vst [vmem:[#allocation59_spill] sm:$0xff] %v7816_v7 }
 0x1fc   :  { %6021 = vmatmul.msk.f32.gmra.mxu1 %vm170_vm1, %v60_v38  ;;  %6250 = vmatmul.msk.f32.gmra.mxu0 %vm170_vm1, %v2451_v34  ;;  %v61_v38 = vld [vmem:[%s10285_s0 + $0x178] sm:$0xff]  ;;  %v990_v34 = vadd.f32 %v989_v11, %v7046_v52  ;;  %v2453_v52 = vld [vmem:[%s10285_s0 + $0x16b] sm:$0xff] }
 0x1fd   :  { %6098 = vmatmul.msk.f32.gmra.mxu2 %vm170_vm1, %v1181_v0  ;;  %6174 = vmatmul.msk.f32.gmra.mxu3 %vm170_vm1, %v1181_v0  ;;  %v1183_v11 = vld [vmem:[%s10285_s0 + $0x17a] sm:$0xff] }
 0x1fe   :  { %v1724_v0 = vadd.f32 %v1549_v22, %v990_v34  ;;  %v993_v22 = vadd.f32 %v992_v33, %v7067_v59  ;;  %v2454_v59 = vld [vmem:[%s10285_s0 + $0x173] sm:$0xff]  ;;  %v1184_v33 = vld [vmem:[%s10285_s0 + $0x182] sm:$0xff] }
 0x200   :  { %v1552_v20 = vpop.f32.mrf.mxu2  ;;  %v2183_v13 = vpop.f32.mrf.mxu3 }
 0x201   :  { %v7842_v30 = vadd.f32 %v2183_v13, %v1723_v21  ;;  %v998_v4 = vpop.f32.mrf.mxu1  ;;  %v7844_v7 = vpop.f32.mrf.mxu0 }
 0x202   :  { %10348 = vst [vmem:[#allocation62_spill] sm:$0xff] %v7844_v7 }
 0x203   :  { %10347 = vst [vmem:[#allocation61_spill] sm:$0xff] %v7842_v30 }
 0x204   :  { %6022 = vmatmul.msk.f32.gmra.mxu1 %vm170_vm1, %v61_v38  ;;  %6251 = vmatmul.msk.f32.gmra.mxu0 %vm170_vm1, %v2452_v45  ;;  %v62_v38 = vld [vmem:[%s10285_s0 + $0x180] sm:$0xff]  ;;  %v1725_v45 = vadd.f32 %v1552_v20, %v993_v22  ;;  %v996_v20 = vadd.f32 %v995_v5, %v7088_v2  ;;  %v1185_v5 = vld [vmem:[%s10285_s0 + $0x18a] sm:$0xff] }
 0x205   :  { %6099 = vmatmul.msk.f32.gmra.mxu2 %vm170_vm1, %v1182_v43  ;;  %6175 = vmatmul.msk.f32.gmra.mxu3 %vm170_vm1, %v1182_v43  ;;  %v2455_v2 = vld [vmem:[%s10285_s0 + $0x17b] sm:$0xff] }
 0x208   :  { %v1555_v62 = vpop.f32.mrf.mxu2  ;;  %v2186_v24 = vpop.f32.mrf.mxu3 }
 0x209   :  { %v7864_v21 = vadd.f32 %v2186_v24, %v1724_v0  ;;  %v1001_v13 = vpop.f32.mrf.mxu1  ;;  %v7866_v7 = vpop.f32.mrf.mxu0 }
 0x20a   :  { %10350 = vst [vmem:[#allocation64_spill] sm:$0xff] %v7866_v7 }
 0x20b   :  { %10349 = vst [vmem:[#allocation63_spill] sm:$0xff] %v7864_v21 }
 0x20c   :  { %6023 = vmatmul.msk.f32.gmra.mxu1 %vm170_vm1, %v62_v38  ;;  %6252 = vmatmul.msk.f32.gmra.mxu0 %vm170_vm1, %v2453_v52  ;;  %v63_v38 = vld [vmem:[%s10285_s0 + $0x188] sm:$0xff]  ;;  %v1726_v52 = vadd.f32 %v1555_v62, %v996_v20  ;;  %v999_v62 = vadd.f32 %v998_v4, %v7109_v15  ;;  %v1186_v4 = vld [vmem:[%s10285_s0 + $0x192] sm:$0xff] }
 0x20d   :  { %6100 = vmatmul.msk.f32.gmra.mxu2 %vm170_vm1, %v1183_v11  ;;  %6176 = vmatmul.msk.f32.gmra.mxu3 %vm170_vm1, %v1183_v11  ;;  %v2456_v15 = vld [vmem:[%s10285_s0 + $0x183] sm:$0xff] }
 0x210   :  { %v1558_v57 = vpop.f32.mrf.mxu2  ;;  %v2189_v43 = vpop.f32.mrf.mxu3 }
 0x211   :  { %v7882_v34 = vadd.f32 %v2189_v43, %v1725_v45  ;;  %v1004_v0 = vpop.f32.mrf.mxu1  ;;  %v7884_v24 = vpop.f32.mrf.mxu0 }
 0x212   :  { %10352 = vst [vmem:[#allocation66_spill] sm:$0xff] %v7884_v24 }
 0x213   :  { %10351 = vst [vmem:[#allocation65_spill] sm:$0xff] %v7882_v34 }
 0x214   :  { %6024 = vmatmul.msk.f32.gmra.mxu1 %vm170_vm1, %v63_v38  ;;  %6253 = vmatmul.msk.f32.gmra.mxu0 %vm170_vm1, %v2454_v59  ;;  %v64_v38 = vld [vmem:[%s10285_s0 + $0x190] sm:$0xff]  ;;  %v1727_v59 = vadd.f32 %v1558_v57, %v999_v62  ;;  %v1002_v57 = vadd.f32 %v1001_v13, %v7130_v26  ;;  %v1187_v13 = vld [vmem:[%s10285_s0 + $0x19a] sm:$0xff] }
 0x215   :  { %6101 = vmatmul.msk.f32.gmra.mxu2 %vm170_vm1, %v1184_v33  ;;  %6177 = vmatmul.msk.f32.gmra.mxu3 %vm170_vm1, %v1184_v33  ;;  %v2457_v26 = vld [vmem:[%s10285_s0 + $0x18b] sm:$0xff] }
 0x218   :  { %v1561_v11 = vpop.f32.mrf.mxu2  ;;  %v2192_v22 = vpop.f32.mrf.mxu3 }
 0x219   :  { %v7900_v45 = vadd.f32 %v2192_v22, %v1726_v52  ;;  %v1007_v43 = vpop.f32.mrf.mxu1  ;;  %v7902_v7 = vpop.f32.mrf.mxu0 }
 0x21a   :  { %10354 = vst [vmem:[#allocation68_spill] sm:$0xff] %v7902_v7 }
 0x21b   :  { %10353 = vst [vmem:[#allocation67_spill] sm:$0xff] %v7900_v45  ;;  %v4985_v45 = vld [vmem:[%s10285_s0 + $0xfe] sm:$0xff] }
 0x21c   :  { %6025 = vmatmul.msk.f32.gmra.mxu1 %vm170_vm1, %v64_v38  ;;  %6254 = vmatmul.msk.f32.gmra.mxu0 %vm170_vm1, %v2455_v2  ;;  %v65_v38 = vld [vmem:[%s10285_s0 + $0x198] sm:$0xff]  ;;  %v1728_v2 = vadd.f32 %v1561_v11, %v1002_v57  ;;  %v1005_v11 = vadd.f32 %v1004_v0, %v7151_v41  ;;  %v1188_v0 = vld [vmem:[%s10285_s0 + $0x1a2] sm:$0xff] }
 0x21d   :  { %6102 = vmatmul.msk.f32.gmra.mxu2 %vm170_vm1, %v1185_v5  ;;  %6178 = vmatmul.msk.f32.gmra.mxu3 %vm170_vm1, %v1185_v5  ;;  %v2458_v41 = vld [vmem:[%s10285_s0 + $0x193] sm:$0xff] }
 0x220   :  { %v1564_v33 = vpop.f32.mrf.mxu2  ;;  %v2195_v20 = vpop.f32.mrf.mxu3 }
 0x221   :  { %v7918_v52 = vadd.f32 %v2195_v20, %v1727_v59  ;;  %v1010_v22 = vpop.f32.mrf.mxu1  ;;  %v7920_v30 = vpop.f32.mrf.mxu0 }
 0x222   :  { %10356 = vst [vmem:[#allocation70_spill] sm:$0xff] %v7920_v30 }
 0x223   :  { %10355 = vst [vmem:[#allocation69_spill] sm:$0xff] %v7918_v52  ;;  %v4984_v52 = vld [vmem:[%s10285_s0 + $0xf6] sm:$0xff] }
 0x224   :  { %6026 = vmatmul.msk.f32.gmra.mxu1 %vm170_vm1, %v65_v38  ;;  %6255 = vmatmul.msk.f32.gmra.mxu0 %vm170_vm1, %v2456_v15  ;;  %v66_v38 = vld [vmem:[%s10285_s0 + $0x1a0] sm:$0xff]  ;;  %v1729_v15 = vadd.f32 %v1564_v33, %v1005_v11  ;;  %v1008_v33 = vadd.f32 %v1007_v43, %v7172_v60  ;;  %v1189_v43 = vld [vmem:[%s10285_s0 + $0x1aa] sm:$0xff] }
 0x225   :  { %6103 = vmatmul.msk.f32.gmra.mxu2 %vm170_vm1, %v1186_v4  ;;  %6179 = vmatmul.msk.f32.gmra.mxu3 %vm170_vm1, %v1186_v4  ;;  %v2459_v60 = vld [vmem:[%s10285_s0 + $0x19b] sm:$0xff] }
 0x228   :  { %v1567_v5 = vpop.f32.mrf.mxu2  ;;  %v2198_v62 = vpop.f32.mrf.mxu3 }
 0x229   :  { %v7936_v59 = vadd.f32 %v2198_v62, %v1728_v2  ;;  %v1013_v20 = vpop.f32.mrf.mxu1  ;;  %v7938_v24 = vpop.f32.mrf.mxu0 }
 0x22a   :  { %10358 = vst [vmem:[#allocation72_spill] sm:$0xff] %v7938_v24 }
 0x22b   :  { %10357 = vst [vmem:[#allocation71_spill] sm:$0xff] %v7936_v59  ;;  %v4986_v59 = vld [vmem:[%s10285_s0 + $0x106] sm:$0xff] }
 0x22c   :  { %6027 = vmatmul.msk.f32.gmra.mxu1 %vm170_vm1, %v66_v38  ;;  %6256 = vmatmul.msk.f32.gmra.mxu0 %vm170_vm1, %v2457_v26  ;;  %v67_v38 = vld [vmem:[%s10285_s0 + $0x1a8] sm:$0xff]  ;;  %v1730_v26 = vadd.f32 %v1567_v5, %v1008_v33  ;;  %v1011_v5 = vadd.f32 %v1010_v22, %v7193_v17  ;;  %v1190_v22 = vld [vmem:[%s10285_s0 + $0x1b2] sm:$0xff] }
 0x22d   :  { %6104 = vmatmul.msk.f32.gmra.mxu2 %vm170_vm1, %v1187_v13  ;;  %6180 = vmatmul.msk.f32.gmra.mxu3 %vm170_vm1, %v1187_v13  ;;  %v2460_v17 = vld [vmem:[%s10285_s0 + $0x1a3] sm:$0xff] }
 0x230   :  { %v1570_v4 = vpop.f32.mrf.mxu2  ;;  %v2201_v57 = vpop.f32.mrf.mxu3 }
 0x231   :  { %v7954_v2 = vadd.f32 %v2201_v57, %v1729_v15  ;;  %v1016_v62 = vpop.f32.mrf.mxu1  ;;  %v7956_v21 = vpop.f32.mrf.mxu0 }
 0x232   :  { %10360 = vst [vmem:[#allocation74_spill] sm:$0xff] %v7956_v21 }
 0x233   :  { %10359 = vst [vmem:[#allocation73_spill] sm:$0xff] %v7954_v2 }
 0x234   :  { %6028 = vmatmul.msk.f32.gmra.mxu1 %vm170_vm1, %v67_v38  ;;  %6257 = vmatmul.msk.f32.gmra.mxu0 %vm170_vm1, %v2458_v41  ;;  %v68_v38 = vld [vmem:[%s10285_s0 + $0x1b0] sm:$0xff]  ;;  %v1731_v41 = vadd.f32 %v1570_v4, %v1011_v5  ;;  %v1014_v4 = vadd.f32 %v1013_v20, %v7214_v48  ;;  %v1191_v20 = vld [vmem:[%s10285_s0 + $0x1ba] sm:$0xff] }
 0x235   :  { %6105 = vmatmul.msk.f32.gmra.mxu2 %vm170_vm1, %v1188_v0  ;;  %6181 = vmatmul.msk.f32.gmra.mxu3 %vm170_vm1, %v1188_v0  ;;  %v2461_v48 = vld [vmem:[%s10285_s0 + $0x1ab] sm:$0xff] }
 0x238   :  { %v1573_v13 = vpop.f32.mrf.mxu2  ;;  %v2204_v11 = vpop.f32.mrf.mxu3 }
 0x239   :  { %v7972_v15 = vadd.f32 %v2204_v11, %v1730_v26  ;;  %v1019_v57 = vpop.f32.mrf.mxu1  ;;  %v7974_v24 = vpop.f32.mrf.mxu0 }
 0x23a   :  { %10362 = vst [vmem:[#allocation76_spill] sm:$0xff] %v7974_v24 }
 0x23b   :  { %10361 = vst [vmem:[#allocation75_spill] sm:$0xff] %v7972_v15 }
 0x23c   :  { %6029 = vmatmul.msk.f32.gmra.mxu1 %vm170_vm1, %v68_v38  ;;  %6258 = vmatmul.msk.f32.gmra.mxu0 %vm170_vm1, %v2459_v60  ;;  %v69_v38 = vld [vmem:[%s10285_s0 + $0x1b8] sm:$0xff]  ;;  %v1732_v60 = vadd.f32 %v1573_v13, %v1014_v4  ;;  %v1017_v13 = vadd.f32 %v1016_v62, %v7235_v46  ;;  %v1192_v62 = vld [vmem:[%s10285_s0 + $0x1c2] sm:$0xff] }
 0x23d   :  { %6106 = vmatmul.msk.f32.gmra.mxu2 %vm170_vm1, %v1189_v43  ;;  %6182 = vmatmul.msk.f32.gmra.mxu3 %vm170_vm1, %v1189_v43  ;;  %v2462_v46 = vld [vmem:[%s10285_s0 + $0x1b3] sm:$0xff] }
 0x240   :  { %v1576_v0 = vpop.f32.mrf.mxu2  ;;  %v2207_v33 = vpop.f32.mrf.mxu3 }
 0x241   :  { %v7990_v26 = vadd.f32 %v2207_v33, %v1731_v41  ;;  %v1022_v11 = vpop.f32.mrf.mxu1  ;;  %v7992_v15 = vpop.f32.mrf.mxu0 }
 0x242   :  { %10364 = vst [vmem:[#allocation78_spill] sm:$0xff] %v7992_v15 }
 0x243   :  { %10363 = vst [vmem:[#allocation77_spill] sm:$0xff] %v7990_v26 }
 0x244   :  { %6030 = vmatmul.msk.f32.gmra.mxu1 %vm170_vm1, %v69_v38  ;;  %6259 = vmatmul.msk.f32.gmra.mxu0 %vm170_vm1, %v2460_v17  ;;  %v70_v38 = vld [vmem:[%s10285_s0 + $0x1c0] sm:$0xff]  ;;  %v1733_v17 = vadd.f32 %v1576_v0, %v1017_v13  ;;  %v1020_v0 = vadd.f32 %v1019_v57, %v7256_v39  ;;  %v1193_v57 = vld [vmem:[%s10285_s0 + $0x1ca] sm:$0xff] }
 0x245   :  { %6107 = vmatmul.msk.f32.gmra.mxu2 %vm170_vm1, %v1190_v22  ;;  %6183 = vmatmul.msk.f32.gmra.mxu3 %vm170_vm1, %v1190_v22  ;;  %v2463_v39 = vld [vmem:[%s10285_s0 + $0x1bb] sm:$0xff] }
 0x248   :  { %v1579_v43 = vpop.f32.mrf.mxu2  ;;  %v2210_v5 = vpop.f32.mrf.mxu3 }
 0x249   :  { %v8008_v41 = vadd.f32 %v2210_v5, %v1732_v60  ;;  %v1025_v33 = vpop.f32.mrf.mxu1  ;;  %v8010_v26 = vpop.f32.mrf.mxu0 }
 0x24a   :  { %10366 = vst [vmem:[#allocation80_spill] sm:$0xff] %v8010_v26 }
 0x24b   :  { %10365 = vst [vmem:[#allocation79_spill] sm:$0xff] %v8008_v41 }
 0x24c   :  { %6031 = vmatmul.msk.f32.gmra.mxu1 %vm170_vm1, %v70_v38  ;;  %6260 = vmatmul.msk.f32.gmra.mxu0 %vm170_vm1, %v2461_v48  ;;  %v71_v38 = vld [vmem:[%s10285_s0 + $0x1c8] sm:$0xff]  ;;  %v1734_v48 = vadd.f32 %v1579_v43, %v1020_v0  ;;  %v1023_v43 = vadd.f32 %v1022_v11, %v6922_v10  ;;  %v1194_v11 = vld [vmem:[%s10285_s0 + $0x1d2] sm:$0xff] }
 0x24d   :  { %6108 = vmatmul.msk.f32.gmra.mxu2 %vm170_vm1, %v1191_v20  ;;  %6184 = vmatmul.msk.f32.gmra.mxu3 %vm170_vm1, %v1191_v20  ;;  %v2464_v10 = vld [vmem:[%s10285_s0 + $0x1c3] sm:$0xff] }
 0x250   :  { %v1582_v22 = vpop.f32.mrf.mxu2  ;;  %v2213_v4 = vpop.f32.mrf.mxu3 }
 0x251   :  { %v8026_v60 = vadd.f32 %v2213_v4, %v1733_v17  ;;  %v1028_v5 = vpop.f32.mrf.mxu1  ;;  %v8028_v41 = vpop.f32.mrf.mxu0 }
 0x252   :  { %10368 = vst [vmem:[#allocation82_spill] sm:$0xff] %v8028_v41 }
 0x253   :  { %10367 = vst [vmem:[#allocation81_spill] sm:$0xff] %v8026_v60 }
 0x254   :  { %6032 = vmatmul.msk.f32.gmra.mxu1 %vm170_vm1, %v71_v38  ;;  %6261 = vmatmul.msk.f32.gmra.mxu0 %vm170_vm1, %v2462_v46  ;;  %v72_v38 = vld [vmem:[%s10285_s0 + $0x1d0] sm:$0xff]  ;;  %v1735_v46 = vadd.f32 %v1582_v22, %v1023_v43  ;;  %v1026_v22 = vadd.f32 %v1025_v33, %v6946_v18  ;;  %v1195_v33 = vld [vmem:[%s10285_s0 + $0x1da] sm:$0xff] }
 0x255   :  { %6109 = vmatmul.msk.f32.gmra.mxu2 %vm170_vm1, %v1192_v62  ;;  %6185 = vmatmul.msk.f32.gmra.mxu3 %vm170_vm1, %v1192_v62  ;;  %v2465_v18 = vld [vmem:[%s10285_s0 + $0x1cb] sm:$0xff] }
 0x258   :  { %v1585_v20 = vpop.f32.mrf.mxu2  ;;  %v2216_v13 = vpop.f32.mrf.mxu3 }
 0x259   :  { %v8044_v17 = vadd.f32 %v2216_v13, %v1734_v48  ;;  %v1031_v4 = vpop.f32.mrf.mxu1  ;;  %v8046_v60 = vpop.f32.mrf.mxu0 }
 0x25a   :  { %10370 = vst [vmem:[#allocation84_spill] sm:$0xff] %v8046_v60  ;;  %v4983_v60 = vld [vmem:[%s10285_s0 + $0xee] sm:$0xff] }
 0x25b   :  { %10369 = vst [vmem:[#allocation83_spill] sm:$0xff] %v8044_v17 }
 0x25c   :  { %6033 = vmatmul.msk.f32.gmra.mxu1 %vm170_vm1, %v72_v38  ;;  %6262 = vmatmul.msk.f32.gmra.mxu0 %vm170_vm1, %v2463_v39  ;;  %v73_v38 = vld [vmem:[%s10285_s0 + $0x1d8] sm:$0xff]  ;;  %v1736_v39 = vadd.f32 %v1585_v20, %v1026_v22  ;;  %v1029_v20 = vadd.f32 %v1028_v5, %v6974_v27  ;;  %v1196_v5 = vld [vmem:[%s10285_s0 + $0x1e2] sm:$0xff] }
 0x25d   :  { %6110 = vmatmul.msk.f32.gmra.mxu2 %vm170_vm1, %v1193_v57  ;;  %6186 = vmatmul.msk.f32.gmra.mxu3 %vm170_vm1, %v1193_v57  ;;  %v2466_v27 = vld [vmem:[%s10285_s0 + $0x1d3] sm:$0xff] }
 0x260   :  { %v1588_v62 = vpop.f32.mrf.mxu2  ;;  %v2219_v0 = vpop.f32.mrf.mxu3 }
 0x261   :  { %v8062_v48 = vadd.f32 %v2219_v0, %v1735_v46  ;;  %v1034_v13 = vpop.f32.mrf.mxu1  ;;  %v8064_v17 = vpop.f32.mrf.mxu0 }
 0x262   :  { %10372 = vst [vmem:[#allocation86_spill] sm:$0xff] %v8064_v17 }
 0x263   :  { %10371 = vst [vmem:[#allocation85_spill] sm:$0xff] %v8062_v48 }
 0x264   :  { %6034 = vmatmul.msk.f32.gmra.mxu1 %vm170_vm1, %v73_v38  ;;  %6263 = vmatmul.msk.f32.gmra.mxu0 %vm170_vm1, %v2464_v10  ;;  %v74_v38 = vld [vmem:[%s10285_s0 + $0x1e0] sm:$0xff]  ;;  %v1737_v10 = vadd.f32 %v1588_v62, %v1029_v20  ;;  %v1032_v62 = vadd.f32 %v1031_v4, %v6998_v35  ;;  %v1197_v4 = vld [vmem:[%s10285_s0 + $0x1ea] sm:$0xff] }
 0x265   :  { %6111 = vmatmul.msk.f32.gmra.mxu2 %vm170_vm1, %v1194_v11  ;;  %6187 = vmatmul.msk.f32.gmra.mxu3 %vm170_vm1, %v1194_v11  ;;  %v2467_v35 = vld [vmem:[%s10285_s0 + $0x1db] sm:$0xff] }
 0x268   :  { %v1591_v57 = vpop.f32.mrf.mxu2  ;;  %v2222_v43 = vpop.f32.mrf.mxu3 }
 0x269   :  { %v8080_v46 = vadd.f32 %v2222_v43, %v1736_v39  ;;  %v1037_v0 = vpop.f32.mrf.mxu1  ;;  %v8082_v48 = vpop.f32.mrf.mxu0 }
 0x26a   :  { %10374 = vst [vmem:[#allocation88_spill] sm:$0xff] %v8082_v48 }
 0x26b   :  { %10373 = vst [vmem:[#allocation87_spill] sm:$0xff] %v8080_v46 }
 0x26c   :  { %6035 = vmatmul.msk.f32.gmra.mxu1 %vm170_vm1, %v74_v38  ;;  %6264 = vmatmul.msk.f32.gmra.mxu0 %vm170_vm1, %v2465_v18  ;;  %v75_v38 = vld [vmem:[%s10285_s0 + $0x1e8] sm:$0xff]  ;;  %v1738_v18 = vadd.f32 %v1591_v57, %v1032_v62  ;;  %v1035_v57 = vadd.f32 %v1034_v13, %v7019_v42  ;;  %v1198_v13 = vld [vmem:[%s10285_s0 + $0x1f2] sm:$0xff] }
 0x26d   :  { %6112 = vmatmul.msk.f32.gmra.mxu2 %vm170_vm1, %v1195_v33  ;;  %6188 = vmatmul.msk.f32.gmra.mxu3 %vm170_vm1, %v1195_v33  ;;  %v2468_v42 = vld [vmem:[%s10285_s0 + $0x1e3] sm:$0xff] }
 0x270   :  { %v1594_v11 = vpop.f32.mrf.mxu2  ;;  %v2225_v22 = vpop.f32.mrf.mxu3 }
 0x271   :  { %v8098_v39 = vadd.f32 %v2225_v22, %v1737_v10  ;;  %v1040_v43 = vpop.f32.mrf.mxu1  ;;  %v8100_v46 = vpop.f32.mrf.mxu0 }
 0x272   :  { %10376 = vst [vmem:[#allocation90_spill] sm:$0xff] %v8100_v46 }
 0x273   :  { %10375 = vst [vmem:[#allocation89_spill] sm:$0xff] %v8098_v39 }
 0x274   :  { %6036 = vmatmul.msk.f32.gmra.mxu1 %vm170_vm1, %v75_v38  ;;  %6265 = vmatmul.msk.f32.gmra.mxu0 %vm170_vm1, %v2466_v27  ;;  %v76_v38 = vld [vmem:[%s10285_s0 + $0x1f0] sm:$0xff]  ;;  %v1739_v27 = vadd.f32 %v1594_v11, %v1035_v57  ;;  %v1038_v11 = vadd.f32 %v1037_v0, %v7040_v49  ;;  %v1199_v0 = vld [vmem:[%s10285_s0 + $0x1fa] sm:$0xff] }
 0x275   :  { %6113 = vmatmul.msk.f32.gmra.mxu2 %vm170_vm1, %v1196_v5  ;;  %6189 = vmatmul.msk.f32.gmra.mxu3 %vm170_vm1, %v1196_v5  ;;  %v2469_v49 = vld [vmem:[%s10285_s0 + $0x1eb] sm:$0xff] }
 0x278   :  { %v1597_v33 = vpop.f32.mrf.mxu2  ;;  %v2228_v20 = vpop.f32.mrf.mxu3 }
 0x279   :  { %v8116_v10 = vadd.f32 %v2228_v20, %v1738_v18  ;;  %v1043_v22 = vpop.f32.mrf.mxu1  ;;  %v8118_v39 = vpop.f32.mrf.mxu0 }
 0x27a   :  { %10378 = vst [vmem:[#allocation92_spill] sm:$0xff] %v8118_v39 }
 0x27b   :  { %10377 = vst [vmem:[#allocation91_spill] sm:$0xff] %v8116_v10 }
 0x27c   :  { %6037 = vmatmul.msk.f32.gmra.mxu1 %vm170_vm1, %v76_v38  ;;  %6266 = vmatmul.msk.f32.gmra.mxu0 %vm170_vm1, %v2467_v35  ;;  %v77_v38 = vld [vmem:[%s10285_s0 + $0x1f8] sm:$0xff]  ;;  %v1740_v35 = vadd.f32 %v1597_v33, %v1038_v11  ;;  %v1041_v33 = vadd.f32 %v1040_v43, %v7061_v56  ;;  %v1200_v43 = vld [vmem:[%s10285_s0 + $0x202] sm:$0xff] }
 0x27d   :  { %6114 = vmatmul.msk.f32.gmra.mxu2 %vm170_vm1, %v1197_v4  ;;  %6190 = vmatmul.msk.f32.gmra.mxu3 %vm170_vm1, %v1197_v4  ;;  %v2470_v56 = vld [vmem:[%s10285_s0 + $0x1f3] sm:$0xff] }
 0x280   :  { %v1600_v5 = vpop.f32.mrf.mxu2  ;;  %v2231_v62 = vpop.f32.mrf.mxu3 }
 0x281   :  { %v8134_v18 = vadd.f32 %v2231_v62, %v1739_v27  ;;  %v1046_v20 = vpop.f32.mrf.mxu1  ;;  %v8136_v39 = vpop.f32.mrf.mxu0 }
 0x282   :  { %10380 = vst [vmem:[#allocation94_spill] sm:$0xff] %v8136_v39 }
 0x283   :  { %10379 = vst [vmem:[#allocation93_spill] sm:$0xff] %v8134_v18 }
 0x284   :  { %6038 = vmatmul.msk.f32.gmra.mxu1 %vm170_vm1, %v77_v38  ;;  %6267 = vmatmul.msk.f32.gmra.mxu0 %vm170_vm1, %v2468_v42  ;;  %v78_v38 = vld [vmem:[%s10285_s0 + $0x200] sm:$0xff]  ;;  %v1741_v42 = vadd.f32 %v1600_v5, %v1041_v33  ;;  %v1044_v5 = vadd.f32 %v1043_v22, %v7082_v63  ;;  %v1201_v22 = vld [vmem:[%s10285_s0 + $0x20a] sm:$0xff] }
 0x285   :  { %6115 = vmatmul.msk.f32.gmra.mxu2 %vm170_vm1, %v1198_v13  ;;  %6191 = vmatmul.msk.f32.gmra.mxu3 %vm170_vm1, %v1198_v13  ;;  %v2471_v63 = vld [vmem:[%s10285_s0 + $0x1fb] sm:$0xff] }
 0x288   :  { %v1603_v4 = vpop.f32.mrf.mxu2  ;;  %v2234_v57 = vpop.f32.mrf.mxu3 }
 0x289   :  { %v8152_v27 = vadd.f32 %v2234_v57, %v1740_v35  ;;  %v1049_v62 = vpop.f32.mrf.mxu1  ;;  %v8154_v39 = vpop.f32.mrf.mxu0 }
 0x28a   :  { %10382 = vst [vmem:[#allocation96_spill] sm:$0xff] %v8154_v39 }
 0x28b   :  { %10381 = vst [vmem:[#allocation95_spill] sm:$0xff] %v8152_v27 }
 0x28c   :  { %6039 = vmatmul.msk.f32.gmra.mxu1 %vm170_vm1, %v78_v38  ;;  %6268 = vmatmul.msk.f32.gmra.mxu0 %vm170_vm1, %v2469_v49  ;;  %v79_v38 = vld [vmem:[%s10285_s0 + $0x208] sm:$0xff]  ;;  %v1742_v49 = vadd.f32 %v1603_v4, %v1044_v5  ;;  %v1047_v4 = vadd.f32 %v1046_v20, %v7103_v8  ;;  %v1202_v20 = vld [vmem:[%s10285_s0 + $0x212] sm:$0xff] }
 0x28d   :  { %6116 = vmatmul.msk.f32.gmra.mxu2 %vm170_vm1, %v1199_v0  ;;  %6192 = vmatmul.msk.f32.gmra.mxu3 %vm170_vm1, %v1199_v0  ;;  %v2472_v8 = vld [vmem:[%s10285_s0 + $0x203] sm:$0xff] }
 0x290   :  { %v1606_v13 = vpop.f32.mrf.mxu2  ;;  %v2237_v11 = vpop.f32.mrf.mxu3 }
 0x291   :  { %v8170_v35 = vadd.f32 %v2237_v11, %v1741_v42  ;;  %v1052_v57 = vpop.f32.mrf.mxu1  ;;  %v8172_v10 = vpop.f32.mrf.mxu0 }
 0x292   :  { %10384 = vst [vmem:[#allocation98_spill] sm:$0xff] %v8172_v10 }
 0x293   :  { %10383 = vst [vmem:[#allocation97_spill] sm:$0xff] %v8170_v35 }
 0x294   :  { %6040 = vmatmul.msk.f32.gmra.mxu1 %vm170_vm1, %v79_v38  ;;  %6269 = vmatmul.msk.f32.gmra.mxu0 %vm170_vm1, %v2470_v56  ;;  %v80_v38 = vld [vmem:[%s10285_s0 + $0x210] sm:$0xff]  ;;  %v1743_v56 = vadd.f32 %v1606_v13, %v1047_v4  ;;  %v1050_v13 = vadd.f32 %v1049_v62, %v7124_v23  ;;  %v1203_v62 = vld [vmem:[%s10285_s0 + $0x21a] sm:$0xff] }
 0x295   :  { %6117 = vmatmul.msk.f32.gmra.mxu2 %vm170_vm1, %v1200_v43  ;;  %6193 = vmatmul.msk.f32.gmra.mxu3 %vm170_vm1, %v1200_v43  ;;  %v2473_v23 = vld [vmem:[%s10285_s0 + $0x20b] sm:$0xff] }
 0x298   :  { %v1609_v0 = vpop.f32.mrf.mxu2  ;;  %v2240_v33 = vpop.f32.mrf.mxu3 }
 0x299   :  { %v8188_v42 = vadd.f32 %v2240_v33, %v1742_v49  ;;  %v1055_v11 = vpop.f32.mrf.mxu1  ;;  %v8190_v39 = vpop.f32.mrf.mxu0 }
 0x29a   :  { %10386 = vst [vmem:[#allocation100_spill] sm:$0xff] %v8190_v39 }
 0x29b   :  { %10385 = vst [vmem:[#allocation99_spill] sm:$0xff] %v8188_v42 }
 0x29c   :  { %6041 = vmatmul.msk.f32.gmra.mxu1 %vm170_vm1, %v80_v38  ;;  %6270 = vmatmul.msk.f32.gmra.mxu0 %vm170_vm1, %v2471_v63  ;;  %v81_v38 = vld [vmem:[%s10285_s0 + $0x218] sm:$0xff]  ;;  %v1744_v63 = vadd.f32 %v1609_v0, %v1050_v13  ;;  %v10391_v0 = vld [vmem:[#allocation12_spill] sm:$0xff] }
 0x29d   :  { %6118 = vmatmul.msk.f32.gmra.mxu2 %vm170_vm1, %v1201_v22  ;;  %6194 = vmatmul.msk.f32.gmra.mxu3 %vm170_vm1, %v1201_v22 }
 0x2a0   :  { %v1612_v43 = vpop.f32.mrf.mxu2  ;;  %v2243_v5 = vpop.f32.mrf.mxu3 }
 0x2a1   :  { %v8206_v49 = vadd.f32 %v2243_v5, %v1743_v56  ;;  %v1058_v33 = vpop.f32.mrf.mxu1  ;;  %v8208_v18 = vpop.f32.mrf.mxu0 }
 0x2a2   :  { %10388 = vst [vmem:[#allocation102_spill] sm:$0xff] %v8208_v18 }
 0x2a3   :  { %10387 = vst [vmem:[#allocation101_spill] sm:$0xff] %v8206_v49 }
 0x2a4   :  { %6042 = vmatmul.msk.f32.gmra.mxu1 %vm170_vm1, %v81_v38  ;;  %6271 = vmatmul.msk.f32.gmra.mxu0 %vm170_vm1, %v2472_v8  ;;  %v82_v38 = vld [vmem:[%s10285_s0 + $0x220] sm:$0xff]  ;;  %v1053_v8 = vadd.f32 %v1052_v57, %v10391_v0  ;;  %v2474_v57 = vld [vmem:[%s10285_s0 + $0x213] sm:$0xff] }
 0x2a5   :  { %6119 = vmatmul.msk.f32.gmra.mxu2 %vm170_vm1, %v1202_v20  ;;  %6195 = vmatmul.msk.f32.gmra.mxu3 %vm170_vm1, %v1202_v20 }
 0x2a6   :  { %v1745_v20 = vadd.f32 %v1612_v43, %v1053_v8  ;;  %v10394_v43 = vld [vmem:[#allocation14_spill] sm:$0xff] }
 0x2a8   :  { %v1615_v22 = vpop.f32.mrf.mxu2  ;;  %v2246_v4 = vpop.f32.mrf.mxu3 }
 0x2a9   :  { %v8224_v56 = vadd.f32 %v2246_v4, %v1744_v63  ;;  %v1061_v5 = vpop.f32.mrf.mxu1  ;;  %v8226_v10 = vpop.f32.mrf.mxu0 }
 0x2aa   :  { %10390 = vst [vmem:[#allocation104_spill] sm:$0xff] %v8226_v10 }
 0x2ab   :  { %10389 = vst [vmem:[#allocation103_spill] sm:$0xff] %v8224_v56  ;;  %v4982_v56 = vld [vmem:[%s10285_s0 + $0xe6] sm:$0xff] }
 0x2ac   :  { %6043 = vmatmul.msk.f32.gmra.mxu1 %vm170_vm1, %v82_v38  ;;  %6272 = vmatmul.msk.f32.gmra.mxu0 %vm170_vm1, %v2473_v23  ;;  %v83_v38 = vld [vmem:[%s10285_s0 + $0x228] sm:$0xff] }
 0x2ad   :  { %6120 = vmatmul.msk.f32.gmra.mxu2 %vm170_vm1, %v1203_v62  ;;  %6196 = vmatmul.msk.f32.gmra.mxu3 %vm170_vm1, %v1203_v62  ;;  %v1204_v23 = vld [vmem:[%s10285_s0 + $0x222] sm:$0xff]  ;;  %v1056_v62 = vadd.f32 %v1055_v11, %v10394_v43 }
 0x2ae   :  { %v2475_v11 = vld [vmem:[%s10285_s0 + $0x21b] sm:$0xff] }
 0x2af   :  { %v1746_v0 = vadd.f32 %v1615_v22, %v1056_v62  ;;  %v10397_v22 = vld [vmem:[#allocation16_spill] sm:$0xff] }
 0x2b0   :  { %v1618_v13 = vpop.f32.mrf.mxu2  ;;  %v2249_v63 = vpop.f32.mrf.mxu3 }
 0x2b1   :  { %v8242_v4 = vadd.f32 %v2249_v63, %v1745_v20  ;;  %v1064_v27 = vpop.f32.mrf.mxu1  ;;  %v8244_v10 = vpop.f32.mrf.mxu0 }
 0x2b2   :  { %10393 = vst [vmem:[#allocation105_spill] sm:$0xff] %v8244_v10 }
 0x2b3   :  { %10392 = vst [vmem:[#allocation12_spill] sm:$0xff] %v8242_v4 }
 0x2b4   :  { %6044 = vmatmul.msk.f32.gmra.mxu1 %vm170_vm1, %v83_v38  ;;  %6273 = vmatmul.msk.f32.gmra.mxu0 %vm170_vm1, %v2474_v57  ;;  %v84_v38 = vld [vmem:[%s10285_s0 + $0x230] sm:$0xff] }
 0x2b5   :  { %6121 = vmatmul.msk.f32.gmra.mxu2 %vm170_vm1, %v1204_v23  ;;  %6197 = vmatmul.msk.f32.gmra.mxu3 %vm170_vm1, %v1204_v23  ;;  %v1205_v57 = vld [vmem:[%s10285_s0 + $0x22a] sm:$0xff]  ;;  %v1059_v23 = vadd.f32 %v1058_v33, %v10397_v22 }
 0x2b6   :  { %v2476_v33 = vld [vmem:[%s10285_s0 + $0x223] sm:$0xff] }
 0x2b7   :  { %v1747_v43 = vadd.f32 %v1618_v13, %v1059_v23  ;;  %v10400_v13 = vld [vmem:[#allocation18_spill] sm:$0xff] }
 0x2b8   :  { %v1621_v8 = vpop.f32.mrf.mxu2  ;;  %v2252_v20 = vpop.f32.mrf.mxu3 }
 0x2b9   :  { %v8260_v63 = vadd.f32 %v2252_v20, %v1746_v0  ;;  %v1067_v49 = vpop.f32.mrf.mxu1  ;;  %v8262_v39 = vpop.f32.mrf.mxu0 }
 0x2ba   :  { %10396 = vst [vmem:[#allocation106_spill] sm:$0xff] %v8262_v39 }
 0x2bb   :  { %10395 = vst [vmem:[#allocation14_spill] sm:$0xff] %v8260_v63 }
 0x2bc   :  { %6045 = vmatmul.msk.f32.gmra.mxu1 %vm170_vm1, %v84_v38  ;;  %6274 = vmatmul.msk.f32.gmra.mxu0 %vm170_vm1, %v2475_v11  ;;  %v85_v38 = vld [vmem:[%s10285_s0 + $0x238] sm:$0xff] }
 0x2bd   :  { %6122 = vmatmul.msk.f32.gmra.mxu2 %vm170_vm1, %v1205_v57  ;;  %6198 = vmatmul.msk.f32.gmra.mxu3 %vm170_vm1, %v1205_v57  ;;  %v1206_v11 = vld [vmem:[%s10285_s0 + $0x232] sm:$0xff]  ;;  %v1062_v57 = vadd.f32 %v1061_v5, %v10400_v13 }
 0x2be   :  { %v2477_v5 = vld [vmem:[%s10285_s0 + $0x22b] sm:$0xff] }
 0x2bf   :  { %v1748_v22 = vadd.f32 %v1621_v8, %v1062_v57  ;;  %v10403_v8 = vld [vmem:[#allocation20_spill] sm:$0xff] }
 0x2c0   :  { %v1624_v62 = vpop.f32.mrf.mxu2  ;;  %v2255_v0 = vpop.f32.mrf.mxu3 }
 0x2c1   :  { %v8278_v20 = vadd.f32 %v2255_v0, %v1747_v43  ;;  %v1070_v63 = vpop.f32.mrf.mxu1  ;;  %v8280_v35 = vpop.f32.mrf.mxu0 }
 0x2c2   :  { %10399 = vst [vmem:[#allocation107_spill] sm:$0xff] %v8280_v35 }
 0x2c3   :  { %10398 = vst [vmem:[#allocation16_spill] sm:$0xff] %v8278_v20 }
 0x2c4   :  { %6046 = vmatmul.msk.f32.gmra.mxu1 %vm170_vm1, %v85_v38  ;;  %6275 = vmatmul.msk.f32.gmra.mxu0 %vm170_vm1, %v2476_v33  ;;  %v86_v38 = vld [vmem:[%s10285_s0 + $0x240] sm:$0xff] }
 0x2c5   :  { %6123 = vmatmul.msk.f32.gmra.mxu2 %vm170_vm1, %v1206_v11  ;;  %6199 = vmatmul.msk.f32.gmra.mxu3 %vm170_vm1, %v1206_v11  ;;  %v1207_v33 = vld [vmem:[%s10285_s0 + $0x23a] sm:$0xff]  ;;  %v1065_v11 = vadd.f32 %v1064_v27, %v10403_v8 }
 0x2c6   :  { %v2478_v27 = vld [vmem:[%s10285_s0 + $0x233] sm:$0xff] }
 0x2c7   :  { %v1749_v13 = vadd.f32 %v1624_v62, %v1065_v11  ;;  %v10406_v62 = vld [vmem:[#allocation22_spill] sm:$0xff] }
 0x2c8   :  { %v1627_v23 = vpop.f32.mrf.mxu2  ;;  %v2258_v43 = vpop.f32.mrf.mxu3 }
 0x2c9   :  { %v8296_v0 = vadd.f32 %v2258_v43, %v1748_v22  ;;  %v1073_v20 = vpop.f32.mrf.mxu1  ;;  %v8298_v35 = vpop.f32.mrf.mxu0 }
 0x2ca   :  { %10402 = vst [vmem:[#allocation108_spill] sm:$0xff] %v8298_v35 }
 0x2cb   :  { %10401 = vst [vmem:[#allocation18_spill] sm:$0xff] %v8296_v0 }
 0x2cc   :  { %6047 = vmatmul.msk.f32.gmra.mxu1 %vm170_vm1, %v86_v38  ;;  %6276 = vmatmul.msk.f32.gmra.mxu0 %vm170_vm1, %v2477_v5  ;;  %v87_v38 = vld [vmem:[%s10285_s0 + $0x248] sm:$0xff] }
 0x2cd   :  { %6124 = vmatmul.msk.f32.gmra.mxu2 %vm170_vm1, %v1207_v33  ;;  %6200 = vmatmul.msk.f32.gmra.mxu3 %vm170_vm1, %v1207_v33  ;;  %v1208_v5 = vld [vmem:[%s10285_s0 + $0x242] sm:$0xff]  ;;  %v1068_v33 = vadd.f32 %v1067_v49, %v10406_v62 }
 0x2ce   :  { %v2479_v49 = vld [vmem:[%s10285_s0 + $0x23b] sm:$0xff] }
 0x2cf   :  { %v1750_v8 = vadd.f32 %v1627_v23, %v1068_v33  ;;  %v10409_v23 = vld [vmem:[#allocation24_spill] sm:$0xff] }
 0x2d0   :  { %v1630_v57 = vpop.f32.mrf.mxu2  ;;  %v2261_v22 = vpop.f32.mrf.mxu3 }
 0x2d1   :  { %v8314_v43 = vadd.f32 %v2261_v22, %v1749_v13  ;;  %v1076_v0 = vpop.f32.mrf.mxu1  ;;  %v8316_v35 = vpop.f32.mrf.mxu0 }
 0x2d2   :  { %10405 = vst [vmem:[#allocation109_spill] sm:$0xff] %v8316_v35 }
 0x2d3   :  { %10404 = vst [vmem:[#allocation20_spill] sm:$0xff] %v8314_v43 }
 0x2d4   :  { %6048 = vmatmul.msk.f32.gmra.mxu1 %vm170_vm1, %v87_v38  ;;  %6277 = vmatmul.msk.f32.gmra.mxu0 %vm170_vm1, %v2478_v27  ;;  %v88_v38 = vld [vmem:[%s10285_s0 + $0x250] sm:$0xff] }
 0x2d5   :  { %6125 = vmatmul.msk.f32.gmra.mxu2 %vm170_vm1, %v1208_v5  ;;  %6201 = vmatmul.msk.f32.gmra.mxu3 %vm170_vm1, %v1208_v5  ;;  %v1209_v27 = vld [vmem:[%s10285_s0 + $0x24a] sm:$0xff]  ;;  %v1071_v5 = vadd.f32 %v1070_v63, %v10409_v23 }
 0x2d6   :  { %v2480_v63 = vld [vmem:[%s10285_s0 + $0x243] sm:$0xff] }
 0x2d7   :  { %v1751_v62 = vadd.f32 %v1630_v57, %v1071_v5  ;;  %v10412_v57 = vld [vmem:[#allocation26_spill] sm:$0xff] }
 0x2d8   :  { %v1633_v11 = vpop.f32.mrf.mxu2  ;;  %v2264_v13 = vpop.f32.mrf.mxu3 }
 0x2d9   :  { %v8332_v22 = vadd.f32 %v2264_v13, %v1750_v8  ;;  %v1079_v43 = vpop.f32.mrf.mxu1  ;;  %v8334_v35 = vpop.f32.mrf.mxu0 }
 0x2da   :  { %10408 = vst [vmem:[#allocation110_spill] sm:$0xff] %v8334_v35 }
 0x2db   :  { %10407 = vst [vmem:[#allocation22_spill] sm:$0xff] %v8332_v22 }
 0x2dc   :  { %6049 = vmatmul.msk.f32.gmra.mxu1 %vm170_vm1, %v88_v38  ;;  %6278 = vmatmul.msk.f32.gmra.mxu0 %vm170_vm1, %v2479_v49  ;;  %v89_v38 = vld [vmem:[%s10285_s0 + $0x258] sm:$0xff] }
 0x2dd   :  { %6126 = vmatmul.msk.f32.gmra.mxu2 %vm170_vm1, %v1209_v27  ;;  %6202 = vmatmul.msk.f32.gmra.mxu3 %vm170_vm1, %v1209_v27  ;;  %v1210_v49 = vld [vmem:[%s10285_s0 + $0x252] sm:$0xff]  ;;  %v1074_v27 = vadd.f32 %v1073_v20, %v10412_v57 }
 0x2de   :  { %v2481_v20 = vld [vmem:[%s10285_s0 + $0x24b] sm:$0xff] }
 0x2df   :  { %v1752_v23 = vadd.f32 %v1633_v11, %v1074_v27  ;;  %v10415_v11 = vld [vmem:[#allocation2_spill] sm:$0xff] }
 0x2e0   :  { %v1636_v33 = vpop.f32.mrf.mxu2  ;;  %v2267_v8 = vpop.f32.mrf.mxu3 }
 0x2e1   :  { %v8350_v13 = vadd.f32 %v2267_v8, %v1751_v62  ;;  %v1082_v22 = vpop.f32.mrf.mxu1  ;;  %v8352_v35 = vpop.f32.mrf.mxu0 }
 0x2e2   :  { %10411 = vst [vmem:[#allocation111_spill] sm:$0xff] %v8352_v35 }
 0x2e3   :  { %10410 = vst [vmem:[#allocation24_spill] sm:$0xff] %v8350_v13 }
 0x2e4   :  { %6050 = vmatmul.msk.f32.gmra.mxu1 %vm170_vm1, %v89_v38  ;;  %6279 = vmatmul.msk.f32.gmra.mxu0 %vm170_vm1, %v2480_v63  ;;  %v90_v38 = vld [vmem:[%s10285_s0 + $0x260] sm:$0x3] }
 0x2e5   :  { %6127 = vmatmul.msk.f32.gmra.mxu2 %vm170_vm1, %v1210_v49  ;;  %6203 = vmatmul.msk.f32.gmra.mxu3 %vm170_vm1, %v1210_v49  ;;  %v1211_v63 = vld [vmem:[%s10285_s0 + $0x25a] sm:$0xff]  ;;  %v1077_v49 = vadd.f32 %v1076_v0, %v10415_v11 }
 0x2e6   :  { %v3047_v0 = vld [vmem:[%s10285_s0 + $0x14] sm:$0xff] }
 0x2e7   :  { %v1753_v57 = vadd.f32 %v1636_v33, %v1077_v49  ;;  %v1847_v33 = vld [vmem:[%s10285_s0 + $0x262] sm:$0xff] }
 0x2e8   :  { %v1639_v5 = vpop.f32.mrf.mxu2  ;;  %v2270_v62 = vpop.f32.mrf.mxu3 }
 0x2e9   :  { %v8368_v8 = vadd.f32 %v2270_v62, %v1752_v23  ;;  %v1085_v35 = vpop.f32.mrf.mxu1  ;;  %v8370_v13 = vpop.f32.mrf.mxu0 }
 0x2ea   :  { %10414 = vst [vmem:[#allocation112_spill] sm:$0xff] %v8370_v13 }
 0x2eb   :  { %10413 = vst [vmem:[#allocation26_spill] sm:$0xff] %v8368_v8 }
 0x2ec   :  { %6051 = vmatmul.msk.f32.gmra.mxu1 %vm170_vm1, %v90_v38  ;;  %6280 = vmatmul.msk.f32.gmra.mxu0 %vm170_vm1, %v2481_v20  ;;  %v2482_v38 = vld [vmem:[%s10285_s0 + $0x253] sm:$0xff]  ;;  %v1212_v20 = vld [vmem:[%s10285_s0 + $0x262] sm:$0x3] }
 0x2ed   :  { %6128 = vmatmul.msk.f32.gmra.mxu2 %vm170_vm1, %v1211_v63  ;;  %6204 = vmatmul.msk.f32.gmra.mxu3 %vm170_vm1, %v1211_v63  ;;  %v10418_v63 = vld [vmem:[#allocation3_spill] sm:$0xff] }
 0x2ee   :  { %v1080_v11 = vadd.f32 %v1079_v43, %v10418_v63  ;;  %v3048_v43 = vld [vmem:[%s10285_s0 + $0x1c] sm:$0xff] }
 0x2f0   :  { %v1642_v27 = vpop.f32.mrf.mxu2  ;;  %v2273_v23 = vpop.f32.mrf.mxu3  ;;  %v1754_v49 = vadd.f32 %v1639_v5, %v1080_v11  ;;  %v3684_v5 = vld [vmem:[%s10285_s0 + $0x24] sm:$0xff] }
 0x2f1   :  { %v8386_v62 = vadd.f32 %v2273_v23, %v1753_v57  ;;  %v1088_v8 = vpop.f32.mrf.mxu1  ;;  %v8388_v13 = vpop.f32.mrf.mxu0 }
 0x2f2   :  { %10417 = vst [vmem:[#allocation113_spill] sm:$0xff] %v8388_v13 }
 0x2f3   :  { %10416 = vst [vmem:[#allocation2_spill] sm:$0xff] %v8386_v62 }
 0x2f4   :  { %6281 = vmatmul.msk.f32.gmra.mxu0 %vm170_vm1, %v2482_v38  ;;  %6287 = vmatmul.msk.f32.vlgmr.msra.gmra.mxu1 %vm170_vm1, %v3047_v0  ;;  %v2483_v38 = vld [vmem:[%s10285_s0 + $0x25b] sm:$0xff]  ;;  %v1848_v0 = vld [vmem:[%s10285_s0 + $0x26a] sm:$0xff] }
 0x2f5   :  { %6129 = vmatmul.msk.f32.gmra.mxu2 %vm170_vm1, %v1212_v20  ;;  %6205 = vmatmul.msk.f32.gmra.mxu3 %vm170_vm1, %v1847_v33  ;;  %v10421_v20 = vld [vmem:[#allocation4_spill] sm:$0xff] }
 0x2f6   :  { %v1083_v33 = vadd.f32 %v1082_v22, %v10421_v20  ;;  %v1849_v22 = vld [vmem:[%s10285_s0 + $0x272] sm:$0x3] }
 0x2f8   :  { %v1645_v57 = vpop.f32.mrf.mxu2  ;;  %v2276_v23 = vpop.f32.mrf.mxu3  ;;  %v1755_v63 = vadd.f32 %v1642_v27, %v1083_v33  ;;  %v10424_v27 = vld [vmem:[#allocation5_spill] sm:$0xff] }
 0x2f9   :  { %v8407_v62 = vadd.f32 %v2276_v23, %v1754_v49  ;;  %v1091_v13 = vpop.f32.mrf.mxu1  ;;  %v8409_v18 = vpop.f32.mrf.mxu0 }
 0x2fa   :  { %10420 = vst [vmem:[#allocation114_spill] sm:$0xff] %v8409_v18 }
 0x2fb   :  { %10419 = vst [vmem:[#allocation3_spill] sm:$0xff] %v8407_v62 }
 0x2fc   :  { %6282 = vmatmul.msk.f32.gmra.mxu0 %vm170_vm1, %v2483_v38  ;;  %6288 = vmatmul.msk.f32.gmra.mxu1 %vm170_vm1, %v3048_v43  ;;  %v2484_v38 = vld [vmem:[%s10285_s0 + $0x263] sm:$0xff]  ;;  %v3685_v43 = vld [vmem:[%s10285_s0 + $0x2c] sm:$0xff] }
 0x2fd   :  { %6206 = vmatmul.msk.f32.gmra.mxu3 %vm170_vm1, %v1848_v0  ;;  %6365 = vmatmul.msk.f32.vlgmr.msra.gmra.mxu2 %vm170_vm1, %v3684_v5  ;;  %v1086_v0 = vadd.f32 %v1085_v35, %v10424_v27  ;;  %v3686_v35 = vld [vmem:[%s10285_s0 + $0x34] sm:$0xff] }
 0x2ff   :  { %v1756_v20 = vadd.f32 %v1645_v57, %v1086_v0  ;;  %v10427_v57 = vld [vmem:[#allocation6_spill] sm:$0xff] }
 0x300   :  { %v1648_v11 = vpop.f32.mrf.mxu2  ;;  %v2279_v49 = vpop.f32.mrf.mxu3 }
 0x301   :  { %v8428_v23 = vadd.f32 %v2279_v49, %v1755_v63  ;;  %v1094_v62 = vpop.f32.mrf.mxu1  ;;  %v8430_v18 = vpop.f32.mrf.mxu0 }
 0x302   :  { %10423 = vst [vmem:[#allocation115_spill] sm:$0xff] %v8430_v18 }
 0x303   :  { %10422 = vst [vmem:[#allocation4_spill] sm:$0xff] %v8428_v23 }
 0x304   :  { %6283 = vmatmul.msk.f32.gmra.mxu0 %vm170_vm1, %v2484_v38  ;;  %6289 = vmatmul.msk.f32.gmra.mxu1 %vm170_vm1, %v3684_v5  ;;  %v2485_v38 = vld [vmem:[%s10285_s0 + $0x26b] sm:$0xff] }
 0x305   :  { %6207 = vmatmul.msk.f32.gmra.mxu3 %vm170_vm1, %v1849_v22  ;;  %6366 = vmatmul.msk.f32.gmra.mxu2 %vm170_vm1, %v3685_v43  ;;  %v4321_v5 = vld [vmem:[%s10285_s0 + $0x25] sm:$0xff]  ;;  %v1089_v22 = vadd.f32 %v1088_v8, %v10427_v57  ;;  %v3687_v8 = vld [vmem:[%s10285_s0 + $0x3c] sm:$0xff] }
 0x307   :  { %v1757_v27 = vadd.f32 %v1648_v11, %v1089_v22  ;;  %v10430_v11 = vld [vmem:[#allocation7_spill] sm:$0xff] }
 0x308   :  { %v1651_v33 = vpop.f32.mrf.mxu2  ;;  %v2282_v63 = vpop.f32.mrf.mxu3 }
 0x309   :  { %v8446_v49 = vadd.f32 %v2282_v63, %v1756_v20  ;;  %v1097_v18 = vpop.f32.mrf.mxu1  ;;  %v8448_v23 = vpop.f32.mrf.mxu0 }
 0x30a   :  { %10426 = vst [vmem:[#allocation116_spill] sm:$0xff] %v8448_v23 }
 0x30b   :  { %10425 = vst [vmem:[#allocation5_spill] sm:$0xff] %v8446_v49 }
 0x30c   :  { %6284 = vmatmul.msk.f32.gmra.mxu0 %vm170_vm1, %v2485_v38  ;;  %6290 = vmatmul.msk.f32.gmra.mxu1 %vm170_vm1, %v3685_v43  ;;  %v2486_v38 = vld [vmem:[%s10285_s0 + $0x273] sm:$0x3] }
 0x30d   :  { %6367 = vmatmul.msk.f32.gmra.mxu2 %vm170_vm1, %v3686_v35  ;;  %6443 = vmatmul.msk.f32.vlgmr.msra.gmra.mxu3 %vm170_vm1, %v4321_v5  ;;  %v4322_v43 = vld [vmem:[%s10285_s0 + $0x2d] sm:$0xff]  ;;  %v1092_v5 = vadd.f32 %v1091_v13, %v10430_v11  ;;  %v3688_v13 = vld [vmem:[%s10285_s0 + $0x44] sm:$0xff] }
 0x30f   :  { %v1758_v57 = vadd.f32 %v1651_v33, %v1092_v5  ;;  %v10433_v33 = vld [vmem:[#allocation8_spill] sm:$0xff] }
 0x310   :  { %v1654_v0 = vpop.f32.mrf.mxu2  ;;  %v2285_v20 = vpop.f32.mrf.mxu3 }
 0x311   :  { %v8464_v63 = vadd.f32 %v2285_v20, %v1757_v27  ;;  %v1100_v23 = vpop.f32.mrf.mxu1  ;;  %v8466_v49 = vpop.f32.mrf.mxu0 }
 0x312   :  { %10429 = vst [vmem:[#allocation117_spill] sm:$0xff] %v8466_v49 }
 0x313   :  { %10428 = vst [vmem:[#allocation6_spill] sm:$0xff] %v8464_v63 }
 0x314   :  { %6285 = vmatmul.msk.f32.gmra.mxu0 %vm170_vm1, %v2486_v38  ;;  %6291 = vmatmul.msk.f32.gmra.mxu1 %vm170_vm1, %v3686_v35  ;;  %v4958_v38 = vld [vmem:[%s10285_s0 + $0x26] sm:$0xff]  ;;  %v4323_v35 = vld [vmem:[%s10285_s0 + $0x35] sm:$0xff] }
 0x315   :  { %6368 = vmatmul.msk.f32.gmra.mxu2 %vm170_vm1, %v3687_v8  ;;  %6444 = vmatmul.msk.f32.gmra.mxu3 %vm170_vm1, %v4322_v43  ;;  %v1095_v43 = vadd.f32 %v1094_v62, %v10433_v33  ;;  %v3689_v62 = vld [vmem:[%s10285_s0 + $0x4c] sm:$0xff] }
 0x317   :  { %v1759_v11 = vadd.f32 %v1654_v0, %v1095_v43  ;;  %v10436_v0 = vld [vmem:[#allocation9_spill] sm:$0xff] }
 0x318   :  { %v1657_v22 = vpop.f32.mrf.mxu2  ;;  %v2288_v27 = vpop.f32.mrf.mxu3 }
 0x319   :  { %v8482_v20 = vadd.f32 %v2288_v27, %v1758_v57  ;;  %v1103_v49 = vpop.f32.mrf.mxu1  ;;  %v8484_v63 = vpop.f32.mrf.mxu0 }
 0x31a   :  { %10432 = vst [vmem:[#allocation118_spill] sm:$0xff] %v8484_v63 }
 0x31b   :  { %10431 = vst [vmem:[#allocation7_spill] sm:$0xff] %v8482_v20 }
 0x31c   :  { %6292 = vmatmul.msk.f32.gmra.mxu1 %vm170_vm1, %v3687_v8  ;;  %6521 = vmatmul.msk.f32.vlgmr.msra.gmra.mxu0 %vm170_vm1, %v4958_v38  ;;  %v4959_v8 = vld [vmem:[%s10285_s0 + $0x2e] sm:$0xff]  ;;  %v4324_v38 = vld [vmem:[%s10285_s0 + $0x3d] sm:$0xff] }
 0x31d   :  { %6369 = vmatmul.msk.f32.gmra.mxu2 %vm170_vm1, %v3688_v13  ;;  %6445 = vmatmul.msk.f32.gmra.mxu3 %vm170_vm1, %v4323_v35  ;;  %v1098_v35 = vadd.f32 %v1097_v18, %v10436_v0  ;;  %v3690_v18 = vld [vmem:[%s10285_s0 + $0x54] sm:$0xff] }
 0x31f   :  { %v1760_v33 = vadd.f32 %v1657_v22, %v1098_v35  ;;  %v10439_v22 = vld [vmem:[#allocation10_spill] sm:$0xff] }
 0x320   :  { %v1660_v5 = vpop.f32.mrf.mxu2  ;;  %v2291_v57 = vpop.f32.mrf.mxu3 }
 0x321   :  { %v8500_v27 = vadd.f32 %v2291_v57, %v1759_v11  ;;  %v1106_v63 = vpop.f32.mrf.mxu1  ;;  %v8502_v20 = vpop.f32.mrf.mxu0 }
 0x322   :  { %10435 = vst [vmem:[#allocation119_spill] sm:$0xff] %v8502_v20 }
 0x323   :  { %10434 = vst [vmem:[#allocation8_spill] sm:$0xff] %v8500_v27 }
 0x324   :  { %6293 = vmatmul.msk.f32.gmra.mxu1 %vm170_vm1, %v3688_v13  ;;  %6522 = vmatmul.msk.f32.gmra.mxu0 %vm170_vm1, %v4959_v8  ;;  %v4960_v13 = vld [vmem:[%s10285_s0 + $0x36] sm:$0xff]  ;;  %v4325_v8 = vld [vmem:[%s10285_s0 + $0x45] sm:$0xff] }
 0x325   :  { %6370 = vmatmul.msk.f32.gmra.mxu2 %vm170_vm1, %v3689_v62  ;;  %6446 = vmatmul.msk.f32.gmra.mxu3 %vm170_vm1, %v4324_v38  ;;  %v1101_v38 = vadd.f32 %v1100_v23, %v10439_v22  ;;  %v3691_v23 = vld [vmem:[%s10285_s0 + $0x5c] sm:$0xff] }
 0x327   :  { %v1761_v0 = vadd.f32 %v1660_v5, %v1101_v38  ;;  %v10442_v5 = vld [vmem:[#allocation11_spill] sm:$0xff] }
 0x328   :  { %v1663_v43 = vpop.f32.mrf.mxu2  ;;  %v2294_v11 = vpop.f32.mrf.mxu3 }
 0x329   :  { %v8518_v57 = vadd.f32 %v2294_v11, %v1760_v33  ;;  %v1109_v27 = vpop.f32.mrf.mxu1  ;;  %v8520_v20 = vpop.f32.mrf.mxu0 }
 0x32a   :  { %10438 = vst [vmem:[#allocation120_spill] sm:$0xff] %v8520_v20 }
 0x32b   :  { %10437 = vst [vmem:[#allocation9_spill] sm:$0xff] %v8518_v57 }
 0x32c   :  { %6294 = vmatmul.msk.f32.gmra.mxu1 %vm170_vm1, %v3689_v62  ;;  %6523 = vmatmul.msk.f32.gmra.mxu0 %vm170_vm1, %v4960_v13  ;;  %v4961_v62 = vld [vmem:[%s10285_s0 + $0x3e] sm:$0xff]  ;;  %v4326_v13 = vld [vmem:[%s10285_s0 + $0x4d] sm:$0xff] }
 0x32d   :  { %6371 = vmatmul.msk.f32.gmra.mxu2 %vm170_vm1, %v3690_v18  ;;  %6447 = vmatmul.msk.f32.gmra.mxu3 %vm170_vm1, %v4325_v8  ;;  %v1104_v8 = vadd.f32 %v1103_v49, %v10442_v5  ;;  %v3692_v49 = vld [vmem:[%s10285_s0 + $0x64] sm:$0xff] }
 0x32f   :  { %v1762_v22 = vadd.f32 %v1663_v43, %v1104_v8  ;;  %v10445_v43 = vld [vmem:[#allocation13_spill] sm:$0xff] }
 0x330   :  { %v1666_v35 = vpop.f32.mrf.mxu2  ;;  %v2297_v33 = vpop.f32.mrf.mxu3 }
 0x331   :  { %v8536_v11 = vadd.f32 %v2297_v33, %v1761_v0  ;;  %v1112_v20 = vpop.f32.mrf.mxu1  ;;  %v8538_v57 = vpop.f32.mrf.mxu0 }
 0x332   :  { %10441 = vst [vmem:[#allocation121_spill] sm:$0xff] %v8538_v57 }
 0x333   :  { %10440 = vst [vmem:[#allocation10_spill] sm:$0xff] %v8536_v11 }
 0x334   :  { %6295 = vmatmul.msk.f32.gmra.mxu1 %vm170_vm1, %v3690_v18  ;;  %6524 = vmatmul.msk.f32.gmra.mxu0 %vm170_vm1, %v4961_v62  ;;  %v4962_v18 = vld [vmem:[%s10285_s0 + $0x46] sm:$0xff]  ;;  %v4327_v62 = vld [vmem:[%s10285_s0 + $0x55] sm:$0xff] }
 0x335   :  { %6372 = vmatmul.msk.f32.gmra.mxu2 %vm170_vm1, %v3691_v23  ;;  %6448 = vmatmul.msk.f32.gmra.mxu3 %vm170_vm1, %v4326_v13  ;;  %v1107_v13 = vadd.f32 %v1106_v63, %v10445_v43  ;;  %v3693_v63 = vld [vmem:[%s10285_s0 + $0x6c] sm:$0xff] }
 0x337   :  { %v1763_v5 = vadd.f32 %v1666_v35, %v1107_v13  ;;  %v10448_v35 = vld [vmem:[#allocation15_spill] sm:$0xff] }
 0x338   :  { %v1669_v38 = vpop.f32.mrf.mxu2  ;;  %v2300_v0 = vpop.f32.mrf.mxu3 }
 0x339   :  { %v8554_v33 = vadd.f32 %v2300_v0, %v1762_v22  ;;  %v1115_v11 = vpop.f32.mrf.mxu1  ;;  %v8556_v57 = vpop.f32.mrf.mxu0 }
 0x33a   :  { %10444 = vst [vmem:[#allocation122_spill] sm:$0xff] %v8556_v57 }
 0x33b   :  { %10443 = vst [vmem:[#allocation11_spill] sm:$0xff] %v8554_v33 }
 0x33c   :  { %6296 = vmatmul.msk.f32.gmra.mxu1 %vm170_vm1, %v3691_v23  ;;  %6525 = vmatmul.msk.f32.gmra.mxu0 %vm170_vm1, %v4962_v18  ;;  %v4963_v23 = vld [vmem:[%s10285_s0 + $0x4e] sm:$0xff]  ;;  %v4328_v18 = vld [vmem:[%s10285_s0 + $0x5d] sm:$0xff] }
 0x33d   :  { %6373 = vmatmul.msk.f32.gmra.mxu2 %vm170_vm1, %v3692_v49  ;;  %6449 = vmatmul.msk.f32.gmra.mxu3 %vm170_vm1, %v4327_v62  ;;  %v1110_v62 = vadd.f32 %v1109_v27, %v10448_v35  ;;  %v3694_v27 = vld [vmem:[%s10285_s0 + $0x74] sm:$0xff] }
 0x33f   :  { %v1764_v43 = vadd.f32 %v1669_v38, %v1110_v62  ;;  %v10451_v38 = vld [vmem:[#allocation17_spill] sm:$0xff] }
 0x340   :  { %v1672_v8 = vpop.f32.mrf.mxu2  ;;  %v2303_v22 = vpop.f32.mrf.mxu3 }
 0x341   :  { %v8572_v0 = vadd.f32 %v2303_v22, %v1763_v5  ;;  %v1118_v33 = vpop.f32.mrf.mxu1  ;;  %v8574_v57 = vpop.f32.mrf.mxu0 }
 0x342   :  { %10447 = vst [vmem:[#allocation123_spill] sm:$0xff] %v8574_v57 }
 0x343   :  { %10446 = vst [vmem:[#allocation13_spill] sm:$0xff] %v8572_v0 }
 0x344   :  { %6297 = vmatmul.msk.f32.gmra.mxu1 %vm170_vm1, %v3692_v49  ;;  %6526 = vmatmul.msk.f32.gmra.mxu0 %vm170_vm1, %v4963_v23  ;;  %v4964_v49 = vld [vmem:[%s10285_s0 + $0x56] sm:$0xff]  ;;  %v4329_v23 = vld [vmem:[%s10285_s0 + $0x65] sm:$0xff] }
 0x345   :  { %6374 = vmatmul.msk.f32.gmra.mxu2 %vm170_vm1, %v3693_v63  ;;  %6450 = vmatmul.msk.f32.gmra.mxu3 %vm170_vm1, %v4328_v18  ;;  %v1113_v18 = vadd.f32 %v1112_v20, %v10451_v38  ;;  %v3695_v20 = vld [vmem:[%s10285_s0 + $0x7c] sm:$0xff] }
 0x347   :  { %v1765_v35 = vadd.f32 %v1672_v8, %v1113_v18  ;;  %v10454_v8 = vld [vmem:[#allocation19_spill] sm:$0xff] }
 0x348   :  { %v1675_v13 = vpop.f32.mrf.mxu2  ;;  %v2306_v5 = vpop.f32.mrf.mxu3 }
 0x349   :  { %v8590_v22 = vadd.f32 %v2306_v5, %v1764_v43  ;;  %v1121_v0 = vpop.f32.mrf.mxu1  ;;  %v8592_v57 = vpop.f32.mrf.mxu0 }
 0x34a   :  { %10450 = vst [vmem:[#allocation124_spill] sm:$0xff] %v8592_v57 }
 0x34b   :  { %10449 = vst [vmem:[#allocation15_spill] sm:$0xff] %v8590_v22 }
 0x34c   :  { %6298 = vmatmul.msk.f32.gmra.mxu1 %vm170_vm1, %v3693_v63  ;;  %6527 = vmatmul.msk.f32.gmra.mxu0 %vm170_vm1, %v4964_v49  ;;  %v4965_v63 = vld [vmem:[%s10285_s0 + $0x5e] sm:$0xff]  ;;  %v4330_v49 = vld [vmem:[%s10285_s0 + $0x6d] sm:$0xff] }
 0x34d   :  { %6375 = vmatmul.msk.f32.gmra.mxu2 %vm170_vm1, %v3694_v27  ;;  %6451 = vmatmul.msk.f32.gmra.mxu3 %vm170_vm1, %v4329_v23  ;;  %v1116_v23 = vadd.f32 %v1115_v11, %v10454_v8  ;;  %v3696_v11 = vld [vmem:[%s10285_s0 + $0x84] sm:$0xff] }
 0x34f   :  { %v1766_v38 = vadd.f32 %v1675_v13, %v1116_v23  ;;  %v10457_v13 = vld [vmem:[#allocation21_spill] sm:$0xff] }
 0x350   :  { %v1678_v62 = vpop.f32.mrf.mxu2  ;;  %v2309_v43 = vpop.f32.mrf.mxu3 }
 0x351   :  { %v8608_v5 = vadd.f32 %v2309_v43, %v1765_v35  ;;  %v1124_v22 = vpop.f32.mrf.mxu1  ;;  %v8610_v57 = vpop.f32.mrf.mxu0 }
 0x352   :  { %10453 = vst [vmem:[#allocation125_spill] sm:$0xff] %v8610_v57 }
 0x353   :  { %10452 = vst [vmem:[#allocation17_spill] sm:$0xff] %v8608_v5 }
 0x354   :  { %6299 = vmatmul.msk.f32.gmra.mxu1 %vm170_vm1, %v3694_v27  ;;  %6528 = vmatmul.msk.f32.gmra.mxu0 %vm170_vm1, %v4965_v63  ;;  %v4966_v27 = vld [vmem:[%s10285_s0 + $0x66] sm:$0xff]  ;;  %v4331_v63 = vld [vmem:[%s10285_s0 + $0x75] sm:$0xff] }
 0x355   :  { %6376 = vmatmul.msk.f32.gmra.mxu2 %vm170_vm1, %v3695_v20  ;;  %6452 = vmatmul.msk.f32.gmra.mxu3 %vm170_vm1, %v4330_v49  ;;  %v1119_v49 = vadd.f32 %v1118_v33, %v10457_v13  ;;  %v3697_v33 = vld [vmem:[%s10285_s0 + $0x8c] sm:$0xff] }
 0x357   :  { %v1767_v8 = vadd.f32 %v1678_v62, %v1119_v49  ;;  %v10460_v62 = vld [vmem:[#allocation23_spill] sm:$0xff] }
 0x358   :  { %v1681_v18 = vpop.f32.mrf.mxu2  ;;  %v2312_v35 = vpop.f32.mrf.mxu3 }
 0x359   :  { %v8626_v43 = vadd.f32 %v2312_v35, %v1766_v38  ;;  %v1127_v5 = vpop.f32.mrf.mxu1  ;;  %v8628_v57 = vpop.f32.mrf.mxu0 }
 0x35a   :  { %10456 = vst [vmem:[#allocation126_spill] sm:$0xff] %v8628_v57 }
 0x35b   :  { %10455 = vst [vmem:[#allocation19_spill] sm:$0xff] %v8626_v43 }
 0x35c   :  { %6300 = vmatmul.msk.f32.gmra.mxu1 %vm170_vm1, %v3695_v20  ;;  %6529 = vmatmul.msk.f32.gmra.mxu0 %vm170_vm1, %v4966_v27  ;;  %v4967_v20 = vld [vmem:[%s10285_s0 + $0x6e] sm:$0xff]  ;;  %v4332_v27 = vld [vmem:[%s10285_s0 + $0x7d] sm:$0xff] }
 0x35d   :  { %6377 = vmatmul.msk.f32.gmra.mxu2 %vm170_vm1, %v3696_v11  ;;  %6453 = vmatmul.msk.f32.gmra.mxu3 %vm170_vm1, %v4331_v63  ;;  %v1122_v63 = vadd.f32 %v1121_v0, %v10460_v62  ;;  %v3698_v0 = vld [vmem:[%s10285_s0 + $0x94] sm:$0xff] }
 0x35f   :  { %v1768_v13 = vadd.f32 %v1681_v18, %v1122_v63  ;;  %v10463_v18 = vld [vmem:[#allocation25_spill] sm:$0xff] }
 0x360   :  { %v1684_v23 = vpop.f32.mrf.mxu2  ;;  %v2315_v38 = vpop.f32.mrf.mxu3 }
 0x361   :  { %v8644_v35 = vadd.f32 %v2315_v38, %v1767_v8  ;;  %v1130_v43 = vpop.f32.mrf.mxu1  ;;  %v8646_v57 = vpop.f32.mrf.mxu0 }
 0x362   :  { %10459 = vst [vmem:[#allocation127_spill] sm:$0xff] %v8646_v57 }
 0x363   :  { %10458 = vst [vmem:[#allocation21_spill] sm:$0xff] %v8644_v35 }
 0x364   :  { %6301 = vmatmul.msk.f32.gmra.mxu1 %vm170_vm1, %v3696_v11  ;;  %6530 = vmatmul.msk.f32.gmra.mxu0 %vm170_vm1, %v4967_v20  ;;  %v4968_v11 = vld [vmem:[%s10285_s0 + $0x76] sm:$0xff]  ;;  %v4333_v20 = vld [vmem:[%s10285_s0 + $0x85] sm:$0xff] }
 0x365   :  { %6378 = vmatmul.msk.f32.gmra.mxu2 %vm170_vm1, %v3697_v33  ;;  %6454 = vmatmul.msk.f32.gmra.mxu3 %vm170_vm1, %v4332_v27  ;;  %v1125_v27 = vadd.f32 %v1124_v22, %v10463_v18  ;;  %v3699_v22 = vld [vmem:[%s10285_s0 + $0x9c] sm:$0xff] }
 0x367   :  { %v1769_v62 = vadd.f32 %v1684_v23, %v1125_v27  ;;  %v10466_v23 = vld [vmem:[#allocation27_spill] sm:$0xff] }
 0x368   :  { %v1687_v49 = vpop.f32.mrf.mxu2  ;;  %v2318_v8 = vpop.f32.mrf.mxu3 }
 0x369   :  { %v8662_v38 = vadd.f32 %v2318_v8, %v1768_v13  ;;  %v1133_v57 = vpop.f32.mrf.mxu1  ;;  %v8664_v35 = vpop.f32.mrf.mxu0 }
 0x36a   :  { %10462 = vst [vmem:[#allocation128_spill] sm:$0xff] %v8664_v35 }
 0x36b   :  { %10461 = vst [vmem:[#allocation23_spill] sm:$0xff] %v8662_v38 }
 0x36c   :  { %6302 = vmatmul.msk.f32.gmra.mxu1 %vm170_vm1, %v3697_v33  ;;  %6531 = vmatmul.msk.f32.gmra.mxu0 %vm170_vm1, %v4968_v11  ;;  %v4969_v33 = vld [vmem:[%s10285_s0 + $0x7e] sm:$0xff]  ;;  %v4334_v11 = vld [vmem:[%s10285_s0 + $0x8d] sm:$0xff] }
 0x36d   :  { %6379 = vmatmul.msk.f32.gmra.mxu2 %vm170_vm1, %v3698_v0  ;;  %6455 = vmatmul.msk.f32.gmra.mxu3 %vm170_vm1, %v4333_v20  ;;  %v1128_v20 = vadd.f32 %v1127_v5, %v10466_v23  ;;  %v3700_v5 = vld [vmem:[%s10285_s0 + $0xa4] sm:$0xff]  ;;  %v10470_v23 = vld [vmem:[#allocation28_spill] sm:$0xff] }
 0x36f   :  { %v1770_v18 = vadd.f32 %v1687_v49, %v1128_v20  ;;  %v10469_v49 = vld [vmem:[#allocation30_spill] sm:$0xff]  ;;  %v1131_v20 = vadd.f32 %v1130_v43, %v10470_v23  ;;  %v3701_v43 = vld [vmem:[%s10285_s0 + $0xac] sm:$0xff] }
 0x370   :  { %v1690_v63 = vpop.f32.mrf.mxu2  ;;  %v2321_v13 = vpop.f32.mrf.mxu3 }
 0x371   :  { %v8680_v8 = vadd.f32 %v2321_v13, %v1769_v62  ;;  %v8682_v35 = vpop.f32.mrf.mxu0  ;;  %v3376_v38 = vpop.f32.mrf.mxu1 }
 0x372   :  { %10465 = vst [vmem:[#allocation129_spill] sm:$0xff] %v8682_v35 }
 0x373   :  { %10464 = vst [vmem:[#allocation25_spill] sm:$0xff] %v8680_v8 }
 0x374   :  { %6303 = vmatmul.msk.f32.gmra.mxu1 %vm170_vm1, %v3698_v0  ;;  %6532 = vmatmul.msk.f32.gmra.mxu0 %vm170_vm1, %v4969_v33  ;;  %v4970_v0 = vld [vmem:[%s10285_s0 + $0x86] sm:$0xff]  ;;  %v4335_v33 = vld [vmem:[%s10285_s0 + $0x95] sm:$0xff] }
 0x375   :  { %6380 = vmatmul.msk.f32.gmra.mxu2 %vm170_vm1, %v3699_v22  ;;  %6456 = vmatmul.msk.f32.gmra.mxu3 %vm170_vm1, %v4334_v11  ;;  %v2970_v11 = vadd.f32 %v7364_v6, %v10469_v49  ;;  %v4971_v6 = vld [vmem:[%s10285_s0 + $0x8e] sm:$0xff] }
 0x378   :  { %v1693_v27 = vpop.f32.mrf.mxu2  ;;  %v2324_v62 = vpop.f32.mrf.mxu3 }
 0x379   :  { %v8698_v13 = vadd.f32 %v2324_v62, %v1770_v18  ;;  %v8700_v35 = vpop.f32.mrf.mxu0  ;;  %v3379_v8 = vpop.f32.mrf.mxu1  ;;  %v1771_v18 = vadd.f32 %v1690_v63, %v1131_v20  ;;  %v3607_v62 = vadd.f32 %v3376_v38, %v2970_v11  ;;  %v4336_v38 = vld [vmem:[%s10285_s0 + $0x9d] sm:$0xff] }
 0x37a   :  { %10468 = vst [vmem:[#allocation130_spill] sm:$0xff] %v8700_v35 }
 0x37b   :  { %10467 = vst [vmem:[#allocation27_spill] sm:$0xff] %v8698_v13 }
 0x37c   :  { %6304 = vmatmul.msk.f32.gmra.mxu1 %vm170_vm1, %v3699_v22  ;;  %6533 = vmatmul.msk.f32.gmra.mxu0 %vm170_vm1, %v4970_v0 }
 0x37d   :  { %6381 = vmatmul.msk.f32.gmra.mxu2 %vm170_vm1, %v3700_v5  ;;  %6457 = vmatmul.msk.f32.gmra.mxu3 %vm170_vm1, %v4335_v33 }
 0x380   :  { %v2327_v35 = vpop.f32.mrf.mxu3  ;;  %v4013_v13 = vpop.f32.mrf.mxu2 }
 0x381   :  { %v8718_v42 = vadd.f32 %v2327_v35, %v1771_v18  ;;  %v4244_v39 = vadd.f32 %v4013_v13, %v3607_v62  ;;  %v8720_v4 = vpop.f32.mrf.mxu0  ;;  %v3382_v22 = vpop.f32.mrf.mxu1  ;;  %v10473_v35 = vld [vmem:[#allocation31_spill] sm:$0xff]  ;;  %v10474_v13 = vld [vmem:[#allocation29_spill] sm:$0xff] }
 0x382   :  { %10472 = vst [vmem:[#allocation28_spill] sm:$0xff] %v8720_v4  ;;  %v2971_v63 = vadd.f32 %v7382_v36, %v10473_v35  ;;  %v1134_v0 = vadd.f32 %v1133_v57, %v10474_v13  ;;  %v4972_v36 = vld [vmem:[%s10285_s0 + $0x96] sm:$0xff] }
 0x383   :  { %10471 = vst [vmem:[#allocation30_spill] sm:$0xff] %v8718_v42  ;;  %v3702_v57 = vld [vmem:[%s10285_s0 + $0xb4] sm:$0xff]  ;;  %v4981_v42 = vld [vmem:[%s10285_s0 + $0xde] sm:$0xff] }
 0x384   :  { %6305 = vmatmul.msk.f32.gmra.mxu1 %vm170_vm1, %v3700_v5  ;;  %6534 = vmatmul.msk.f32.gmra.mxu0 %vm170_vm1, %v4971_v6  ;;  %v1772_v33 = vadd.f32 %v1693_v27, %v1134_v0  ;;  %v3608_v49 = vadd.f32 %v3379_v8, %v2971_v63  ;;  %v4337_v8 = vld [vmem:[%s10285_s0 + $0xa5] sm:$0xff]  ;;  %v10477_v27 = vld [vmem:[#allocation32_spill] sm:$0xff] }
 0x385   :  { %6382 = vmatmul.msk.f32.gmra.mxu2 %vm170_vm1, %v3701_v43  ;;  %6458 = vmatmul.msk.f32.gmra.mxu3 %vm170_vm1, %v4336_v38  ;;  %v2972_v6 = vadd.f32 %v7400_v31, %v10477_v27  ;;  %v3703_v31 = vld [vmem:[%s10285_s0 + $0xbc] sm:$0xff] }
 0x387   :  { %v3609_v38 = vadd.f32 %v3382_v22, %v2972_v6  ;;  %v4338_v22 = vld [vmem:[%s10285_s0 + $0xad] sm:$0xff] }
 0x388   :  { %v2330_v11 = vpop.f32.mrf.mxu3  ;;  %v4016_v23 = vpop.f32.mrf.mxu2 }
 0x389   :  { %v8738_v20 = vadd.f32 %v2330_v11, %v1772_v33  ;;  %v4245_v18 = vadd.f32 %v4016_v23, %v3608_v49  ;;  %v8740_v62 = vpop.f32.mrf.mxu0  ;;  %v3385_v5 = vpop.f32.mrf.mxu1 }
 0x38a   :  { %10476 = vst [vmem:[#allocation29_spill] sm:$0xff] %v8740_v62 }
 0x38b   :  { %10475 = vst [vmem:[#allocation31_spill] sm:$0xff] %v8738_v20 }
 0x38c   :  { %6306 = vmatmul.msk.f32.gmra.mxu1 %vm170_vm1, %v3701_v43  ;;  %6535 = vmatmul.msk.f32.gmra.mxu0 %vm170_vm1, %v4972_v36  ;;  %v4973_v43 = vld [vmem:[%s10285_s0 + $0x9e] sm:$0xff] }
 0x38d   :  { %6383 = vmatmul.msk.f32.gmra.mxu2 %vm170_vm1, %v3702_v57  ;;  %6459 = vmatmul.msk.f32.gmra.mxu3 %vm170_vm1, %v4337_v8 }
 0x390   :  { %v4019_v35 = vpop.f32.mrf.mxu2  ;;  %v4650_v63 = vpop.f32.mrf.mxu3 }
 0x391   :  { %v4246_v13 = vadd.f32 %v4019_v35, %v3609_v38  ;;  %v8757_v0 = vadd.f32 %v4650_v63, %v4244_v39  ;;  %v8759_v33 = vpop.f32.mrf.mxu0  ;;  %v3388_v49 = vpop.f32.mrf.mxu1  ;;  %v10480_v39 = vld [vmem:[#allocation33_spill] sm:$0xff] }
 0x392   :  { %10479 = vst [vmem:[#allocation131_spill] sm:$0xff] %v8759_v33  ;;  %v2973_v11 = vadd.f32 %v7418_v3, %v10480_v39  ;;  %v3704_v3 = vld [vmem:[%s10285_s0 + $0xc4] sm:$0xff] }
 0x393   :  { %10478 = vst [vmem:[#allocation32_spill] sm:$0xff] %v8757_v0 }
 0x394   :  { %6307 = vmatmul.msk.f32.gmra.mxu1 %vm170_vm1, %v3702_v57  ;;  %6536 = vmatmul.msk.f32.gmra.mxu0 %vm170_vm1, %v4973_v43  ;;  %v3610_v23 = vadd.f32 %v3385_v5, %v2973_v11  ;;  %v4974_v57 = vld [vmem:[%s10285_s0 + $0xa6] sm:$0xff]  ;;  %v4339_v5 = vld [vmem:[%s10285_s0 + $0xb5] sm:$0xff] }
 0x395   :  { %6384 = vmatmul.msk.f32.gmra.mxu2 %vm170_vm1, %v3703_v31  ;;  %6460 = vmatmul.msk.f32.gmra.mxu3 %vm170_vm1, %v4338_v22 }
 0x398   :  { %v4022_v36 = vpop.f32.mrf.mxu2  ;;  %v4653_v8 = vpop.f32.mrf.mxu3 }
 0x399   :  { %v4247_v27 = vadd.f32 %v4022_v36, %v3610_v23  ;;  %v8776_v6 = vadd.f32 %v4653_v8, %v4245_v18  ;;  %v3391_v38 = vpop.f32.mrf.mxu1  ;;  %v8778_v35 = vpop.f32.mrf.mxu0  ;;  %v10483_v18 = vld [vmem:[#allocation34_spill] sm:$0xff] }
 0x39a   :  { %10482 = vst [vmem:[#allocation132_spill] sm:$0xff] %v8778_v35  ;;  %v2974_v63 = vadd.f32 %v7436_v12, %v10483_v18  ;;  %v3705_v12 = vld [vmem:[%s10285_s0 + $0xcc] sm:$0xff] }
 0x39b   :  { %10481 = vst [vmem:[#allocation33_spill] sm:$0xff] %v8776_v6  ;;  %v4987_v6 = vld [vmem:[%s10285_s0 + $0x10e] sm:$0xff] }
 0x39c   :  { %6308 = vmatmul.msk.f32.gmra.mxu1 %vm170_vm1, %v3703_v31  ;;  %6537 = vmatmul.msk.f32.gmra.mxu0 %vm170_vm1, %v4974_v57  ;;  %v3611_v43 = vadd.f32 %v3388_v49, %v2974_v63  ;;  %v4975_v31 = vld [vmem:[%s10285_s0 + $0xae] sm:$0xff]  ;;  %v4340_v49 = vld [vmem:[%s10285_s0 + $0xbd] sm:$0xff] }
 0x39d   :  { %6385 = vmatmul.msk.f32.gmra.mxu2 %vm170_vm1, %v3704_v3  ;;  %6461 = vmatmul.msk.f32.gmra.mxu3 %vm170_vm1, %v4339_v5 }
 0x3a0   :  { %v4025_v22 = vpop.f32.mrf.mxu2  ;;  %v4656_v39 = vpop.f32.mrf.mxu3 }
 0x3a1   :  { %v4248_v11 = vadd.f32 %v4025_v22, %v3611_v43  ;;  %v8795_v23 = vadd.f32 %v4656_v39, %v4246_v13  ;;  %v3394_v36 = vpop.f32.mrf.mxu1  ;;  %v8797_v8 = vpop.f32.mrf.mxu0  ;;  %v10486_v13 = vld [vmem:[#allocation35_spill] sm:$0xff] }
 0x3a2   :  { %10485 = vst [vmem:[#allocation133_spill] sm:$0xff] %v8797_v8  ;;  %v2975_v57 = vadd.f32 %v7454_v19, %v10486_v13  ;;  %v3706_v19 = vld [vmem:[%s10285_s0 + $0xd4] sm:$0xff] }
 0x3a3   :  { %10484 = vst [vmem:[#allocation34_spill] sm:$0xff] %v8795_v23 }
 0x3a4   :  { %6309 = vmatmul.msk.f32.gmra.mxu1 %vm170_vm1, %v3704_v3  ;;  %6538 = vmatmul.msk.f32.gmra.mxu0 %vm170_vm1, %v4975_v31  ;;  %v3612_v5 = vadd.f32 %v3391_v38, %v2975_v57  ;;  %v4976_v3 = vld [vmem:[%s10285_s0 + $0xb6] sm:$0xff]  ;;  %v4341_v38 = vld [vmem:[%s10285_s0 + $0xc5] sm:$0xff] }
 0x3a5   :  { %6386 = vmatmul.msk.f32.gmra.mxu2 %vm170_vm1, %v3705_v12  ;;  %6462 = vmatmul.msk.f32.gmra.mxu3 %vm170_vm1, %v4340_v49 }
 0x3a8   :  { %v4028_v18 = vpop.f32.mrf.mxu2  ;;  %v4659_v63 = vpop.f32.mrf.mxu3 }
 0x3a9   :  { %v4249_v43 = vadd.f32 %v4028_v18, %v3612_v5  ;;  %v8814_v22 = vadd.f32 %v4659_v63, %v4247_v27  ;;  %v3397_v39 = vpop.f32.mrf.mxu1  ;;  %v8816_v33 = vpop.f32.mrf.mxu0  ;;  %v10489_v27 = vld [vmem:[#allocation36_spill] sm:$0xff] }
 0x3aa   :  { %10488 = vst [vmem:[#allocation134_spill] sm:$0xff] %v8816_v33  ;;  %v2976_v31 = vadd.f32 %v7472_v29, %v10489_v27  ;;  %v3707_v29 = vld [vmem:[%s10285_s0 + $0xdc] sm:$0xff] }
 0x3ab   :  { %10487 = vst [vmem:[#allocation35_spill] sm:$0xff] %v8814_v22 }
 0x3ac   :  { %6310 = vmatmul.msk.f32.gmra.mxu1 %vm170_vm1, %v3705_v12  ;;  %6539 = vmatmul.msk.f32.gmra.mxu0 %vm170_vm1, %v4976_v3  ;;  %v3613_v49 = vadd.f32 %v3394_v36, %v2976_v31  ;;  %v4977_v12 = vld [vmem:[%s10285_s0 + $0xbe] sm:$0xff]  ;;  %v4342_v36 = vld [vmem:[%s10285_s0 + $0xcd] sm:$0xff] }
 0x3ad   :  { %6387 = vmatmul.msk.f32.gmra.mxu2 %vm170_vm1, %v3706_v19  ;;  %6463 = vmatmul.msk.f32.gmra.mxu3 %vm170_vm1, %v4341_v38 }
 0x3b0   :  { %v4031_v13 = vpop.f32.mrf.mxu2  ;;  %v4662_v57 = vpop.f32.mrf.mxu3 }
 0x3b1   :  { %v4250_v5 = vadd.f32 %v4031_v13, %v3613_v49  ;;  %v8833_v18 = vadd.f32 %v4662_v57, %v4248_v11  ;;  %v3400_v63 = vpop.f32.mrf.mxu1  ;;  %v8835_v20 = vpop.f32.mrf.mxu0  ;;  %v10491_v11 = vld [vmem:[#allocation37_spill] sm:$0xff] }
 0x3b2   :  { %10490 = vst [vmem:[#allocation36_spill] sm:$0xff] %v8835_v20  ;;  %v2977_v3 = vadd.f32 %v7490_v37, %v10491_v11  ;;  %v3708_v37 = vld [vmem:[%s10285_s0 + $0xe4] sm:$0xff] }
 0x3b4   :  { %6311 = vmatmul.msk.f32.gmra.mxu1 %vm170_vm1, %v3706_v19  ;;  %6540 = vmatmul.msk.f32.gmra.mxu0 %vm170_vm1, %v4977_v12  ;;  %v3614_v38 = vadd.f32 %v3397_v39, %v2977_v3  ;;  %v4978_v19 = vld [vmem:[%s10285_s0 + $0xc6] sm:$0xff]  ;;  %v4343_v39 = vld [vmem:[%s10285_s0 + $0xd5] sm:$0xff] }
 0x3b5   :  { %6388 = vmatmul.msk.f32.gmra.mxu2 %vm170_vm1, %v3707_v29  ;;  %6464 = vmatmul.msk.f32.gmra.mxu3 %vm170_vm1, %v4342_v36 }
 0x3b8   :  { %v4034_v27 = vpop.f32.mrf.mxu2  ;;  %v4665_v31 = vpop.f32.mrf.mxu3 }
 0x3b9   :  { %v4251_v49 = vadd.f32 %v4034_v27, %v3614_v38  ;;  %v8852_v13 = vadd.f32 %v4665_v31, %v4249_v43  ;;  %v8854_v57 = vpop.f32.mrf.mxu1  ;;  %v8856_v4 = vpop.f32.mrf.mxu0  ;;  %v10492_v43 = vld [vmem:[#allocation38_spill] sm:$0xff] }
 0x3ba   :  { %v2978_v12 = vadd.f32 %v7508_v44, %v10492_v43  ;;  %v3709_v44 = vld [vmem:[%s10285_s0 + $0xec] sm:$0xff] }
 0x3bc   :  { %6312 = vmatmul.msk.f32.gmra.mxu1 %vm170_vm1, %v3707_v29  ;;  %6541 = vmatmul.msk.f32.gmra.mxu0 %vm170_vm1, %v4978_v19  ;;  %v3615_v36 = vadd.f32 %v3400_v63, %v2978_v12  ;;  %v4979_v29 = vld [vmem:[%s10285_s0 + $0xce] sm:$0xff]  ;;  %v4344_v63 = vld [vmem:[%s10285_s0 + $0xdd] sm:$0xff] }
 0x3bd   :  { %6389 = vmatmul.msk.f32.gmra.mxu2 %vm170_vm1, %v3708_v37  ;;  %6465 = vmatmul.msk.f32.gmra.mxu3 %vm170_vm1, %v4343_v39 }
 0x3c0   :  { %v4037_v11 = vpop.f32.mrf.mxu2  ;;  %v4668_v3 = vpop.f32.mrf.mxu3 }
 0x3c1   :  { %v4252_v38 = vadd.f32 %v4037_v11, %v3615_v36  ;;  %v8873_v27 = vadd.f32 %v4668_v3, %v4250_v5  ;;  %v8875_v31 = vpop.f32.mrf.mxu1  ;;  %v8877_v62 = vpop.f32.mrf.mxu0  ;;  %v4980_v36 = vld [vmem:[%s10285_s0 + $0xd6] sm:$0xff]  ;;  %v4345_v11 = vld [vmem:[%s10285_s0 + $0xe5] sm:$0xff] }
 0x3c4   :  { %6313 = vmatmul.msk.f32.gmra.mxu1 %vm170_vm1, %v3708_v37  ;;  %6542 = vmatmul.msk.f32.gmra.mxu0 %vm170_vm1, %v4979_v29  ;;  %v3710_v37 = vld [vmem:[%s10285_s0 + $0xf4] sm:$0xff] }
 0x3c5   :  { %6390 = vmatmul.msk.f32.gmra.mxu2 %vm170_vm1, %v3709_v44  ;;  %6466 = vmatmul.msk.f32.gmra.mxu3 %vm170_vm1, %v4344_v63 }
 0x3c8   :  { %v8892_v5 = vpop.f32.mrf.mxu2  ;;  %v4671_v19 = vpop.f32.mrf.mxu3 }
 0x3c9   :  { %v8894_v39 = vadd.f32 %v4671_v19, %v4251_v49  ;;  %v8896_v43 = vpop.f32.mrf.mxu1  ;;  %v8898_v12 = vpop.f32.mrf.mxu0 }
 0x3cc   :  { %6314 = vmatmul.msk.f32.gmra.mxu1 %vm170_vm1, %v3709_v44  ;;  %6543 = vmatmul.msk.f32.gmra.mxu0 %vm170_vm1, %v4980_v36  ;;  %v3711_v44 = vld [vmem:[%s10285_s0 + $0xfc] sm:$0xff]  ;;  %v4346_v36 = vld [vmem:[%s10285_s0 + $0xed] sm:$0xff] }
 0x3cd   :  { %6391 = vmatmul.msk.f32.gmra.mxu2 %vm170_vm1, %v3710_v37  ;;  %6467 = vmatmul.msk.f32.gmra.mxu3 %vm170_vm1, %v4345_v11 }
 0x3d0   :  { %v8913_v49 = vpop.f32.mrf.mxu2  ;;  %v4674_v3 = vpop.f32.mrf.mxu3 }
 0x3d1   :  { %v8915_v29 = vadd.f32 %v4674_v3, %v4252_v38  ;;  %v8917_v63 = vpop.f32.mrf.mxu1  ;;  %v8919_v19 = vpop.f32.mrf.mxu0 }
 0x3d4   :  { %6315 = vmatmul.msk.f32.gmra.mxu1 %vm170_vm1, %v3710_v37  ;;  %6544 = vmatmul.msk.f32.gmra.mxu0 %vm170_vm1, %v4981_v42  ;;  %v3712_v42 = vld [vmem:[%s10285_s0 + $0x104] sm:$0xff]  ;;  %v4347_v37 = vld [vmem:[%s10285_s0 + $0xf5] sm:$0xff] }
 0x3d5   :  { %6392 = vmatmul.msk.f32.gmra.mxu2 %vm170_vm1, %v3711_v44  ;;  %6468 = vmatmul.msk.f32.gmra.mxu3 %vm170_vm1, %v4346_v36 }
 0x3d8   :  { %v8934_v38 = vpop.f32.mrf.mxu2  ;;  %v8936_v11 = vpop.f32.mrf.mxu3 }
 0x3d9   :  { %v8938_v3 = vpop.f32.mrf.mxu1  ;;  %v8940_v10 = vpop.f32.mrf.mxu0 }
 0x3dc   :  { %6316 = vmatmul.msk.f32.gmra.mxu1 %vm170_vm1, %v3711_v44  ;;  %6545 = vmatmul.msk.f32.gmra.mxu0 %vm170_vm1, %v4982_v56  ;;  %v3713_v56 = vld [vmem:[%s10285_s0 + $0x10c] sm:$0xff]  ;;  %v4348_v44 = vld [vmem:[%s10285_s0 + $0xfd] sm:$0xff] }
 0x3dd   :  { %6393 = vmatmul.msk.f32.gmra.mxu2 %vm170_vm1, %v3712_v42  ;;  %6469 = vmatmul.msk.f32.gmra.mxu3 %vm170_vm1, %v4347_v37 }
 0x3e0   :  { %v8955_v36 = vpop.f32.mrf.mxu2  ;;  %v8957_v46 = vpop.f32.mrf.mxu3 }
 0x3e1   :  { %v8959_v48 = vpop.f32.mrf.mxu1  ;;  %v8961_v17 = vpop.f32.mrf.mxu0 }
 0x3e4   :  { %6317 = vmatmul.msk.f32.gmra.mxu1 %vm170_vm1, %v3712_v42  ;;  %6546 = vmatmul.msk.f32.gmra.mxu0 %vm170_vm1, %v4983_v60  ;;  %v3714_v42 = vld [vmem:[%s10285_s0 + $0x114] sm:$0xff]  ;;  %v4349_v60 = vld [vmem:[%s10285_s0 + $0x105] sm:$0xff] }
 0x3e5   :  { %6394 = vmatmul.msk.f32.gmra.mxu2 %vm170_vm1, %v3713_v56  ;;  %6470 = vmatmul.msk.f32.gmra.mxu3 %vm170_vm1, %v4348_v44 }
 0x3e8   :  { %v8976_v37 = vpop.f32.mrf.mxu2  ;;  %v8978_v41 = vpop.f32.mrf.mxu3 }
 0x3e9   :  { %v3421_v26 = vpop.f32.mrf.mxu1  ;;  %v8980_v15 = vpop.f32.mrf.mxu0 }
 0x3ec   :  { %6318 = vmatmul.msk.f32.gmra.mxu1 %vm170_vm1, %v3713_v56  ;;  %6547 = vmatmul.msk.f32.gmra.mxu0 %vm170_vm1, %v4984_v52  ;;  %v3715_v56 = vld [vmem:[%s10285_s0 + $0x11c] sm:$0xff]  ;;  %v4350_v52 = vld [vmem:[%s10285_s0 + $0x10d] sm:$0xff] }
 0x3ed   :  { %6395 = vmatmul.msk.f32.gmra.mxu2 %vm170_vm1, %v3714_v42  ;;  %6471 = vmatmul.msk.f32.gmra.mxu3 %vm170_vm1, %v4349_v60 }
 0x3f0   :  { %v4055_v44 = vpop.f32.mrf.mxu2  ;;  %v8995_v7 = vpop.f32.mrf.mxu3 }
 0x3f1   :  { %v3424_v34 = vpop.f32.mrf.mxu1  ;;  %v8997_v30 = vpop.f32.mrf.mxu0 }
 0x3f4   :  { %6319 = vmatmul.msk.f32.gmra.mxu1 %vm170_vm1, %v3714_v42  ;;  %6548 = vmatmul.msk.f32.gmra.mxu0 %vm170_vm1, %v4985_v45  ;;  %v3716_v42 = vld [vmem:[%s10285_s0 + $0x124] sm:$0xff]  ;;  %v4351_v45 = vld [vmem:[%s10285_s0 + $0x115] sm:$0xff] }
 0x3f5   :  { %6396 = vmatmul.msk.f32.gmra.mxu2 %vm170_vm1, %v3715_v56  ;;  %6472 = vmatmul.msk.f32.gmra.mxu3 %vm170_vm1, %v4350_v52  ;;  %v2986_v52 = vadd.f32 %v7652_v14, %v7632_v16  ;;  %v4352_v14 = vld [vmem:[%s10285_s0 + $0x11d] sm:$0xff]  ;;  %v2987_v16 = vadd.f32 %v7670_v51, %v7650_v47  ;;  %v2985_v51 = vadd.f32 %v7634_v58, %v7614_v55  ;;  %v10494_v58 = vld [vmem:[#allocation44_spill] sm:$0xff] }
 0x3f6   :  { %v10495_v55 = vld [vmem:[#allocation46_spill] sm:$0xff] }
 0x3f7   :  { %v3623_v61 = vadd.f32 %v3424_v34, %v2986_v52 }
 0x3f8   :  { %v4058_v60 = vpop.f32.mrf.mxu2  ;;  %v9012_v24 = vpop.f32.mrf.mxu3 }
 0x3f9   :  { %v3427_v2 = vpop.f32.mrf.mxu1  ;;  %v9014_v21 = vpop.f32.mrf.mxu0 }
 0x3fc   :  { %6320 = vmatmul.msk.f32.gmra.mxu1 %vm170_vm1, %v3715_v56  ;;  %6549 = vmatmul.msk.f32.gmra.mxu0 %vm170_vm1, %v4986_v59  ;;  %v3717_v59 = vld [vmem:[%s10285_s0 + $0x12c] sm:$0xff] }
 0x3fd   :  { %6397 = vmatmul.msk.f32.gmra.mxu2 %vm170_vm1, %v3716_v42  ;;  %6473 = vmatmul.msk.f32.gmra.mxu3 %vm170_vm1, %v4351_v45 }
 0x400   :  { %v4061_v53 = vpop.f32.mrf.mxu2  ;;  %v4692_v35 = vpop.f32.mrf.mxu3 }
 0x401   :  { %v4260_v0 = vadd.f32 %v4061_v53, %v3623_v61  ;;  %v3430_v28 = vpop.f32.mrf.mxu1  ;;  %v5326_v8 = vpop.f32.mrf.mxu0  ;;  %v3624_v61 = vadd.f32 %v3427_v2, %v2987_v16  ;;  %v2984_v53 = vadd.f32 %v7616_v1, %v7596_v40  ;;  %v3718_v2 = vld [vmem:[%s10285_s0 + $0x134] sm:$0xff]  ;;  %v4353_v1 = vld [vmem:[%s10285_s0 + $0x125] sm:$0xff] }
 0x402   :  { %v10493_v40 = vld [vmem:[#allocation47_spill] sm:$0xff] }
 0x403   :  { %v3621_v47 = vadd.f32 %v8959_v48, %v2984_v53  ;;  %v2982_v48 = vadd.f32 %v10495_v55, %v10494_v58 }
 0x404   :  { %6321 = vmatmul.msk.f32.gmra.mxu1 %vm170_vm1, %v3716_v42  ;;  %6550 = vmatmul.msk.f32.gmra.mxu0 %vm170_vm1, %v4987_v6  ;;  %v4988_v6 = vld [vmem:[%s10285_s0 + $0x116] sm:$0xff]  ;;  %v2983_v42 = vadd.f32 %v10493_v40, %v7578_v25  ;;  %v10500_v40 = vld [vmem:[#allocation43_spill] sm:$0xff] }
 0x405   :  { %6398 = vmatmul.msk.f32.gmra.mxu2 %vm170_vm1, %v3717_v59  ;;  %6474 = vmatmul.msk.f32.gmra.mxu3 %vm170_vm1, %v4352_v14  ;;  %v3622_v14 = vadd.f32 %v3421_v26, %v2985_v51  ;;  %v4258_v16 = vadd.f32 %v4055_v44, %v3621_v47  ;;  %v10497_v26 = vld [vmem:[#allocation42_spill] sm:$0xff]  ;;  %v10498_v44 = vld [vmem:[#allocation45_spill] sm:$0xff]  ;;  %v10499_v47 = vld [vmem:[#allocation40_spill] sm:$0xff] }
 0x406   :  { %v2981_v51 = vadd.f32 %v10498_v44, %v10497_v26  ;;  %v2980_v58 = vadd.f32 %v10500_v40, %v10499_v47 }
 0x407   :  { %v4259_v23 = vadd.f32 %v4058_v60, %v3622_v14  ;;  %v4895_v25 = vadd.f32 %v4692_v35, %v4258_v16 }
 0x408   :  { %v4064_v34 = vpop.f32.mrf.mxu2  ;;  %v4695_v56 = vpop.f32.mrf.mxu3 }
 0x409   :  { %v9048_v45 = vadd.f32 %v4064_v34, %v3624_v61  ;;  %v3433_v52 = vpop.f32.mrf.mxu1  ;;  %v5329_v33 = vpop.f32.mrf.mxu0  ;;  %v10496_v61 = vld [vmem:[#allocation48_spill] sm:$0xff]  ;;  %v3620_v34 = vadd.f32 %v8938_v3, %v2983_v42 }
 0x40a   :  { %v2988_v53 = vadd.f32 %v7688_v32, %v10496_v61  ;;  %v4896_v32 = vadd.f32 %v4695_v56, %v4259_v23  ;;  %v5532_v61 = vadd.f32 %v5329_v33, %v4895_v25  ;;  %v9091_v33 = vld [vmem:[%s10284_s1 + $0x24] ss:$0 sm:$0xff]  ;;  %v3617_v56 = vadd.f32 %v8875_v31, %v2980_v58 }
 0x40b   :  { %v4257_v55 = vadd.f32 %v8976_v37, %v3620_v34  ;;  %v10504_v34 = vld [vmem:[#allocation49_spill] sm:$0xff]  ;;  %v3720_v58 = vld [vmem:[%s10285_s0 + $0x144] sm:$0xff] }
 0x40c   :  { %6322 = vmatmul.msk.f32.gmra.mxu1 %vm170_vm1, %v3717_v59  ;;  %6551 = vmatmul.msk.f32.gmra.mxu0 %vm170_vm1, %v4988_v6  ;;  %v3619_v59 = vadd.f32 %v8917_v63, %v2982_v48  ;;  %v3625_v6 = vadd.f32 %v3430_v28, %v2988_v53  ;;  %v4989_v28 = vld [vmem:[%s10285_s0 + $0x11e] sm:$0xff]  ;;  %v2989_v25 = vadd.f32 %v7706_v54, %v10504_v34  ;;  %v10511_v34 = vld [vmem:[#allocation36_spill] sm:$0xff] }
 0x40d   :  { %6399 = vmatmul.msk.f32.gmra.mxu2 %vm170_vm1, %v3718_v2  ;;  %6475 = vmatmul.msk.f32.gmra.mxu3 %vm170_vm1, %v4353_v1  ;;  %v3618_v1 = vadd.f32 %v8896_v43, %v2981_v51  ;;  %v4894_v23 = vadd.f32 %v9012_v24, %v4257_v55  ;;  %v5611_v24 = vadd.f32 %v9091_v33, %v5532_v61 }
 0x40e   :  { %v4256_v3 = vadd.f32 %v8955_v36, %v3619_v59  ;;  %v10503_v36 = vld [vmem:[#allocation41_spill] sm:$0xff]  ;;  %v3626_v44 = vadd.f32 %v3433_v52, %v2989_v25 }
 0x40f   :  { %v4255_v14 = vadd.f32 %v8934_v38, %v3618_v1  ;;  %v5531_v48 = vadd.f32 %v5326_v8, %v4894_v23  ;;  %v5688_v47 = vmax.f32 %v5611_v24, 0.0  ;;  %v5526_v1 = vadd.f32 %v8940_v10, %v8915_v29 }
 0x410   :  { %v4067_v20 = vpop.f32.mrf.mxu2  ;;  %v4698_v22 = vpop.f32.mrf.mxu3  ;;  %v4893_v16 = vadd.f32 %v8995_v7, %v4256_v3  ;;  %v4254_v7 = vadd.f32 %v8913_v49, %v3617_v56  ;;  %v5523_v56 = vadd.f32 %v8877_v62, %v8852_v13 }
 0x411   :  { %v9081_v35 = vadd.f32 %v4067_v20, %v3625_v6  ;;  %v9083_v60 = vadd.f32 %v4698_v22, %v4260_v0  ;;  %v3436_v42 = vpop.f32.mrf.mxu1  ;;  %v5332_v63 = vpop.f32.mrf.mxu0  ;;  %v3719_v20 = vld [vmem:[%s10285_s0 + $0x13c] sm:$0xff]  ;;  %v4354_v0 = vld [vmem:[%s10285_s0 + $0x12d] sm:$0xff]  ;;  %v4892_v8 = vadd.f32 %v8978_v41, %v4255_v14 }
 0x412   :  { %v5533_v43 = vadd.f32 %v5332_v63, %v4896_v32  ;;  %v10502_v22 = vld [vmem:[#allocation39_spill] sm:$0xff]  ;;  %v5530_v31 = vadd.f32 %v9014_v21, %v4893_v16  ;;  %v4891_v51 = vadd.f32 %v8957_v46, %v4254_v7 }
 0x413   :  { %10501 = vst [vmem:[#allocation37_spill] sm:$0xff] %v9083_v60  ;;  %v2979_v37 = vadd.f32 %v10503_v36, %v10502_v22  ;;  %v5529_v54 = vadd.f32 %v8997_v30, %v4892_v8 }
 0x414   :  { %v5612_v53 = vadd.f32 %v9091_v33, %v5533_v43  ;;  %6323 = vmatmul.msk.f32.gmra.mxu1 %vm170_vm1, %v3718_v2  ;;  %6552 = vmatmul.msk.f32.gmra.mxu0 %vm170_vm1, %v4989_v28  ;;  %v5528_v30 = vadd.f32 %v8980_v15, %v4891_v51  ;;  %v5609_v52 = vadd.f32 %v9091_v33, %v5530_v31  ;;  %v10513_v51 = vld [vmem:[#allocation134_spill] sm:$0xff] }
 0x415   :  { %v3616_v26 = vadd.f32 %v8854_v57, %v2979_v37  ;;  %6400 = vmatmul.msk.f32.gmra.mxu2 %vm170_vm1, %v3719_v20  ;;  %6476 = vmatmul.msk.f32.gmra.mxu3 %vm170_vm1, %v4354_v0  ;;  %v5610_v57 = vadd.f32 %v9091_v33, %v5531_v48  ;;  %v5608_v32 = vadd.f32 %v9091_v33, %v5529_v54  ;;  %v3721_v37 = vld [vmem:[%s10285_s0 + $0x14c] sm:$0xff] }
 0x416   :  { %v5689_v38 = vmax.f32 %v5612_v53, 0.0  ;;  %v5607_v3 = vadd.f32 %v9091_v33, %v5528_v30  ;;  %v5525_v28 = vadd.f32 %v8919_v19, %v8894_v39  ;;  %v5524_v39 = vadd.f32 %v8898_v12, %v8873_v27  ;;  %v10509_v12 = vld [vmem:[#allocation51_spill] sm:$0xff] }
 0x417   :  { %v4253_v2 = vadd.f32 %v8892_v5, %v3616_v26  ;;  %v4990_v5 = vld [vmem:[%s10285_s0 + $0x126] sm:$0xff]  ;;  %v5687_v15 = vmax.f32 %v5610_v57, 0.0  ;;  %v5605_v19 = vadd.f32 %v9091_v33, %v5526_v1  ;;  %v2991_v16 = vadd.f32 %v7742_v50, %v10509_v12  ;;  %v10523_v12 = vld [vmem:[#allocation56_spill] sm:$0xff] }
 0x418   :  { %v4070_v59 = vpop.f32.mrf.mxu2  ;;  %v4701_v6 = vpop.f32.mrf.mxu3  ;;  %5764 = vmatpush.msrb.mxu1 %v5689_v38  ;;  %v5684_v36 = vmax.f32 %v5607_v3, 0.0  ;;  %v5604_v14 = vadd.f32 %v9091_v33, %v5525_v28  ;;  %v5522_v48 = vadd.f32 %v8856_v4, %v8833_v18  ;;  %v5603_v24 = vadd.f32 %v9091_v33, %v5524_v39  ;;  %v10510_v53 = vld [vmem:[#allocation35_spill] sm:$0xff] }
 0x419   :  { %v4263_v40 = vadd.f32 %v4070_v59, %v3626_v44  ;;  %v9122_v49 = vadd.f32 %v4701_v6, %v9048_v45  ;;  %v3439_v41 = vpop.f32.mrf.mxu1  ;;  %v9124_v21 = vpop.f32.mrf.mxu0  ;;  %v4890_v46 = vadd.f32 %v8936_v11, %v4253_v2  ;;  %v4355_v45 = vld [vmem:[%s10285_s0 + $0x135] sm:$0xff]  ;;  %v10507_v11 = vld [vmem:[#allocation50_spill] sm:$0xff]  ;;  %v5682_v62 = vmax.f32 %v5605_v19, 0.0  ;;  %v10520_v3 = vld [vmem:[#allocation55_spill] sm:$0xff] }
 0x41a   :  { %10506 = vst [vmem:[#allocation47_spill] sm:$0xff] %v9124_v21  ;;  %5765 = vmatpush.msrb.mxu1 %v5688_v47  ;;  %v2990_v61 = vadd.f32 %v7724_v9, %v10507_v11  ;;  %v3628_v13 = vadd.f32 %v3439_v41, %v2991_v16  ;;  %v5521_v25 = vadd.f32 %v10511_v34, %v10510_v53  ;;  %v5681_v8 = vmax.f32 %v5604_v14, 0.0  ;;  %v4992_v2 = vld [vmem:[%s10285_s0 + $0x136] sm:$0xff]  ;;  %v10512_v44 = vld [vmem:[#allocation34_spill] sm:$0xff] }
 0x41b   :  { %10505 = vst [vmem:[#allocation38_spill] sm:$0xff] %v9122_v49  ;;  %v5527_v55 = vadd.f32 %v8961_v17, %v4890_v46  ;;  %v5686_v17 = vmax.f32 %v5609_v52, 0.0  ;;  %v5602_v26 = vadd.f32 %v9091_v33, %v5523_v56  ;;  %v5520_v54 = vadd.f32 %v10513_v51, %v10512_v44  ;;  %v3722_v6 = vld [vmem:[%s10285_s0 + $0x154] sm:$0xff]  ;;  %v4357_v47 = vld [vmem:[%s10285_s0 + $0x145] sm:$0xff]  ;;  %v3723_v56 = vld [vmem:[%s10285_s0 + $0x15c] sm:$0xff] }
 0x41c   :  { %6324 = vmatmul.msk.f32.gmra.mxu1 %vm170_vm1, %v3719_v20  ;;  %6553 = vmatmul.msk.f32.gmra.mxu0 %vm170_vm1, %v4990_v5  ;;  %v3627_v63 = vadd.f32 %v3436_v42, %v2990_v61  ;;  %v5685_v20 = vmax.f32 %v5608_v32, 0.0  ;;  %v4991_v42 = vld [vmem:[%s10285_s0 + $0x12e] sm:$0xff]  ;;  %v5601_v57 = vadd.f32 %v9091_v33, %v5522_v48  ;;  %v5680_v59 = vmax.f32 %v5603_v24, 0.0  ;;  %v10515_v41 = vld [vmem:[#allocation133_spill] sm:$0xff] }
 0x41d   :  { %6401 = vmatmul.msk.f32.gmra.mxu2 %vm170_vm1, %v3720_v58  ;;  %6477 = vmatmul.msk.f32.gmra.mxu3 %vm170_vm1, %v4355_v45  ;;  %v5606_v23 = vadd.f32 %v9091_v33, %v5527_v55  ;;  %v5600_v46 = vadd.f32 %v9091_v33, %v5521_v25  ;;  %v5679_v30 = vmax.f32 %v5602_v26, 0.0  ;;  %v10516_v52 = vld [vmem:[#allocation52_spill] sm:$0xff]  ;;  %v5599_v11 = vadd.f32 %v9091_v33, %v5520_v54 }
 0x41e   :  { %5766 = vmatpush.msrb.mxu1 %v5687_v15  ;;  %v10518_v55 = vld [vmem:[#allocation32_spill] sm:$0xff]  ;;  %v5678_v61 = vmax.f32 %v5601_v57, 0.0 }
 0x41f   :  { %v5683_v27 = vmax.f32 %v5606_v23, 0.0  ;;  %v10519_v32 = vld [vmem:[#allocation132_spill] sm:$0xff] }
 0x420   :  { %5767 = vmatpush.msrb.mxu1 %v5686_v17  ;;  %v4073_v43 = vpop.f32.mrf.mxu2  ;;  %v4704_v9 = vpop.f32.mrf.mxu3  ;;  %v5518_v15 = vadd.f32 %v10519_v32, %v10518_v55  ;;  %v10521_v17 = vld [vmem:[#allocation58_spill] sm:$0xff]  ;;  %v4995_v57 = vld [vmem:[%s10285_s0 + $0x14e] sm:$0xff] }
 0x421   :  { %v9152_v0 = vadd.f32 %v4073_v43, %v3627_v63  ;;  %v9155_v22 = vadd.f32 %v4704_v9, %v9081_v35  ;;  %v3442_v10 = vpop.f32.mrf.mxu1  ;;  %v9157_v29 = vpop.f32.mrf.mxu0  ;;  %v4356_v35 = vld [vmem:[%s10285_s0 + $0x13d] sm:$0xff]  ;;  %v2994_v63 = vadd.f32 %v10521_v17, %v10520_v3  ;;  %v5677_v9 = vmax.f32 %v5600_v46, 0.0  ;;  %v4362_v3 = vld [vmem:[%s10285_s0 + $0x16d] sm:$0xff] }
 0x422   :  { %10508 = vst [vmem:[#allocation44_spill] sm:$0xff] %v9157_v29  ;;  %5768 = vmatpush.msrb.mxu1 %v5685_v20 }
 0x424   :  { %5769 = vmatpush.msrb.mxu1 %v5684_v36  ;;  %6554 = vmatmul.msk.f32.gmra.mxu0 %vm170_vm1, %v4991_v42  ;;  %v5597_v36 = vadd.f32 %v9091_v33, %v5518_v15 }
 0x425   :  { %6325 = vmatmul.msk.f32.gmra.mxu1 %vm170_vm1, %v3720_v58  ;;  %6402 = vmatmul.msk.f32.gmra.mxu2 %vm170_vm1, %v3721_v37  ;;  %v10517_v58 = vld [vmem:[#allocation54_spill] sm:$0xff] }
 0x426   :  { %6478 = vmatmul.msk.f32.gmra.mxu3 %vm170_vm1, %v4356_v35  ;;  %5770 = vmatpush.msrb.mxu1 %v5683_v27  ;;  %v2992_v45 = vadd.f32 %v10517_v58, %v10516_v52  ;;  %v5676_v35 = vmax.f32 %v5599_v11, 0.0  ;;  %v10522_v27 = vld [vmem:[#allocation53_spill] sm:$0xff]  ;;  %v5674_v48 = vmax.f32 %v5597_v36, 0.0  ;;  %v4361_v58 = vld [vmem:[%s10285_s0 + $0x165] sm:$0xff] }
 0x427   :  { %v2993_v16 = vadd.f32 %v10523_v12, %v10522_v27  ;;  %v3726_v52 = vld [vmem:[%s10285_s0 + $0x174] sm:$0xff] }
 0x428   :  { %5771 = vmatpush.msrb.mxu1 %v5682_v62  ;;  %v4076_v50 = vpop.f32.mrf.mxu2  ;;  %v4707_v7 = vpop.f32.mrf.mxu3  ;;  %v3629_v1 = vadd.f32 %v3442_v10, %v2992_v45  ;;  %v4993_v10 = vld [vmem:[%s10285_s0 + $0x13e] sm:$0xff] }
 0x429   :  { %v4265_v31 = vadd.f32 %v4076_v50, %v3628_v13  ;;  %v9186_v38 = vadd.f32 %v4707_v7, %v4263_v40  ;;  %v3445_v4 = vpop.f32.mrf.mxu1  ;;  %v9188_v18 = vpop.f32.mrf.mxu0  ;;  %v10514_v40 = vld [vmem:[#allocation33_spill] sm:$0xff]  ;;  %v4994_v50 = vld [vmem:[%s10285_s0 + $0x146] sm:$0xff] }
 0x42a   :  { %5772 = vmatpush.msrb.mxu1 %v5681_v8  ;;  %v5519_v5 = vadd.f32 %v10515_v41, %v10514_v40  ;;  %v3630_v24 = vadd.f32 %v3445_v4, %v2993_v16  ;;  %v3724_v7 = vld [vmem:[%s10285_s0 + $0x164] sm:$0xff]  ;;  %v4359_v8 = vld [vmem:[%s10285_s0 + $0x155] sm:$0xff] }
 0x42c   :  { %5773 = vmatpush.msrb.mxu1 %v5680_v59  ;;  %6555 = vmatmul.msk.f32.gmra.mxu0 %vm170_vm1, %v4992_v2  ;;  %v5598_v28 = vadd.f32 %v9091_v33, %v5519_v5  ;;  %v3725_v59 = vld [vmem:[%s10285_s0 + $0x16c] sm:$0xff] }
 0x42d   :  { %6326 = vmatmul.msk.f32.gmra.mxu1 %vm170_vm1, %v3721_v37  ;;  %6403 = vmatmul.msk.f32.gmra.mxu2 %vm170_vm1, %v3722_v6 }
 0x42e   :  { %6479 = vmatmul.msk.f32.gmra.mxu3 %vm170_vm1, %v4357_v47  ;;  %5774 = vmatpush.msrb.mxu1 %v5679_v30  ;;  %v5675_v14 = vmax.f32 %v5598_v28, 0.0  ;;  %v4996_v30 = vld [vmem:[%s10285_s0 + $0x156] sm:$0xff] }
 0x430   :  { %5775 = vmatpush.msrb.mxu1 %v5678_v61  ;;  %v4079_v23 = vpop.f32.mrf.mxu2  ;;  %v4710_v43 = vpop.f32.mrf.mxu3  ;;  %v4997_v61 = vld [vmem:[%s10285_s0 + $0x15e] sm:$0xff] }
 0x431   :  { %v4266_v20 = vadd.f32 %v4079_v23, %v3629_v1  ;;  %v9218_v42 = vadd.f32 %v4710_v43, %v9152_v0  ;;  %v3448_v39 = vpop.f32.mrf.mxu1  ;;  %v9220_v19 = vpop.f32.mrf.mxu0  ;;  %v4358_v0 = vld [vmem:[%s10285_s0 + $0x14d] sm:$0xff]  ;;  %v3727_v1 = vld [vmem:[%s10285_s0 + $0x17c] sm:$0xff] }
 0x432   :  { %5776 = vmatpush.msrb.mxu1 %v5677_v9  ;;  %v3631_v37 = vadd.f32 %v3448_v39, %v2994_v63  ;;  %v4998_v43 = vld [vmem:[%s10285_s0 + $0x166] sm:$0xff]  ;;  %v4363_v39 = vld [vmem:[%s10285_s0 + $0x175] sm:$0xff] }
 0x434   :  { %5777 = vmatpush.msrb.mxu1 %v5676_v35  ;;  %6556 = vmatmul.msk.f32.gmra.mxu0 %vm170_vm1, %v4993_v10 }
 0x435   :  { %6327 = vmatmul.msk.f32.gmra.mxu1 %vm170_vm1, %v3722_v6  ;;  %6404 = vmatmul.msk.f32.gmra.mxu2 %vm170_vm1, %v3723_v56  ;;  %v4360_v6 = vld [vmem:[%s10285_s0 + $0x15d] sm:$0xff] }
 0x436   :  { %6480 = vmatmul.msk.f32.gmra.mxu3 %vm170_vm1, %v4358_v0  ;;  %5778 = vmatpush.msrb.mxu1 %v5675_v14  ;;  %v3729_v0 = vld [vmem:[%s10285_s0 + $0x18c] sm:$0xff]  ;;  %v4364_v14 = vld [vmem:[%s10285_s0 + $0x17d] sm:$0xff] }
 0x438   :  { %5779 = vmatpush.msrb.mxu1 %v5674_v48  ;;  %v4082_v62 = vpop.f32.mrf.mxu2  ;;  %v4713_v13 = vpop.f32.mrf.mxu3 }
 0x439   :  { %v4267_v53 = vadd.f32 %v4082_v62, %v3630_v24  ;;  %v9238_v34 = vadd.f32 %v4713_v13, %v4265_v31  ;;  %v9240_v25 = vpop.f32.mrf.mxu1  ;;  %v9242_v26 = vpop.f32.mrf.mxu0  ;;  %v5000_v24 = vld [vmem:[%s10285_s0 + $0x176] sm:$0xff]  ;;  %v4365_v13 = vld [vmem:[%s10285_s0 + $0x185] sm:$0xff] }
 0x43a   :  { %v3730_v62 = vld [vmem:[%s10285_s0 + $0x194] sm:$0xff] }
 0x43c   :  { %6557 = vmatmul.msk.f32.gmra.mxu0 %vm170_vm1, %v4994_v50 }
 0x43d   :  { %6328 = vmatmul.msk.f32.gmra.mxu1 %vm170_vm1, %v3723_v56  ;;  %6405 = vmatmul.msk.f32.gmra.mxu2 %vm170_vm1, %v3724_v7  ;;  %v4999_v56 = vld [vmem:[%s10285_s0 + $0x16e] sm:$0xff] }
 0x43e   :  { %6481 = vmatmul.msk.f32.gmra.mxu3 %vm170_vm1, %v4359_v8 }
 0x440   :  { %v4085_v31 = vpop.f32.mrf.mxu2  ;;  %v4716_v4 = vpop.f32.mrf.mxu3 }
 0x441   :  { %v4268_v2 = vadd.f32 %v4085_v31, %v3631_v37  ;;  %v9257_v44 = vadd.f32 %v4716_v4, %v4266_v20  ;;  %v9259_v51 = vpop.f32.mrf.mxu1  ;;  %v9261_v54 = vpop.f32.mrf.mxu0  ;;  %v3728_v20 = vld [vmem:[%s10285_s0 + $0x184] sm:$0xff]  ;;  %v3731_v4 = vld [vmem:[%s10285_s0 + $0x19c] sm:$0xff] }
 0x442   :  { %v5001_v31 = vld [vmem:[%s10285_s0 + $0x17e] sm:$0xff] }
 0x444   :  { %6558 = vmatmul.msk.f32.gmra.mxu0 %vm170_vm1, %v4995_v57 }
 0x445   :  { %6329 = vmatmul.msk.f32.gmra.mxu1 %vm170_vm1, %v3724_v7  ;;  %6406 = vmatmul.msk.f32.gmra.mxu2 %vm170_vm1, %v3725_v59 }
 0x446   :  { %6482 = vmatmul.msk.f32.gmra.mxu3 %vm170_vm1, %v4360_v6 }
 0x448   :  { %v9276_v47 = vpop.f32.mrf.mxu2  ;;  %v4719_v40 = vpop.f32.mrf.mxu3 }
 0x449   :  { %v9278_v41 = vadd.f32 %v4719_v40, %v4267_v53  ;;  %v9280_v5 = vpop.f32.mrf.mxu1  ;;  %v9282_v46 = vpop.f32.mrf.mxu0 }
 0x44c   :  { %6559 = vmatmul.msk.f32.gmra.mxu0 %vm170_vm1, %v4996_v30  ;;  %v5002_v30 = vld [vmem:[%s10285_s0 + $0x186] sm:$0xff] }
 0x44d   :  { %6330 = vmatmul.msk.f32.gmra.mxu1 %vm170_vm1, %v3725_v59  ;;  %6407 = vmatmul.msk.f32.gmra.mxu2 %vm170_vm1, %v3726_v52 }
 0x44e   :  { %6483 = vmatmul.msk.f32.gmra.mxu3 %vm170_vm1, %v4361_v58  ;;  %v4367_v58 = vld [vmem:[%s10285_s0 + $0x195] sm:$0xff] }
 0x450   :  { %v9297_v45 = vpop.f32.mrf.mxu2  ;;  %v4722_v55 = vpop.f32.mrf.mxu3 }
 0x451   :  { %v4905_v32 = vadd.f32 %v4722_v55, %v4268_v2  ;;  %v9299_v15 = vpop.f32.mrf.mxu1  ;;  %v9301_v11 = vpop.f32.mrf.mxu0  ;;  %v4366_v2 = vld [vmem:[%s10285_s0 + $0x18d] sm:$0xff] }
 0x452   :  { %v10524_v55 = vld [vmem:[#allocation71_spill] sm:$0xff] }
 0x454   :  { %6560 = vmatmul.msk.f32.gmra.mxu0 %vm170_vm1, %v4997_v61 }
 0x455   :  { %6331 = vmatmul.msk.f32.gmra.mxu1 %vm170_vm1, %v3726_v52  ;;  %6408 = vmatmul.msk.f32.gmra.mxu2 %vm170_vm1, %v3727_v1  ;;  %v3732_v52 = vld [vmem:[%s10285_s0 + $0x1a4] sm:$0xff] }
 0x456   :  { %6484 = vmatmul.msk.f32.gmra.mxu3 %vm170_vm1, %v4362_v3 }
 0x458   :  { %v9316_v17 = vpop.f32.mrf.mxu2  ;;  %v9318_v63 = vpop.f32.mrf.mxu3 }
 0x459   :  { %v9320_v28 = vpop.f32.mrf.mxu1  ;;  %v5359_v23 = vpop.f32.mrf.mxu0 }
 0x45a   :  { %v9325_v9 = vadd.f32 %v5359_v23, %v4905_v32  ;;  %v10525_v32 = vld [vmem:[#allocation74_spill] sm:$0xff] }
 0x45b   :  { %v3002_v61 = vadd.f32 %v10525_v32, %v10524_v55 }
 0x45c   :  { %6561 = vmatmul.msk.f32.gmra.mxu0 %vm170_vm1, %v4998_v43 }
 0x45d   :  { %6332 = vmatmul.msk.f32.gmra.mxu1 %vm170_vm1, %v3727_v1  ;;  %6409 = vmatmul.msk.f32.gmra.mxu2 %vm170_vm1, %v3728_v20 }
 0x45e   :  { %6485 = vmatmul.msk.f32.gmra.mxu3 %vm170_vm1, %v4363_v39 }
 0x460   :  { %v9337_v10 = vpop.f32.mrf.mxu2  ;;  %v9339_v36 = vpop.f32.mrf.mxu3 }
 0x461   :  { %v9341_v37 = vpop.f32.mrf.mxu1  ;;  %v9343_v35 = vpop.f32.mrf.mxu0 }
 0x464   :  { %6562 = vmatmul.msk.f32.gmra.mxu0 %vm170_vm1, %v4999_v56  ;;  %v5003_v56 = vld [vmem:[%s10285_s0 + $0x18e] sm:$0xff] }
 0x465   :  { %6333 = vmatmul.msk.f32.gmra.mxu1 %vm170_vm1, %v3728_v20  ;;  %6410 = vmatmul.msk.f32.gmra.mxu2 %vm170_vm1, %v3729_v0 }
 0x466   :  { %6486 = vmatmul.msk.f32.gmra.mxu3 %vm170_vm1, %v4364_v14  ;;  %v4368_v14 = vld [vmem:[%s10285_s0 + $0x19d] sm:$0xff] }
 0x468   :  { %v9358_v27 = vpop.f32.mrf.mxu2  ;;  %v9360_v12 = vpop.f32.mrf.mxu3 }
 0x469   :  { %v3469_v16 = vpop.f32.mrf.mxu1  ;;  %v9362_v48 = vpop.f32.mrf.mxu0 }
 0x46c   :  { %6563 = vmatmul.msk.f32.gmra.mxu0 %vm170_vm1, %v5000_v24  ;;  %v10526_v24 = vld [vmem:[#allocation73_spill] sm:$0xff] }
 0x46d   :  { %6334 = vmatmul.msk.f32.gmra.mxu1 %vm170_vm1, %v3729_v0  ;;  %6411 = vmatmul.msk.f32.gmra.mxu2 %vm170_vm1, %v3730_v62  ;;  %v3733_v0 = vld [vmem:[%s10285_s0 + $0x1ac] sm:$0xff] }
 0x46e   :  { %6487 = vmatmul.msk.f32.gmra.mxu3 %vm170_vm1, %v4365_v13 }
 0x470   :  { %v4103_v53 = vpop.f32.mrf.mxu2  ;;  %v9377_v50 = vpop.f32.mrf.mxu3 }
 0x471   :  { %v3472_v7 = vpop.f32.mrf.mxu1  ;;  %v9379_v8 = vpop.f32.mrf.mxu0 }
 0x472   :  { %v3639_v1 = vadd.f32 %v3472_v7, %v3002_v61 }
 0x474   :  { %6564 = vmatmul.msk.f32.gmra.mxu0 %vm170_vm1, %v5001_v31  ;;  %v10528_v31 = vld [vmem:[#allocation67_spill] sm:$0xff] }
 0x475   :  { %6335 = vmatmul.msk.f32.gmra.mxu1 %vm170_vm1, %v3730_v62  ;;  %6412 = vmatmul.msk.f32.gmra.mxu2 %vm170_vm1, %v3731_v4  ;;  %v10527_v62 = vld [vmem:[#allocation76_spill] sm:$0xff] }
 0x476   :  { %6488 = vmatmul.msk.f32.gmra.mxu3 %vm170_vm1, %v4366_v2  ;;  %v3003_v13 = vadd.f32 %v10527_v62, %v10526_v24  ;;  %v10532_v24 = vld [vmem:[#allocation69_spill] sm:$0xff]  ;;  %v10533_v62 = vld [vmem:[#allocation72_spill] sm:$0xff] }
 0x478   :  { %v4106_v57 = vpop.f32.mrf.mxu2  ;;  %v4737_v59 = vpop.f32.mrf.mxu3 }
 0x479   :  { %v3475_v6 = vpop.f32.mrf.mxu1  ;;  %v9394_v40 = vpop.f32.mrf.mxu0 }
 0x47a   :  { %v3640_v7 = vadd.f32 %v3475_v6, %v3003_v13  ;;  %v3734_v13 = vld [vmem:[%s10285_s0 + $0x1b4] sm:$0xff] }
 0x47c   :  { %6565 = vmatmul.msk.f32.gmra.mxu0 %vm170_vm1, %v5002_v30 }
 0x47d   :  { %6336 = vmatmul.msk.f32.gmra.mxu1 %vm170_vm1, %v3731_v4  ;;  %6413 = vmatmul.msk.f32.gmra.mxu2 %vm170_vm1, %v3732_v52  ;;  %v10529_v4 = vld [vmem:[#allocation70_spill] sm:$0xff] }
 0x47e   :  { %6489 = vmatmul.msk.f32.gmra.mxu3 %vm170_vm1, %v4367_v58  ;;  %v3000_v2 = vadd.f32 %v10529_v4, %v10528_v31  ;;  %v10534_v31 = vld [vmem:[#allocation63_spill] sm:$0xff]  ;;  %v10535_v4 = vld [vmem:[#allocation66_spill] sm:$0xff] }
 0x480   :  { %v4109_v3 = vpop.f32.mrf.mxu2  ;;  %v4740_v23 = vpop.f32.mrf.mxu3  ;;  %v3637_v6 = vadd.f32 %v9341_v37, %v3000_v2  ;;  %v10538_v2 = vld [vmem:[#allocation75_spill] sm:$0xff] }
 0x481   :  { %v4276_v43 = vadd.f32 %v4109_v3, %v3639_v1  ;;  %v3478_v20 = vpop.f32.mrf.mxu1  ;;  %v5374_v39 = vpop.f32.mrf.mxu0  ;;  %v5004_v1 = vld [vmem:[%s10285_s0 + $0x196] sm:$0xff] }
 0x482   :  { %v10530_v3 = vld [vmem:[#allocation65_spill] sm:$0xff] }
 0x484   :  { %6566 = vmatmul.msk.f32.gmra.mxu0 %vm170_vm1, %v5003_v56 }
 0x485   :  { %6337 = vmatmul.msk.f32.gmra.mxu1 %vm170_vm1, %v3732_v52  ;;  %6414 = vmatmul.msk.f32.gmra.mxu2 %vm170_vm1, %v3733_v0  ;;  %v10531_v52 = vld [vmem:[#allocation68_spill] sm:$0xff] }
 0x486   :  { %6490 = vmatmul.msk.f32.gmra.mxu3 %vm170_vm1, %v4368_v14  ;;  %v2999_v56 = vadd.f32 %v10531_v52, %v10530_v3  ;;  %v3001_v14 = vadd.f32 %v10533_v62, %v10532_v24  ;;  %v4274_v3 = vadd.f32 %v4103_v53, %v3637_v6  ;;  %v10536_v52 = vld [vmem:[#allocation61_spill] sm:$0xff]  ;;  %v10537_v24 = vld [vmem:[#allocation64_spill] sm:$0xff]  ;;  %v10539_v62 = vld [vmem:[#allocation78_spill] sm:$0xff] }
 0x487   :  { %v2997_v37 = vadd.f32 %v10537_v24, %v10536_v52  ;;  %v3004_v29 = vadd.f32 %v10539_v62, %v10538_v2  ;;  %v10541_v53 = vld [vmem:[#allocation62_spill] sm:$0xff] }
 0x488   :  { %v4112_v30 = vpop.f32.mrf.mxu2  ;;  %v4743_v58 = vpop.f32.mrf.mxu3  ;;  %v3636_v21 = vadd.f32 %v9320_v28, %v2999_v56  ;;  %v3638_v60 = vadd.f32 %v3469_v16, %v3001_v14  ;;  %v4911_v28 = vadd.f32 %v4740_v23, %v4274_v3  ;;  %v10540_v16 = vld [vmem:[#allocation59_spill] sm:$0xff]  ;;  %v10545_v3 = vld [vmem:[#allocation77_spill] sm:$0xff] }
 0x489   :  { %v9428_v55 = vadd.f32 %v4112_v30, %v3640_v7  ;;  %v3481_v32 = vpop.f32.mrf.mxu1  ;;  %v5377_v61 = vpop.f32.mrf.mxu0  ;;  %v4369_v7 = vld [vmem:[%s10285_s0 + $0x1a5] sm:$0xff]  ;;  %v2998_v30 = vadd.f32 %v10535_v4, %v10534_v31  ;;  %v3634_v56 = vadd.f32 %v9280_v5, %v2997_v37  ;;  %v3641_v14 = vadd.f32 %v3478_v20, %v3004_v29  ;;  %v10546_v37 = vld [vmem:[#allocation80_spill] sm:$0xff] }
 0x48a   :  { %v4273_v31 = vadd.f32 %v9358_v27, %v3636_v21  ;;  %v4275_v4 = vadd.f32 %v4106_v57, %v3638_v60  ;;  %v5548_v24 = vadd.f32 %v5377_v61, %v4911_v28 }
 0x48b   :  { %v3635_v49 = vadd.f32 %v9299_v15, %v2998_v30  ;;  %v10542_v15 = vld [vmem:[#allocation57_spill] sm:$0xff]  ;;  %v10543_v30 = vld [vmem:[#allocation60_spill] sm:$0xff]  ;;  %v4271_v29 = vadd.f32 %v9316_v17, %v3634_v56 }
 0x48c   :  { %6567 = vmatmul.msk.f32.gmra.mxu0 %vm170_vm1, %v5004_v1  ;;  %v2996_v1 = vadd.f32 %v10541_v53, %v10540_v16  ;;  %v4910_v52 = vadd.f32 %v4737_v59, %v4273_v31  ;;  %v2995_v21 = vadd.f32 %v10543_v30, %v10542_v15  ;;  %v3005_v31 = vadd.f32 %v10546_v37, %v10545_v3 }
 0x48d   :  { %6338 = vmatmul.msk.f32.gmra.mxu1 %vm170_vm1, %v3733_v0  ;;  %6415 = vmatmul.msk.f32.gmra.mxu2 %vm170_vm1, %v3734_v13  ;;  %v4272_v6 = vadd.f32 %v9337_v10, %v3635_v49  ;;  %v4912_v0 = vadd.f32 %v4743_v58, %v4275_v4  ;;  %v5005_v49 = vld [vmem:[%s10285_s0 + $0x19e] sm:$0xff]  ;;  %v4370_v58 = vld [vmem:[%s10285_s0 + $0x1ad] sm:$0xff]  ;;  %v4908_v61 = vadd.f32 %v9360_v12, %v4271_v29 }
 0x48e   :  { %6491 = vmatmul.msk.f32.gmra.mxu3 %vm170_vm1, %v4369_v7  ;;  %v3633_v60 = vadd.f32 %v9259_v51, %v2996_v1  ;;  %v5547_v10 = vadd.f32 %v5374_v39, %v4910_v52  ;;  %v3735_v51 = vld [vmem:[%s10285_s0 + $0x1bc] sm:$0xff]  ;;  %v3632_v20 = vadd.f32 %v9240_v25, %v2995_v21  ;;  %v3642_v28 = vadd.f32 %v3481_v32, %v3005_v31  ;;  %v3736_v52 = vld [vmem:[%s10285_s0 + $0x1c4] sm:$0xff] }
 0x48f   :  { %v4909_v5 = vadd.f32 %v9377_v50, %v4272_v6  ;;  %v5627_v50 = vadd.f32 %v9091_v33, %v5548_v24  ;;  %v5545_v12 = vadd.f32 %v9379_v8, %v4908_v61  ;;  %v5541_v30 = vadd.f32 %v9301_v11, %v9278_v41 }
 0x490   :  { %v4115_v2 = vpop.f32.mrf.mxu2  ;;  %v4746_v62 = vpop.f32.mrf.mxu3  ;;  %v4269_v25 = vadd.f32 %v9276_v47, %v3632_v20  ;;  %v5621_v29 = vadd.f32 %v9091_v33, %v9325_v9  ;;  %v3737_v20 = vld [vmem:[%s10285_s0 + $0x1cc] sm:$0xff]  ;;  %v5536_v37 = vadd.f32 %v9188_v18, %v9155_v22 }
 0x491   :  { %v9464_v27 = vadd.f32 %v4115_v2, %v3641_v14  ;;  %v9466_v57 = vadd.f32 %v4746_v62, %v4276_v43  ;;  %v3484_v23 = vpop.f32.mrf.mxu1  ;;  %v5380_v7 = vpop.f32.mrf.mxu0  ;;  %v4270_v43 = vadd.f32 %v9297_v45, %v3633_v60  ;;  %v5546_v17 = vadd.f32 %v9394_v40, %v4909_v5  ;;  %v10549_v62 = vld [vmem:[#allocation79_spill] sm:$0xff] }
 0x492   :  { %v5549_v59 = vadd.f32 %v5380_v7, %v4912_v0  ;;  %v5626_v40 = vadd.f32 %v9091_v33, %v5547_v10  ;;  %v4906_v16 = vadd.f32 %v9318_v63, %v4269_v25  ;;  %v5704_v56 = vmax.f32 %v5627_v50, 0.0  ;;  %v5006_v63 = vld [vmem:[%s10285_s0 + $0x1a6] sm:$0xff] }
 0x493   :  { %10544 = vst [vmem:[#allocation46_spill] sm:$0xff] %v9466_v57  ;;  %v4907_v45 = vadd.f32 %v9339_v36, %v4270_v43  ;;  %v5625_v47 = vadd.f32 %v9091_v33, %v5546_v17  ;;  %v5624_v32 = vadd.f32 %v9091_v33, %v5545_v12  ;;  %v10553_v17 = vld [vmem:[#allocation84_spill] sm:$0xff] }
 0x494   :  { %v5628_v39 = vadd.f32 %v9091_v33, %v5549_v59  ;;  %6568 = vmatmul.msk.f32.gmra.mxu0 %vm170_vm1, %v5005_v49  ;;  %v5703_v0 = vmax.f32 %v5626_v40, 0.0  ;;  %v5540_v49 = vadd.f32 %v9282_v46, %v9257_v44  ;;  %v5539_v44 = vadd.f32 %v9261_v54, %v9238_v34  ;;  %v10552_v54 = vld [vmem:[#allocation81_spill] sm:$0xff] }
 0x495   :  { %6339 = vmatmul.msk.f32.gmra.mxu1 %vm170_vm1, %v3734_v13  ;;  %6416 = vmatmul.msk.f32.gmra.mxu2 %vm170_vm1, %v3735_v51  ;;  %v5544_v53 = vadd.f32 %v9362_v48, %v4907_v45  ;;  %v5543_v48 = vadd.f32 %v9343_v35, %v4906_v16  ;;  %v5702_v2 = vmax.f32 %v5625_v47, 0.0  ;;  %v10550_v35 = vld [vmem:[#allocation82_spill] sm:$0xff]  ;;  %v5701_v60 = vmax.f32 %v5624_v32, 0.0  ;;  %v3738_v47 = vld [vmem:[%s10285_s0 + $0x1d4] sm:$0xff]  ;;  %v10558_v32 = vld [vmem:[#allocation83_spill] sm:$0xff] }
 0x496   :  { %v5705_v4 = vmax.f32 %v5628_v39, 0.0  ;;  %6492 = vmatmul.msk.f32.gmra.mxu3 %vm170_vm1, %v4370_v58  ;;  %v3006_v15 = vadd.f32 %v10550_v35, %v10549_v62  ;;  %v5620_v46 = vadd.f32 %v9091_v33, %v5541_v30  ;;  %v5538_v58 = vadd.f32 %v9242_v26, %v9218_v42 }
 0x497   :  { %v5623_v24 = vadd.f32 %v9091_v33, %v5544_v53  ;;  %v5622_v21 = vadd.f32 %v9091_v33, %v5543_v48  ;;  %v5619_v61 = vadd.f32 %v9091_v33, %v5540_v49  ;;  %v5698_v34 = vmax.f32 %v5621_v29, 0.0 }
 0x498   :  { %v4118_v1 = vpop.f32.mrf.mxu2  ;;  %v4749_v13 = vpop.f32.mrf.mxu3  ;;  %5784 = vmatpush.msrb.mxu2 %v5705_v4  ;;  %v3643_v7 = vadd.f32 %v3484_v23, %v3006_v15  ;;  %v5007_v23 = vld [vmem:[%s10285_s0 + $0x1ae] sm:$0xff]  ;;  %v3007_v50 = vadd.f32 %v10553_v17, %v10552_v54  ;;  %v5537_v39 = vadd.f32 %v9220_v19, %v9186_v38  ;;  %v5618_v3 = vadd.f32 %v9091_v33, %v5539_v44  ;;  %v5008_v38 = vld [vmem:[%s10285_s0 + $0x1b6] sm:$0xff]  ;;  %v10554_v19 = vld [vmem:[#allocation38_spill] sm:$0xff] }
 0x499   :  { %v9498_v14 = vadd.f32 %v4118_v1, %v3642_v28  ;;  %v9501_v36 = vadd.f32 %v4749_v13, %v9428_v55  ;;  %v3487_v8 = vpop.f32.mrf.mxu1  ;;  %v9503_v6 = vpop.f32.mrf.mxu0  ;;  %v4371_v55 = vld [vmem:[%s10285_s0 + $0x1b5] sm:$0xff]  ;;  %v5700_v59 = vmax.f32 %v5623_v24, 0.0  ;;  %v5699_v43 = vmax.f32 %v5622_v21, 0.0  ;;  %v4373_v13 = vld [vmem:[%s10285_s0 + $0x1c5] sm:$0xff] }
 0x49a   :  { %10548 = vst [vmem:[#allocation42_spill] sm:$0xff] %v9503_v6  ;;  %5785 = vmatpush.msrb.mxu2 %v5704_v56  ;;  %v5697_v42 = vmax.f32 %v5620_v46, 0.0  ;;  %v3644_v26 = vadd.f32 %v3487_v8, %v3007_v50  ;;  %v5617_v31 = vadd.f32 %v9091_v33, %v5538_v58  ;;  %v5696_v45 = vmax.f32 %v5619_v61, 0.0  ;;  %v10555_v28 = vld [vmem:[#allocation44_spill] sm:$0xff]  ;;  %v10556_v56 = vld [vmem:[#allocation37_spill] sm:$0xff]  ;;  %v10557_v8 = vld [vmem:[#allocation47_spill] sm:$0xff] }
 0x49b   :  { %10547 = vst [vmem:[#allocation48_spill] sm:$0xff] %v9501_v36  ;;  %v5535_v16 = vadd.f32 %v10555_v28, %v10554_v19  ;;  %v5616_v53 = vadd.f32 %v9091_v33, %v5537_v39  ;;  %v5695_v1 = vmax.f32 %v5618_v3, 0.0  ;;  %v5615_v48 = vadd.f32 %v9091_v33, %v5536_v37  ;;  %v10561_v44 = vld [vmem:[#allocation88_spill] sm:$0xff]  ;;  %v5010_v58 = vld [vmem:[%s10285_s0 + $0x1c6] sm:$0xff]  ;;  %v4376_v19 = vld [vmem:[%s10285_s0 + $0x1dd] sm:$0xff] }
 0x49c   :  { %6569 = vmatmul.msk.f32.gmra.mxu0 %vm170_vm1, %v5006_v63  ;;  %5786 = vmatpush.msrb.mxu2 %v5703_v0  ;;  %v5534_v63 = vadd.f32 %v10557_v8, %v10556_v56  ;;  %v3740_v54 = vld [vmem:[%s10285_s0 + $0x1e4] sm:$0xff]  ;;  %v4375_v17 = vld [vmem:[%s10285_s0 + $0x1d5] sm:$0xff] }
 0x49d   :  { %6340 = vmatmul.msk.f32.gmra.mxu1 %vm170_vm1, %v3735_v51  ;;  %6417 = vmatmul.msk.f32.gmra.mxu2 %vm170_vm1, %v3736_v52  ;;  %v5693_v24 = vmax.f32 %v5616_v53, 0.0  ;;  %v5692_v15 = vmax.f32 %v5615_v48, 0.0  ;;  %v10562_v50 = vld [vmem:[#allocation87_spill] sm:$0xff]  ;;  %v10563_v39 = vld [vmem:[#allocation90_spill] sm:$0xff] }
 0x49e   :  { %6493 = vmatmul.msk.f32.gmra.mxu3 %vm170_vm1, %v4371_v55  ;;  %5787 = vmatpush.msrb.mxu2 %v5702_v2  ;;  %v5614_v55 = vadd.f32 %v9091_v33, %v5535_v16  ;;  %v5613_v62 = vadd.f32 %v9091_v33, %v5534_v63  ;;  %v3739_v33 = vld [vmem:[%s10285_s0 + $0x1dc] sm:$0xff]  ;;  %v3010_v3 = vadd.f32 %v10563_v39, %v10562_v50  ;;  %v4377_v56 = vld [vmem:[%s10285_s0 + $0x1e5] sm:$0xff] }
 0x49f   :  { %v5017_v39 = vld [vmem:[%s10285_s0 + $0x1fe] sm:$0xff] }
 0x4a0   :  { %v4121_v5 = vpop.f32.mrf.mxu2  ;;  %v4752_v10 = vpop.f32.mrf.mxu3  ;;  %5788 = vmatpush.msrb.mxu2 %v5701_v60 }
 0x4a1   :  { %v9530_v51 = vadd.f32 %v4121_v5, %v3643_v7  ;;  %v9533_v41 = vadd.f32 %v4752_v10, %v9464_v27  ;;  %v9535_v11 = vpop.f32.mrf.mxu0  ;;  %v4372_v27 = vld [vmem:[%s10285_s0 + $0x1bd] sm:$0xff]  ;;  %v5691_v5 = vmax.f32 %v5614_v55, 0.0  ;;  %v4374_v10 = vld [vmem:[%s10285_s0 + $0x1cd] sm:$0xff] }
 0x4a2   :  { %10551 = vst [vmem:[#allocation45_spill] sm:$0xff] %v9535_v11  ;;  %v3490_v9 = vpop.f32.mrf.mxu1  ;;  %5789 = vmatpush.msrb.mxu2 %v5700_v59  ;;  %v5009_v7 = vld [vmem:[%s10285_s0 + $0x1be] sm:$0xff]  ;;  %v5690_v59 = vmax.f32 %v5613_v62, 0.0  ;;  %v4378_v55 = vld [vmem:[%s10285_s0 + $0x1ed] sm:$0xff] }
 0x4a4   :  { %6570 = vmatmul.msk.f32.gmra.mxu0 %vm170_vm1, %v5007_v23  ;;  %5790 = vmatpush.msrb.mxu2 %v5699_v43  ;;  %v10560_v23 = vld [vmem:[#allocation85_spill] sm:$0xff] }
 0x4a5   :  { %6341 = vmatmul.msk.f32.gmra.mxu1 %vm170_vm1, %v3736_v52  ;;  %6418 = vmatmul.msk.f32.gmra.mxu2 %vm170_vm1, %v3737_v20  ;;  %v10559_v52 = vld [vmem:[#allocation86_spill] sm:$0xff]  ;;  %v3009_v46 = vadd.f32 %v10561_v44, %v10560_v23 }
 0x4a6   :  { %6494 = vmatmul.msk.f32.gmra.mxu3 %vm170_vm1, %v4372_v27  ;;  %5791 = vmatpush.msrb.mxu2 %v5698_v34  ;;  %v3008_v0 = vadd.f32 %v10559_v52, %v10558_v32  ;;  %v4380_v23 = vld [vmem:[%s10285_s0 + $0x1fd] sm:$0xff] }
 0x4a8   :  { %v4124_v25 = vpop.f32.mrf.mxu2  ;;  %5792 = vmatpush.msrb.mxu2 %v5697_v42  ;;  %v3645_v2 = vadd.f32 %v3490_v9, %v3008_v0  ;;  %v3743_v0 = vld [vmem:[%s10285_s0 + $0x1fc] sm:$0xff] }
 0x4a9   :  { %v4281_v12 = vadd.f32 %v4124_v25, %v3644_v26  ;;  %v4755_v40 = vpop.f32.mrf.mxu3  ;;  %v9564_v4 = vpop.f32.mrf.mxu0 }
 0x4aa   :  { %v9573_v22 = vadd.f32 %v4755_v40, %v9498_v14  ;;  %v3493_v18 = vpop.f32.mrf.mxu1  ;;  %5793 = vmatpush.msrb.mxu2 %v5696_v45  ;;  %v5694_v14 = vmax.f32 %v5617_v31, 0.0  ;;  %v5011_v45 = vld [vmem:[%s10285_s0 + $0x1ce] sm:$0xff] }
 0x4ac   :  { %6571 = vmatmul.msk.f32.gmra.mxu0 %vm170_vm1, %v5008_v38  ;;  %5794 = vmatpush.msrb.mxu2 %v5695_v1  ;;  %v3741_v38 = vld [vmem:[%s10285_s0 + $0x1ec] sm:$0xff] }
 0x4ad   :  { %6342 = vmatmul.msk.f32.gmra.mxu1 %vm170_vm1, %v3737_v20  ;;  %6419 = vmatmul.msk.f32.gmra.mxu2 %vm170_vm1, %v3738_v47 }
 0x4ae   :  { %6495 = vmatmul.msk.f32.gmra.mxu3 %vm170_vm1, %v4373_v13  ;;  %5795 = vmatpush.msrb.mxu2 %v5694_v14  ;;  %v3742_v13 = vld [vmem:[%s10285_s0 + $0x1f4] sm:$0xff]  ;;  %v5013_v14 = vld [vmem:[%s10285_s0 + $0x1de] sm:$0xff] }
 0x4b0   :  { %v4127_v35 = vpop.f32.mrf.mxu2  ;;  %5796 = vmatpush.msrb.mxu2 %v5693_v24 }
 0x4b1   :  { %v4282_v30 = vadd.f32 %v4127_v35, %v3645_v2  ;;  %v4758_v21 = vpop.f32.mrf.mxu3  ;;  %v9592_v60 = vpop.f32.mrf.mxu0  ;;  %v5014_v35 = vld [vmem:[%s10285_s0 + $0x1e6] sm:$0xff] }
 0x4b2   :  { %v9598_v49 = vadd.f32 %v4758_v21, %v9530_v51  ;;  %v3496_v29 = vpop.f32.mrf.mxu1  ;;  %5797 = vmatpush.msrb.mxu2 %v5692_v15  ;;  %v3646_v51 = vadd.f32 %v3493_v18, %v3009_v46  ;;  %v5012_v18 = vld [vmem:[%s10285_s0 + $0x1d6] sm:$0xff] }
 0x4b3   :  { %v3647_v42 = vadd.f32 %v3496_v29, %v3010_v3  ;;  %v4379_v21 = vld [vmem:[%s10285_s0 + $0x1f5] sm:$0xff] }
 0x4b4   :  { %6572 = vmatmul.msk.f32.gmra.mxu0 %vm170_vm1, %v5009_v7  ;;  %5798 = vmatpush.msrb.mxu2 %v5691_v5  ;;  %v5015_v5 = vld [vmem:[%s10285_s0 + $0x1ee] sm:$0xff] }
 0x4b5   :  { %6343 = vmatmul.msk.f32.gmra.mxu1 %vm170_vm1, %v3738_v47  ;;  %6420 = vmatmul.msk.f32.gmra.mxu2 %vm170_vm1, %v3739_v33 }
 0x4b6   :  { %6496 = vmatmul.msk.f32.gmra.mxu3 %vm170_vm1, %v4374_v10  ;;  %5799 = vmatpush.msrb.mxu2 %v5690_v59  ;;  %v3745_v59 = vld [vmem:[%s10285_s0 + $0x20c] sm:$0xff] }
 0x4b8   :  { %v4130_v9 = vpop.f32.mrf.mxu2 }
 0x4b9   :  { %v4283_v20 = vadd.f32 %v4130_v9, %v3646_v51  ;;  %v4761_v43 = vpop.f32.mrf.mxu3  ;;  %v9612_v27 = vpop.f32.mrf.mxu0  ;;  %v5016_v9 = vld [vmem:[%s10285_s0 + $0x1f6] sm:$0xff] }
 0x4ba   :  { %v9617_v61 = vadd.f32 %v4761_v43, %v4281_v12  ;;  %v9619_v34 = vpop.f32.mrf.mxu1  ;;  %v3746_v43 = vld [vmem:[%s10285_s0 + $0x214] sm:$0xff] }
 0x4bc   :  { %6573 = vmatmul.msk.f32.gmra.mxu0 %vm170_vm1, %v5010_v58  ;;  %v4381_v58 = vld [vmem:[%s10285_s0 + $0x205] sm:$0xff] }
 0x4bd   :  { %6344 = vmatmul.msk.f32.gmra.mxu1 %vm170_vm1, %v3739_v33  ;;  %6421 = vmatmul.msk.f32.gmra.mxu2 %vm170_vm1, %v3740_v54 }
 0x4be   :  { %6497 = vmatmul.msk.f32.gmra.mxu3 %vm170_vm1, %v4375_v17 }
 0x4c0   :  { %v4133_v26 = vpop.f32.mrf.mxu2 }
 0x4c1   :  { %v4284_v37 = vadd.f32 %v4133_v26, %v3647_v42  ;;  %v4764_v31 = vpop.f32.mrf.mxu3  ;;  %v9633_v25 = vpop.f32.mrf.mxu0  ;;  %v3747_v42 = vld [vmem:[%s10285_s0 + $0x21c] sm:$0xff]  ;;  %v4382_v26 = vld [vmem:[%s10285_s0 + $0x20d] sm:$0xff] }
 0x4c2   :  { %v9638_v12 = vadd.f32 %v4764_v31, %v4282_v30  ;;  %v9640_v40 = vpop.f32.mrf.mxu1  ;;  %v3744_v30 = vld [vmem:[%s10285_s0 + $0x204] sm:$0xff] }
 0x4c4   :  { %6574 = vmatmul.msk.f32.gmra.mxu0 %vm170_vm1, %v5011_v45 }
 0x4c5   :  { %6345 = vmatmul.msk.f32.gmra.mxu1 %vm170_vm1, %v3740_v54  ;;  %6422 = vmatmul.msk.f32.gmra.mxu2 %vm170_vm1, %v3741_v38 }
 0x4c6   :  { %6498 = vmatmul.msk.f32.gmra.mxu3 %vm170_vm1, %v4376_v19 }
 0x4c8   :  { %v9652_v28 = vpop.f32.mrf.mxu2 }
 0x4c9   :  { %v4767_v16 = vpop.f32.mrf.mxu3  ;;  %v9654_v53 = vpop.f32.mrf.mxu0 }
 0x4ca   :  { %v9659_v47 = vadd.f32 %v4767_v16, %v4283_v20  ;;  %v9661_v1 = vpop.f32.mrf.mxu1  ;;  %v3748_v16 = vld [vmem:[%s10285_s0 + $0x224] sm:$0xff] }
 0x4cc   :  { %6575 = vmatmul.msk.f32.gmra.mxu0 %vm170_vm1, %v5012_v18  ;;  %v4383_v18 = vld [vmem:[%s10285_s0 + $0x215] sm:$0xff] }
 0x4cd   :  { %6346 = vmatmul.msk.f32.gmra.mxu1 %vm170_vm1, %v3741_v38  ;;  %6423 = vmatmul.msk.f32.gmra.mxu2 %vm170_vm1, %v3742_v13  ;;  %v5018_v38 = vld [vmem:[%s10285_s0 + $0x206] sm:$0xff] }
 0x4ce   :  { %6499 = vmatmul.msk.f32.gmra.mxu3 %vm170_vm1, %v4377_v56  ;;  %v10565_v56 = vld [vmem:[#allocation105_spill] sm:$0xff] }
 0x4d0   :  { %v9673_v8 = vpop.f32.mrf.mxu2 }
 0x4d1   :  { %v4770_v63 = vpop.f32.mrf.mxu3  ;;  %v9675_v48 = vpop.f32.mrf.mxu0 }
 0x4d2   :  { %v9680_v32 = vadd.f32 %v4770_v63, %v4284_v37  ;;  %v9682_v52 = vpop.f32.mrf.mxu1 }
 0x4d4   :  { %6576 = vmatmul.msk.f32.gmra.mxu0 %vm170_vm1, %v5013_v14 }
 0x4d5   :  { %6347 = vmatmul.msk.f32.gmra.mxu1 %vm170_vm1, %v3742_v13  ;;  %6424 = vmatmul.msk.f32.gmra.mxu2 %vm170_vm1, %v3743_v0  ;;  %v10564_v13 = vld [vmem:[#allocation103_spill] sm:$0xff] }
 0x4d6   :  { %6500 = vmatmul.msk.f32.gmra.mxu3 %vm170_vm1, %v4378_v55  ;;  %v3018_v63 = vadd.f32 %v10565_v56, %v10564_v13 }
 0x4d8   :  { %v9694_v24 = vpop.f32.mrf.mxu2 }
 0x4d9   :  { %v9696_v2 = vpop.f32.mrf.mxu3  ;;  %v9698_v62 = vpop.f32.mrf.mxu0 }
 0x4da   :  { %v9703_v15 = vpop.f32.mrf.mxu1 }
 0x4dc   :  { %6577 = vmatmul.msk.f32.gmra.mxu0 %vm170_vm1, %v5014_v35 }
 0x4dd   :  { %6348 = vmatmul.msk.f32.gmra.mxu1 %vm170_vm1, %v3743_v0  ;;  %6425 = vmatmul.msk.f32.gmra.mxu2 %vm170_vm1, %v3744_v30 }
 0x4de   :  { %6501 = vmatmul.msk.f32.gmra.mxu3 %vm170_vm1, %v4379_v21  ;;  %v5019_v21 = vld [vmem:[%s10285_s0 + $0x20e] sm:$0xff] }
 0x4e0   :  { %v9715_v7 = vpop.f32.mrf.mxu2 }
 0x4e1   :  { %v9717_v29 = vpop.f32.mrf.mxu3  ;;  %v9719_v33 = vpop.f32.mrf.mxu0 }
 0x4e2   :  { %v9724_v10 = vpop.f32.mrf.mxu1 }
 0x4e4   :  { %6578 = vmatmul.msk.f32.gmra.mxu0 %vm170_vm1, %v5015_v5 }
 0x4e5   :  { %6349 = vmatmul.msk.f32.gmra.mxu1 %vm170_vm1, %v3744_v30  ;;  %6426 = vmatmul.msk.f32.gmra.mxu2 %vm170_vm1, %v3745_v59 }
 0x4e6   :  { %6502 = vmatmul.msk.f32.gmra.mxu3 %vm170_vm1, %v4380_v23  ;;  %v4384_v23 = vld [vmem:[%s10285_s0 + $0x21d] sm:$0xff] }
 0x4e8   :  { %v9736_v44 = vpop.f32.mrf.mxu2 }
 0x4e9   :  { %v9738_v46 = vpop.f32.mrf.mxu3  ;;  %v9740_v51 = vpop.f32.mrf.mxu0 }
 0x4ea   :  { %v3517_v20 = vpop.f32.mrf.mxu1 }
 0x4ec   :  { %6579 = vmatmul.msk.f32.gmra.mxu0 %vm170_vm1, %v5016_v9  ;;  %v10566_v9 = vld [vmem:[#allocation12_spill] sm:$0xff] }
 0x4ed   :  { %6350 = vmatmul.msk.f32.gmra.mxu1 %vm170_vm1, %v3745_v59  ;;  %6427 = vmatmul.msk.f32.gmra.mxu2 %vm170_vm1, %v3746_v43  ;;  %v3749_v59 = vld [vmem:[%s10285_s0 + $0x22c] sm:$0xff] }
 0x4ee   :  { %6503 = vmatmul.msk.f32.gmra.mxu3 %vm170_vm1, %v4381_v58 }
 0x4f0   :  { %v4151_v54 = vpop.f32.mrf.mxu2 }
 0x4f1   :  { %v9755_v17 = vpop.f32.mrf.mxu3  ;;  %v9757_v50 = vpop.f32.mrf.mxu0 }
 0x4f2   :  { %v3520_v3 = vpop.f32.mrf.mxu1 }
 0x4f3   :  { %v3655_v14 = vadd.f32 %v3520_v3, %v3018_v63  ;;  %v10568_v3 = vld [vmem:[#allocation99_spill] sm:$0xff]  ;;  %v5020_v63 = vld [vmem:[%s10285_s0 + $0x216] sm:$0xff] }
 0x4f4   :  { %6580 = vmatmul.msk.f32.gmra.mxu0 %vm170_vm1, %v5017_v39 }
 0x4f5   :  { %6351 = vmatmul.msk.f32.gmra.mxu1 %vm170_vm1, %v3746_v43  ;;  %6428 = vmatmul.msk.f32.gmra.mxu2 %vm170_vm1, %v3747_v42  ;;  %v10567_v43 = vld [vmem:[#allocation106_spill] sm:$0xff] }
 0x4f6   :  { %6504 = vmatmul.msk.f32.gmra.mxu3 %vm170_vm1, %v4382_v26  ;;  %v3019_v58 = vadd.f32 %v10567_v43, %v10566_v9  ;;  %v10573_v9 = vld [vmem:[#allocation104_spill] sm:$0xff] }
 0x4f8   :  { %v4154_v37 = vpop.f32.mrf.mxu2 }
 0x4f9   :  { %v4785_v31 = vpop.f32.mrf.mxu3  ;;  %v9772_v45 = vpop.f32.mrf.mxu0 }
 0x4fa   :  { %v3523_v19 = vpop.f32.mrf.mxu1 }
 0x4fb   :  { %v3656_v39 = vadd.f32 %v3523_v19, %v3019_v58  ;;  %v3750_v58 = vld [vmem:[%s10285_s0 + $0x234] sm:$0xff] }
 0x4fc   :  { %6581 = vmatmul.msk.f32.gmra.mxu0 %vm170_vm1, %v5018_v38 }
 0x4fd   :  { %6352 = vmatmul.msk.f32.gmra.mxu1 %vm170_vm1, %v3747_v42  ;;  %6429 = vmatmul.msk.f32.gmra.mxu2 %vm170_vm1, %v3748_v16  ;;  %v10569_v42 = vld [vmem:[#allocation102_spill] sm:$0xff] }
 0x4fe   :  { %6505 = vmatmul.msk.f32.gmra.mxu3 %vm170_vm1, %v4383_v18  ;;  %v3016_v26 = vadd.f32 %v10569_v42, %v10568_v3 }
 0x500   :  { %v4157_v0 = vpop.f32.mrf.mxu2  ;;  %v3653_v19 = vadd.f32 %v9724_v10, %v3016_v26  ;;  %v10577_v10 = vld [vmem:[#allocation107_spill] sm:$0xff] }
 0x501   :  { %v4292_v55 = vadd.f32 %v4157_v0, %v3655_v14  ;;  %v4788_v35 = vpop.f32.mrf.mxu3  ;;  %v5422_v30 = vpop.f32.mrf.mxu0  ;;  %v10570_v14 = vld [vmem:[#allocation97_spill] sm:$0xff]  ;;  %v10571_v0 = vld [vmem:[#allocation100_spill] sm:$0xff] }
 0x502   :  { %v3526_v5 = vpop.f32.mrf.mxu1 }
 0x504   :  { %6582 = vmatmul.msk.f32.gmra.mxu0 %vm170_vm1, %v5019_v21  ;;  %v10572_v21 = vld [vmem:[#allocation101_spill] sm:$0xff] }
 0x505   :  { %6353 = vmatmul.msk.f32.gmra.mxu1 %vm170_vm1, %v3748_v16  ;;  %6430 = vmatmul.msk.f32.gmra.mxu2 %vm170_vm1, %v3749_v59  ;;  %v3015_v16 = vadd.f32 %v10571_v0, %v10570_v14  ;;  %v3017_v43 = vadd.f32 %v10573_v9, %v10572_v21  ;;  %v10574_v14 = vld [vmem:[#allocation95_spill] sm:$0xff]  ;;  %v10575_v0 = vld [vmem:[#allocation98_spill] sm:$0xff] }
 0x506   :  { %6506 = vmatmul.msk.f32.gmra.mxu3 %vm170_vm1, %v4384_v23  ;;  %v3014_v21 = vadd.f32 %v10575_v0, %v10574_v14  ;;  %v10576_v9 = vld [vmem:[#allocation14_spill] sm:$0xff] }
 0x507   :  { %v3652_v3 = vadd.f32 %v9703_v15, %v3015_v16  ;;  %v3654_v42 = vadd.f32 %v3517_v20, %v3017_v43  ;;  %v3020_v26 = vadd.f32 %v10577_v10, %v10576_v9  ;;  %v10578_v15 = vld [vmem:[#allocation93_spill] sm:$0xff]  ;;  %v10579_v20 = vld [vmem:[#allocation96_spill] sm:$0xff]  ;;  %v10580_v9 = vld [vmem:[#allocation91_spill] sm:$0xff] }
 0x508   :  { %v4160_v38 = vpop.f32.mrf.mxu2 }
 0x509   :  { %v9806_v18 = vadd.f32 %v4160_v38, %v3656_v39  ;;  %v4791_v13 = vpop.f32.mrf.mxu3  ;;  %v5425_v56 = vpop.f32.mrf.mxu0  ;;  %v4385_v39 = vld [vmem:[%s10285_s0 + $0x225] sm:$0xff]  ;;  %v4290_v38 = vadd.f32 %v4151_v54, %v3653_v19  ;;  %v4289_v6 = vadd.f32 %v9736_v44, %v3652_v3  ;;  %v4291_v57 = vadd.f32 %v4154_v37, %v3654_v42  ;;  %v10583_v3 = vld [vmem:[#allocation89_spill] sm:$0xff]  ;;  %v10585_v42 = vld [vmem:[#allocation16_spill] sm:$0xff] }
 0x50a   :  { %v3529_v23 = vpop.f32.mrf.mxu1  ;;  %v3013_v54 = vadd.f32 %v10579_v20, %v10578_v15  ;;  %v3657_v16 = vadd.f32 %v3526_v5, %v3020_v26  ;;  %v9862_v26 = vld [vmem:[%s10284_s1 + $0x24] ss:$0 sm:$0xff] }
 0x50b   :  { %v4927_v11 = vadd.f32 %v4788_v35, %v4290_v38  ;;  %v4926_v43 = vadd.f32 %v4785_v31, %v4289_v6  ;;  %v4928_v19 = vadd.f32 %v4791_v13, %v4291_v57  ;;  %v3751_v31 = vld [vmem:[%s10285_s0 + $0x23c] sm:$0xff]  ;;  %v10586_v38 = vld [vmem:[#allocation108_spill] sm:$0xff] }
 0x50c   :  { %6583 = vmatmul.msk.f32.gmra.mxu0 %vm170_vm1, %v5020_v63  ;;  %v3651_v63 = vadd.f32 %v9682_v52, %v3014_v21  ;;  %v3650_v36 = vadd.f32 %v9661_v1, %v3013_v54  ;;  %v5021_v52 = vld [vmem:[%s10285_s0 + $0x21e] sm:$0xff]  ;;  %v3021_v21 = vadd.f32 %v10586_v38, %v10585_v42  ;;  %v5023_v42 = vld [vmem:[%s10285_s0 + $0x22e] sm:$0xff] }
 0x50d   :  { %6354 = vmatmul.msk.f32.gmra.mxu1 %vm170_vm1, %v3749_v59  ;;  %6431 = vmatmul.msk.f32.gmra.mxu2 %vm170_vm1, %v3750_v58  ;;  %v5564_v14 = vadd.f32 %v5425_v56, %v4927_v11  ;;  %v10581_v59 = vld [vmem:[#allocation94_spill] sm:$0xff]  ;;  %v5563_v5 = vadd.f32 %v5422_v30, %v4926_v43  ;;  %v4386_v56 = vld [vmem:[%s10285_s0 + $0x22d] sm:$0xff] }
 0x50e   :  { %6507 = vmatmul.msk.f32.gmra.mxu3 %vm170_vm1, %v4385_v39  ;;  %v3012_v10 = vadd.f32 %v10581_v59, %v10580_v9  ;;  %v4288_v44 = vadd.f32 %v9715_v7, %v3651_v63  ;;  %v4287_v7 = vadd.f32 %v9694_v24, %v3650_v36  ;;  %v10584_v30 = vld [vmem:[#allocation92_spill] sm:$0xff]  ;;  %v4388_v38 = vld [vmem:[%s10285_s0 + $0x23d] sm:$0xff] }
 0x50f   :  { %v5642_v20 = vadd.f32 %v9862_v26, %v5563_v5 }
 0x510   :  { %v4163_v0 = vpop.f32.mrf.mxu2  ;;  %v3649_v1 = vadd.f32 %v9640_v40, %v3012_v10  ;;  %v4925_v13 = vadd.f32 %v9755_v17, %v4288_v44  ;;  %v5643_v40 = vadd.f32 %v9862_v26, %v5564_v14  ;;  %v4924_v17 = vadd.f32 %v9738_v46, %v4287_v7  ;;  %v4387_v44 = vld [vmem:[%s10285_s0 + $0x235] sm:$0xff] }
 0x511   :  { %v9839_v37 = vadd.f32 %v4163_v0, %v3657_v16  ;;  %v4794_v35 = vpop.f32.mrf.mxu3  ;;  %v5428_v39 = vpop.f32.mrf.mxu0 }
 0x512   :  { %v9844_v6 = vadd.f32 %v4794_v35, %v4292_v55  ;;  %v3532_v57 = vpop.f32.mrf.mxu1  ;;  %v5565_v11 = vadd.f32 %v5428_v39, %v4928_v19  ;;  %v3011_v55 = vadd.f32 %v10584_v30, %v10583_v3  ;;  %v4286_v24 = vadd.f32 %v9673_v8, %v3649_v1  ;;  %v10590_v35 = vld [vmem:[#allocation109_spill] sm:$0xff] }
 0x513   :  { %v5562_v15 = vadd.f32 %v9772_v45, %v4925_v13  ;;  %v5561_v43 = vadd.f32 %v9757_v50, %v4924_v17  ;;  %v3658_v8 = vadd.f32 %v3529_v23, %v3021_v21  ;;  %v5720_v46 = vmax.f32 %v5643_v40, 0.0  ;;  %v10592_v17 = vld [vmem:[#allocation24_spill] sm:$0xff] }
 0x514   :  { %10582 = vst [vmem:[#allocation40_spill] sm:$0xff] %v9844_v6  ;;  %v5644_v36 = vadd.f32 %v9862_v26, %v5565_v11  ;;  %6584 = vmatmul.msk.f32.gmra.mxu0 %vm170_vm1, %v5021_v52  ;;  %v3648_v63 = vadd.f32 %v9619_v34, %v3011_v55  ;;  %v4923_v16 = vadd.f32 %v9717_v29, %v4286_v24  ;;  %v5022_v34 = vld [vmem:[%s10285_s0 + $0x226] sm:$0xff] }
 0x515   :  { %6355 = vmatmul.msk.f32.gmra.mxu1 %vm170_vm1, %v3750_v58  ;;  %6432 = vmatmul.msk.f32.gmra.mxu2 %vm170_vm1, %v3751_v31  ;;  %v5641_v14 = vadd.f32 %v9862_v26, %v5562_v15  ;;  %v5640_v10 = vadd.f32 %v9862_v26, %v5561_v43  ;;  %v5558_v11 = vadd.f32 %v9698_v62, %v9680_v32 }
 0x516   :  { %v5721_v54 = vmax.f32 %v5644_v36, 0.0  ;;  %6508 = vmatmul.msk.f32.gmra.mxu3 %vm170_vm1, %v4386_v56  ;;  %v4285_v45 = vadd.f32 %v9652_v28, %v3648_v63  ;;  %v5560_v58 = vadd.f32 %v9740_v51, %v4923_v16  ;;  %v3752_v28 = vld [vmem:[%s10285_s0 + $0x244] sm:$0xff]  ;;  %v5719_v51 = vmax.f32 %v5642_v20, 0.0 }
 0x517   :  { %v5717_v7 = vmax.f32 %v5640_v10, 0.0  ;;  %v5557_v56 = vadd.f32 %v9675_v48, %v9659_v47  ;;  %v3753_v47 = vld [vmem:[%s10285_s0 + $0x24c] sm:$0xff]  ;;  %v5556_v48 = vadd.f32 %v9654_v53, %v9638_v12  ;;  %v5554_v12 = vadd.f32 %v9612_v27, %v9598_v49  ;;  %v5024_v49 = vld [vmem:[%s10285_s0 + $0x236] sm:$0xff] }
 0x518   :  { %v4166_v19 = vpop.f32.mrf.mxu2  ;;  %5804 = vmatpush.msrb.mxu3 %v5721_v54  ;;  %v4922_v23 = vadd.f32 %v9696_v2, %v4285_v45  ;;  %v5639_v5 = vadd.f32 %v9862_v26, %v5560_v58  ;;  %v5718_v2 = vmax.f32 %v5641_v14, 0.0  ;;  %v5553_v15 = vadd.f32 %v9592_v60, %v9573_v22  ;;  %v4389_v45 = vld [vmem:[%s10285_s0 + $0x245] sm:$0xff]  ;;  %v10595_v58 = vld [vmem:[#allocation48_spill] sm:$0xff]  ;;  %v10596_v14 = vld [vmem:[#allocation45_spill] sm:$0xff] }
 0x519   :  { %v4295_v0 = vadd.f32 %v4166_v19, %v3658_v8  ;;  %v4797_v9 = vpop.f32.mrf.mxu3  ;;  %v9880_v59 = vpop.f32.mrf.mxu0  ;;  %v5636_v21 = vadd.f32 %v9862_v26, %v5557_v56  ;;  %v5635_v53 = vadd.f32 %v9862_v26, %v5556_v48  ;;  %v5552_v8 = vadd.f32 %v9564_v4, %v9533_v41 }
 0x51a   :  { %10587 = vst [vmem:[#allocation43_spill] sm:$0xff] %v9880_v59  ;;  %v9886_v29 = vadd.f32 %v4797_v9, %v9806_v18  ;;  %v9888_v50 = vpop.f32.mrf.mxu1  ;;  %5805 = vmatpush.msrb.mxu3 %v5720_v46  ;;  %v10589_v18 = vld [vmem:[#allocation18_spill] sm:$0xff]  ;;  %v5559_v52 = vadd.f32 %v9719_v33, %v4922_v23  ;;  %v5716_v55 = vmax.f32 %v5639_v5, 0.0  ;;  %v5633_v19 = vadd.f32 %v9862_v26, %v5554_v12  ;;  %v3754_v46 = vld [vmem:[%s10285_s0 + $0x254] sm:$0xff] }
 0x51b   :  { %v3022_v39 = vadd.f32 %v10590_v35, %v10589_v18  ;;  %v5713_v63 = vmax.f32 %v5636_v21, 0.0  ;;  %v5712_v60 = vmax.f32 %v5635_v53, 0.0  ;;  %v5632_v41 = vadd.f32 %v9862_v26, %v5553_v15  ;;  %v10597_v9 = vld [vmem:[#allocation46_spill] sm:$0xff]  ;;  %v10600_v18 = vld [vmem:[#allocation113_spill] sm:$0xff]  ;;  %v10601_v21 = vld [vmem:[#allocation20_spill] sm:$0xff] }
 0x51c   :  { %10588 = vst [vmem:[#allocation39_spill] sm:$0xff] %v9886_v29  ;;  %6585 = vmatmul.msk.f32.gmra.mxu0 %vm170_vm1, %v5022_v34  ;;  %5806 = vmatpush.msrb.mxu3 %v5719_v51  ;;  %v5638_v33 = vadd.f32 %v9862_v26, %v5559_v52  ;;  %v10598_v34 = vld [vmem:[#allocation42_spill] sm:$0xff]  ;;  %v5631_v51 = vadd.f32 %v9862_v26, %v5552_v8  ;;  %v5710_v23 = vmax.f32 %v5633_v19, 0.0  ;;  %v10604_v8 = vld [vmem:[#allocation111_spill] sm:$0xff] }
 0x51d   :  { %6356 = vmatmul.msk.f32.gmra.mxu1 %vm170_vm1, %v3751_v31  ;;  %6433 = vmatmul.msk.f32.gmra.mxu2 %vm170_vm1, %v3752_v28  ;;  %v3659_v1 = vadd.f32 %v3532_v57, %v3022_v39  ;;  %v5637_v57 = vadd.f32 %v9862_v26, %v5558_v11  ;;  %v5709_v5 = vmax.f32 %v5632_v41, 0.0  ;;  %v5025_v11 = vld [vmem:[%s10285_s0 + $0x23e] sm:$0xff] }
 0x51e   :  { %6509 = vmatmul.msk.f32.gmra.mxu3 %vm170_vm1, %v4387_v44  ;;  %v5715_v40 = vmax.f32 %v5638_v33, 0.0  ;;  %v10599_v44 = vld [vmem:[#allocation26_spill] sm:$0xff]  ;;  %v5708_v33 = vmax.f32 %v5631_v51, 0.0  ;;  %v3758_v51 = vld [vmem:[%s10285_s0 + $0x274] sm:$0xff] }
 0x51f   :  { %5807 = vmatpush.msrb.mxu3 %v5718_v2  ;;  %v5714_v36 = vmax.f32 %v5637_v57, 0.0  ;;  %v3026_v35 = vadd.f32 %v10600_v18, %v10599_v44 }
 0x520   :  { %v4169_v13 = vpop.f32.mrf.mxu2 }
 0x521   :  { %v4296_v3 = vadd.f32 %v4169_v13, %v3659_v1  ;;  %v4800_v30 = vpop.f32.mrf.mxu3  ;;  %5808 = vmatpush.msrb.mxu3 %v5717_v7  ;;  %v9911_v31 = vpop.f32.mrf.mxu0 }
 0x522   :  { %10591 = vst [vmem:[#allocation41_spill] sm:$0xff] %v9911_v31  ;;  %v9917_v32 = vadd.f32 %v4800_v30, %v9839_v37  ;;  %v9919_v62 = vpop.f32.mrf.mxu1  ;;  %v5555_v37 = vadd.f32 %v9633_v25, %v9617_v61  ;;  %v10593_v61 = vld [vmem:[#allocation112_spill] sm:$0xff]  ;;  %v3755_v30 = vld [vmem:[%s10285_s0 + $0x25c] sm:$0xff] }
 0x523   :  { %5809 = vmatpush.msrb.mxu3 %v5716_v55  ;;  %v3025_v25 = vadd.f32 %v10593_v61, %v10592_v17  ;;  %v4390_v55 = vld [vmem:[%s10285_s0 + $0x24d] sm:$0xff]  ;;  %v4391_v17 = vld [vmem:[%s10285_s0 + $0x255] sm:$0xff] }
 0x524   :  { %6586 = vmatmul.msk.f32.gmra.mxu0 %vm170_vm1, %v5023_v42  ;;  %v5634_v20 = vadd.f32 %v9862_v26, %v5555_v37  ;;  %v5026_v37 = vld [vmem:[%s10285_s0 + $0x246] sm:$0xff]  ;;  %v10621_v31 = vld [vmem:[#allocation4_spill] sm:$0xff] }
 0x525   :  { %6357 = vmatmul.msk.f32.gmra.mxu1 %vm170_vm1, %v3752_v28  ;;  %6434 = vmatmul.msk.f32.gmra.mxu2 %vm170_vm1, %v3753_v47  ;;  %v5550_v28 = vadd.f32 %v10598_v34, %v10597_v9  ;;  %v5028_v9 = vld [vmem:[%s10285_s0 + $0x256] sm:$0xff] }
 0x526   :  { %6510 = vmatmul.msk.f32.gmra.mxu3 %vm170_vm1, %v4388_v38  ;;  %v5711_v4 = vmax.f32 %v5634_v20, 0.0 }
 0x527   :  { %5810 = vmatpush.msrb.mxu3 %v5715_v40  ;;  %v5629_v13 = vadd.f32 %v9862_v26, %v5550_v28  ;;  %v10602_v40 = vld [vmem:[#allocation110_spill] sm:$0xff] }
 0x528   :  { %v9940_v24 = vpop.f32.mrf.mxu2  ;;  %v3023_v12 = vadd.f32 %v10602_v40, %v10601_v21  ;;  %v5031_v40 = vld [vmem:[%s10285_s0 + $0x26e] sm:$0xff] }
 0x529   :  { %5811 = vmatpush.msrb.mxu3 %v5714_v36  ;;  %v4803_v54 = vpop.f32.mrf.mxu3  ;;  %v9947_v16 = vpop.f32.mrf.mxu0  ;;  %v5706_v42 = vmax.f32 %v5629_v13, 0.0  ;;  %v3756_v36 = vld [vmem:[%s10285_s0 + $0x264] sm:$0xff]  ;;  %v4394_v13 = vld [vmem:[%s10285_s0 + $0x26d] sm:$0xff] }
 0x52a   :  { %10594 = vst [vmem:[#allocation49_spill] sm:$0xff] %v9947_v16  ;;  %v9952_v27 = vadd.f32 %v4803_v54, %v4295_v0  ;;  %v3541_v43 = vpop.f32.mrf.mxu1  ;;  %v5551_v0 = vadd.f32 %v10596_v14, %v10595_v58  ;;  %v3660_v61 = vadd.f32 %v9888_v50, %v3023_v12  ;;  %v10603_v50 = vld [vmem:[#allocation22_spill] sm:$0xff] }
 0x52b   :  { %5812 = vmatpush.msrb.mxu3 %v5713_v63  ;;  %v3662_v22 = vadd.f32 %v3541_v43, %v3025_v25  ;;  %v5027_v43 = vld [vmem:[%s10285_s0 + $0x24e] sm:$0xff]  ;;  %v3024_v19 = vadd.f32 %v10604_v8, %v10603_v50  ;;  %v10624_v16 = vld [vmem:[#allocation114_spill] sm:$0xff] }
 0x52c   :  { %6587 = vmatmul.msk.f32.gmra.mxu0 %vm170_vm1, %v5024_v49  ;;  %v5630_v39 = vadd.f32 %v9862_v26, %v5551_v0  ;;  %v4297_v25 = vadd.f32 %v9940_v24, %v3660_v61  ;;  %v3757_v24 = vld [vmem:[%s10285_s0 + $0x26c] sm:$0xff] }
 0x52d   :  { %5813 = vmatpush.msrb.mxu3 %v5712_v60  ;;  %6358 = vmatmul.msk.f32.gmra.mxu1 %vm170_vm1, %v3753_v47 }
 0x52e   :  { %6435 = vmatmul.msk.f32.gmra.mxu2 %vm170_vm1, %v3754_v46  ;;  %6511 = vmatmul.msk.f32.gmra.mxu3 %vm170_vm1, %v4389_v45  ;;  %v3661_v45 = vadd.f32 %v9919_v62, %v3024_v19 }
 0x52f   :  { %5814 = vmatpush.msrb.mxu3 %v5711_v4 }
 0x530   :  { %v4175_v10 = vpop.f32.mrf.mxu2 }
 0x531   :  { %5815 = vmatpush.msrb.mxu3 %v5710_v23  ;;  %v4806_v52 = vpop.f32.mrf.mxu3  ;;  %v9976_v2 = vpop.f32.mrf.mxu0  ;;  %v4298_v58 = vadd.f32 %v4175_v10, %v3661_v45  ;;  %v4393_v23 = vld [vmem:[%s10285_s0 + $0x265] sm:$0xff] }
 0x532   :  { %v9981_v1 = vadd.f32 %v4806_v52, %v4296_v3  ;;  %v3544_v7 = vpop.f32.mrf.mxu1  ;;  %v5707_v3 = vmax.f32 %v5630_v39, 0.0 }
 0x533   :  { %5816 = vmatpush.msrb.mxu3 %v5709_v5  ;;  %v3663_v56 = vadd.f32 %v3544_v7, %v3026_v35  ;;  %v5029_v35 = vld [vmem:[%s10285_s0 + $0x25e] sm:$0xff] }
 0x534   :  { %6588 = vmatmul.msk.f32.gmra.mxu0 %vm170_vm1, %v5025_v11  ;;  %v3123_v11 = vld [vmem:[%s10285_s0 + $0x274] sm:$0x3]  ;;  %v3759_v7 = vld [vmem:[%s10285_s0 + $0x27c] sm:$0xff] }
 0x535   :  { %5817 = vmatpush.msrb.mxu3 %v5708_v33  ;;  %6359 = vmatmul.msk.f32.gmra.mxu1 %vm170_vm1, %v3754_v46  ;;  %v4392_v46 = vld [vmem:[%s10285_s0 + $0x25d] sm:$0xff] }
 0x536   :  { %6436 = vmatmul.msk.f32.gmra.mxu2 %vm170_vm1, %v3755_v30  ;;  %6512 = vmatmul.msk.f32.gmra.mxu3 %vm170_vm1, %v4390_v55  ;;  %v5030_v55 = vld [vmem:[%s10285_s0 + $0x266] sm:$0xff] }
 0x537   :  { %5818 = vmatpush.msrb.mxu3 %v5707_v3 }
 0x538   :  { %v4178_v47 = vpop.f32.mrf.mxu2 }
 0x539   :  { %5819 = vmatpush.msrb.mxu3 %v5706_v42  ;;  %v4299_v48 = vadd.f32 %v4178_v47, %v3662_v22  ;;  %v4809_v57 = vpop.f32.mrf.mxu3  ;;  %v9994_v38 = vpop.f32.mrf.mxu0  ;;  %v3760_v47 = vld [vmem:[%s10285_s0 + $0x284] sm:$0x3] }
 0x53a   :  { %v10001_v53 = vpop.f32.mrf.mxu1  ;;  %v4934_v15 = vadd.f32 %v4809_v57, %v4297_v25 }
 0x53c   :  { %6589 = vmatmul.msk.f32.gmra.mxu0 %vm170_vm1, %v5026_v37 }
 0x53d   :  { %6360 = vmatmul.msk.f32.gmra.mxu1 %vm170_vm1, %v3755_v30 }
 0x53e   :  { %6437 = vmatmul.msk.f32.gmra.mxu2 %vm170_vm1, %v3756_v36  ;;  %6513 = vmatmul.msk.f32.gmra.mxu3 %vm170_vm1, %v4391_v17 }
 0x540   :  { %v4181_v20 = vpop.f32.mrf.mxu2 }
 0x541   :  { %v4300_v54 = vadd.f32 %v4181_v20, %v3663_v56  ;;  %v4812_v63 = vpop.f32.mrf.mxu3  ;;  %v5446_v49 = vpop.f32.mrf.mxu0 }
 0x542   :  { %v10020_v22 = vpop.f32.mrf.mxu1  ;;  %v10022_v60 = vadd.f32 %v5446_v49, %v4934_v15  ;;  %v4935_v14 = vadd.f32 %v4812_v63, %v4298_v58  ;;  %v5032_v15 = vld [vmem:[%s10285_s0 + $0x276] sm:$0xff] }
 0x543   :  { %v10605_v49 = vld [vmem:[#allocation9_spill] sm:$0xff] }
 0x544   :  { %6590 = vmatmul.msk.f32.gmra.mxu0 %vm170_vm1, %v5027_v43  ;;  %v10606_v43 = vld [vmem:[#allocation121_spill] sm:$0xff] }
 0x545   :  { %6361 = vmatmul.msk.f32.gmra.mxu1 %vm170_vm1, %v3756_v36  ;;  %v4396_v36 = vld [vmem:[%s10285_s0 + $0x27d] sm:$0xff]  ;;  %v3034_v50 = vadd.f32 %v10606_v43, %v10605_v49  ;;  %v10614_v49 = vld [vmem:[#allocation124_spill] sm:$0xff] }
 0x546   :  { %6438 = vmatmul.msk.f32.gmra.mxu2 %vm170_vm1, %v3757_v24  ;;  %6514 = vmatmul.msk.f32.gmra.mxu3 %vm170_vm1, %v4392_v46 }
 0x548   :  { %v10035_v0 = vpop.f32.mrf.mxu2 }
 0x549   :  { %v4815_v41 = vpop.f32.mrf.mxu3  ;;  %v5449_v4 = vpop.f32.mrf.mxu0 }
 0x54a   :  { %v4936_v34 = vadd.f32 %v4815_v41, %v4299_v48  ;;  %v10040_v62 = vpop.f32.mrf.mxu1  ;;  %v10042_v28 = vadd.f32 %v5449_v4, %v4935_v14  ;;  %v4395_v48 = vld [vmem:[%s10285_s0 + $0x275] sm:$0xff]  ;;  %v10607_v14 = vld [vmem:[#allocation10_spill] sm:$0xff] }
 0x54b   :  { %v10608_v41 = vld [vmem:[#allocation122_spill] sm:$0xff] }
 0x54c   :  { %6591 = vmatmul.msk.f32.gmra.mxu0 %vm170_vm1, %v5028_v9  ;;  %v3035_v4 = vadd.f32 %v10608_v41, %v10607_v14  ;;  %v10615_v14 = vld [vmem:[#allocation6_spill] sm:$0xff] }
 0x54d   :  { %6362 = vmatmul.msk.f32.gmra.mxu1 %vm170_vm1, %v3757_v24  ;;  %v5033_v24 = vld [vmem:[%s10285_s0 + $0x27e] sm:$0xff] }
 0x54e   :  { %6439 = vmatmul.msk.f32.gmra.mxu2 %vm170_vm1, %v3758_v51  ;;  %6515 = vmatmul.msk.f32.gmra.mxu3 %vm170_vm1, %v4393_v23  ;;  %v5034_v51 = vld [vmem:[%s10285_s0 + $0x286] sm:$0x3] }
 0x54f   :  { %v10616_v41 = vld [vmem:[#allocation118_spill] sm:$0xff] }
 0x550   :  { %v10054_v10 = vpop.f32.mrf.mxu2 }
 0x551   :  { %v4818_v44 = vpop.f32.mrf.mxu3  ;;  %v5452_v18 = vpop.f32.mrf.mxu0 }
 0x552   :  { %v4937_v39 = vadd.f32 %v4818_v44, %v4300_v54  ;;  %v10059_v52 = vpop.f32.mrf.mxu1  ;;  %v10061_v5 = vadd.f32 %v5452_v18, %v4936_v34  ;;  %v4397_v54 = vld [vmem:[%s10285_s0 + $0x285] sm:$0x3] }
 0x554   :  { %6592 = vmatmul.msk.f32.gmra.mxu0 %vm170_vm1, %v5029_v35  ;;  %v10609_v35 = vld [vmem:[#allocation11_spill] sm:$0xff] }
 0x555   :  { %6363 = vmatmul.msk.f32.gmra.mxu1 %vm170_vm1, %v3123_v11 }
 0x556   :  { %6440 = vmatmul.msk.f32.gmra.mxu2 %vm170_vm1, %v3759_v7  ;;  %6516 = vmatmul.msk.f32.gmra.mxu3 %vm170_vm1, %v4394_v13 }
 0x558   :  { %v10076_v56 = vpop.f32.mrf.mxu2 }
 0x559   :  { %v10078_v33 = vpop.f32.mrf.mxu3  ;;  %v5455_v30 = vpop.f32.mrf.mxu0 }
 0x55a   :  { %v3559_v3 = vpop.f32.mrf.mxu1  ;;  %v10083_v42 = vadd.f32 %v5455_v30, %v4937_v39  ;;  %v10610_v39 = vld [vmem:[#allocation123_spill] sm:$0xff] }
 0x55b   :  { %v3036_v11 = vadd.f32 %v10610_v39, %v10609_v35 }
 0x55c   :  { %6593 = vmatmul.msk.f32.gmra.mxu0 %vm170_vm1, %v5030_v55 }
 0x55e   :  { %6441 = vmatmul.msk.f32.gmra.mxu2 %vm170_vm1, %v3760_v47  ;;  %6517 = vmatmul.msk.f32.gmra.mxu3 %vm170_vm1, %v4395_v48  ;;  %v10611_v48 = vld [vmem:[#allocation7_spill] sm:$0xff] }
 0x560   :  { %v4193_v57 = vpop.f32.mrf.mxu2 }
 0x561   :  { %v10094_v37 = vpop.f32.mrf.mxu3  ;;  %v10096_v21 = vpop.f32.mrf.mxu0 }
 0x562   :  { %v3562_v12 = vpop.f32.mrf.mxu1 }
 0x564   :  { %6594 = vmatmul.msk.f32.gmra.mxu0 %vm170_vm1, %v5031_v40  ;;  %v10612_v40 = vld [vmem:[#allocation119_spill] sm:$0xff] }
 0x566   :  { %6518 = vmatmul.msk.f32.gmra.mxu3 %vm170_vm1, %v4396_v36  ;;  %v3032_v36 = vadd.f32 %v10612_v40, %v10611_v48 }
 0x568   :  { %v4196_v17 = vpop.f32.mrf.mxu2 }
 0x569   :  { %v10106_v61 = vpop.f32.mrf.mxu3  ;;  %v10108_v25 = vpop.f32.mrf.mxu0 }
 0x56a   :  { %v3565_v20 = vpop.f32.mrf.mxu1 }
 0x56c   :  { %6595 = vmatmul.msk.f32.gmra.mxu0 %vm170_vm1, %v5032_v15 }
 0x56e   :  { %6519 = vmatmul.msk.f32.gmra.mxu3 %vm170_vm1, %v4397_v54  ;;  %v10613_v54 = vld [vmem:[#allocation13_spill] sm:$0xff] }
 0x56f   :  { %v3037_v43 = vadd.f32 %v10614_v49, %v10613_v54  ;;  %v10622_v54 = vld [vmem:[#allocation116_spill] sm:$0xff] }
 0x570   :  { %v4199_v63 = vpop.f32.mrf.mxu2 }
 0x571   :  { %v4830_v8 = vpop.f32.mrf.mxu3  ;;  %v10120_v19 = vpop.f32.mrf.mxu0 }
 0x572   :  { %v3568_v46 = vpop.f32.mrf.mxu1 }
 0x573   :  { %v3671_v45 = vadd.f32 %v3568_v46, %v3034_v50 }
 0x574   :  { %6596 = vmatmul.msk.f32.gmra.mxu0 %vm170_vm1, %v5033_v24 }
 0x578   :  { %v4202_v58 = vpop.f32.mrf.mxu2 }
 0x579   :  { %v4833_v9 = vpop.f32.mrf.mxu3  ;;  %v5467_v34 = vpop.f32.mrf.mxu0 }
 0x57a   :  { %v3571_v23 = vpop.f32.mrf.mxu1 }
 0x57b   :  { %v3672_v44 = vadd.f32 %v3571_v23, %v3035_v4  ;;  %v3031_v4 = vadd.f32 %v10616_v41, %v10615_v14  ;;  %v10618_v23 = vld [vmem:[#allocation120_spill] sm:$0xff]  ;;  %v10623_v41 = vld [vmem:[#allocation2_spill] sm:$0xff] }
 0x57c   :  { %6597 = vmatmul.msk.f32.gmra.mxu0 %vm170_vm1, %v5034_v51  ;;  %v10617_v51 = vld [vmem:[#allocation8_spill] sm:$0xff] }
 0x57d   :  { %v3668_v48 = vadd.f32 %v3559_v3, %v3031_v4 }
 0x57f   :  { %v4305_v49 = vadd.f32 %v4196_v17, %v3668_v48 }
 0x580   :  { %v4205_v18 = vpop.f32.mrf.mxu2 }
 0x581   :  { %v4308_v7 = vadd.f32 %v4205_v18, %v3671_v45  ;;  %v4836_v13 = vpop.f32.mrf.mxu3  ;;  %v5470_v30 = vpop.f32.mrf.mxu0  ;;  %v3033_v45 = vadd.f32 %v10618_v23, %v10617_v51  ;;  %v3669_v18 = vadd.f32 %v3562_v12, %v3032_v36  ;;  %v3027_v51 = vadd.f32 %v10624_v16, %v10623_v41  ;;  %v10625_v12 = vld [vmem:[#allocation3_spill] sm:$0xff] }
 0x582   :  { %v3574_v55 = vpop.f32.mrf.mxu1  ;;  %v10626_v36 = vld [vmem:[#allocation115_spill] sm:$0xff]  ;;  %v4942_v3 = vadd.f32 %v4833_v9, %v4305_v49 }
 0x583   :  { %v3673_v47 = vadd.f32 %v3574_v55, %v3036_v11  ;;  %v10619_v11 = vld [vmem:[#allocation5_spill] sm:$0xff]  ;;  %v3670_v40 = vadd.f32 %v3565_v20, %v3033_v45  ;;  %v4306_v6 = vadd.f32 %v4199_v63, %v3669_v18  ;;  %v10627_v45 = vld [vmem:[#allocation15_spill] sm:$0xff] }
 0x584   :  { %v10620_v55 = vld [vmem:[#allocation117_spill] sm:$0xff] }
 0x585   :  { %v3030_v59 = vadd.f32 %v10620_v55, %v10619_v11  ;;  %v4307_v29 = vadd.f32 %v4202_v58, %v3670_v40  ;;  %v4943_v14 = vadd.f32 %v4836_v13, %v4306_v6  ;;  %v5579_v13 = vadd.f32 %v5470_v30, %v4942_v3 }
 0x587   :  { %v5658_v30 = vadd.f32 %v9862_v26, %v5579_v13 }
 0x588   :  { %v4208_v15 = vpop.f32.mrf.mxu2 }
 0x589   :  { %v4309_v50 = vadd.f32 %v4208_v15, %v3672_v44  ;;  %v4839_v24 = vpop.f32.mrf.mxu3  ;;  %v5473_v46 = vpop.f32.mrf.mxu0  ;;  %v3029_v44 = vadd.f32 %v10622_v54, %v10621_v31  ;;  %v3667_v15 = vadd.f32 %v10059_v52, %v3030_v59  ;;  %v10628_v31 = vld [vmem:[#allocation125_spill] sm:$0xff]  ;;  %v5735_v41 = vmax.f32 %v5658_v30, 0.0 }
 0x58a   :  { %v3577_v35 = vpop.f32.mrf.mxu1  ;;  %v4944_v20 = vadd.f32 %v4839_v24, %v4307_v29  ;;  %v5580_v63 = vadd.f32 %v5473_v46, %v4943_v14  ;;  %v3038_v18 = vadd.f32 %v10628_v31, %v10627_v45  ;;  %v10629_v54 = vld [vmem:[#allocation17_spill] sm:$0xff] }
 0x58b   :  { %v3674_v39 = vadd.f32 %v3577_v35, %v3037_v43  ;;  %v3028_v43 = vadd.f32 %v10626_v36, %v10625_v12  ;;  %v3666_v23 = vadd.f32 %v10040_v62, %v3029_v44  ;;  %v4304_v35 = vadd.f32 %v4193_v57, %v3667_v15  ;;  %v10630_v44 = vld [vmem:[#allocation126_spill] sm:$0xff] }
 0x58c   :  { %v3664_v57 = vadd.f32 %v10001_v53, %v3027_v51  ;;  %v3039_v15 = vadd.f32 %v10630_v44, %v10629_v54 }
 0x58d   :  { %v3665_v59 = vadd.f32 %v10020_v22, %v3028_v43  ;;  %v4303_v6 = vadd.f32 %v10076_v56, %v3666_v23  ;;  %v4941_v58 = vadd.f32 %v4830_v8, %v4304_v35  ;;  %v5659_v22 = vadd.f32 %v9862_v26, %v5580_v63 }
 0x58f   :  { %v4302_v29 = vadd.f32 %v10054_v10, %v3665_v59  ;;  %v4940_v24 = vadd.f32 %v10106_v61, %v4303_v6  ;;  %v5578_v46 = vadd.f32 %v5467_v34, %v4941_v58  ;;  %v5736_v34 = vmax.f32 %v5659_v22, 0.0 }
 0x590   :  { %v4211_v4 = vpop.f32.mrf.mxu2  ;;  %v5570_v59 = vadd.f32 %v9994_v38, %v9981_v1  ;;  %v10632_v38 = vld [vmem:[#allocation39_spill] sm:$0xff] }
 0x591   :  { %v4310_v52 = vadd.f32 %v4211_v4, %v3673_v47  ;;  %v4842_v17 = vpop.f32.mrf.mxu3  ;;  %v5476_v16 = vpop.f32.mrf.mxu0  ;;  %v4301_v47 = vadd.f32 %v10035_v0, %v3664_v57  ;;  %v4939_v8 = vadd.f32 %v10094_v37, %v4302_v29  ;;  %v5657_v61 = vadd.f32 %v9862_v26, %v5578_v46 }
 0x592   :  { %v4945_v11 = vadd.f32 %v4842_v17, %v4308_v7  ;;  %v3580_v55 = vpop.f32.mrf.mxu1  ;;  %v5581_v62 = vadd.f32 %v5476_v16, %v4944_v20  ;;  %v5577_v7 = vadd.f32 %v10120_v19, %v4940_v24  ;;  %v5652_v4 = vadd.f32 %v9862_v26, %v10061_v5  ;;  %v10634_v24 = vld [vmem:[#allocation40_spill] sm:$0xff] }
 0x593   :  { %v3675_v9 = vadd.f32 %v3580_v55, %v3038_v18  ;;  %v4938_v53 = vadd.f32 %v10078_v33, %v4301_v47  ;;  %v5576_v10 = vadd.f32 %v10108_v25, %v4939_v8  ;;  %v5734_v43 = vmax.f32 %v5657_v61, 0.0 }
 0x594   :  { %v5660_v56 = vadd.f32 %v9862_v26, %v5581_v62  ;;  %v5656_v14 = vadd.f32 %v9862_v26, %v5577_v7  ;;  %v5569_v17 = vadd.f32 %v9976_v2, %v9952_v27  ;;  %v5650_v16 = vadd.f32 %v9862_v26, %v10022_v60 }
 0x595   :  { %v5575_v0 = vadd.f32 %v10096_v21, %v4938_v53  ;;  %v5655_v36 = vadd.f32 %v9862_v26, %v5576_v10  ;;  %v5653_v21 = vadd.f32 %v9862_v26, %v10083_v42  ;;  %v5651_v42 = vadd.f32 %v9862_v26, %v10042_v28  ;;  %v10633_v28 = vld [vmem:[#allocation41_spill] sm:$0xff] }
 0x596   :  { %v5737_v48 = vmax.f32 %v5660_v56, 0.0  ;;  %v5733_v35 = vmax.f32 %v5656_v14, 0.0  ;;  %v5729_v5 = vmax.f32 %v5652_v4, 0.0  ;;  %v5649_v13 = vadd.f32 %v9862_v26, %v5570_v59 }
 0x597   :  { %v5654_v23 = vadd.f32 %v9862_v26, %v5575_v0  ;;  %v5730_v6 = vmax.f32 %v5653_v21, 0.0  ;;  %v5567_v55 = vadd.f32 %v10633_v28, %v10632_v38  ;;  %v5648_v27 = vadd.f32 %v9862_v26, %v5569_v17  ;;  %v10639_v38 = vld [vmem:[#allocation28_spill] sm:$0xff] }
 0x598   :  { %v4214_v40 = vpop.f32.mrf.mxu2  ;;  %5824 = vmatpush.msra.mxu1 %v5737_v48  ;;  %v5727_v2 = vmax.f32 %v5650_v16, 0.0  ;;  %v5726_v56 = vmax.f32 %v5649_v13, 0.0  ;;  %v10636_v16 = vld [vmem:[#allocation30_spill] sm:$0xff] }
 0x599   :  { %v4311_v37 = vadd.f32 %v4214_v40, %v3674_v39  ;;  %v4845_v49 = vpop.f32.mrf.mxu3  ;;  %v5479_v19 = vpop.f32.mrf.mxu0  ;;  %v5732_v39 = vmax.f32 %v5655_v36, 0.0  ;;  %v5731_v45 = vmax.f32 %v5654_v23, 0.0  ;;  %v5646_v47 = vadd.f32 %v9862_v26, %v5567_v55  ;;  %v10640_v55 = vld [vmem:[#allocation31_spill] sm:$0xff] }
 0x59a   :  { %v4946_v51 = vadd.f32 %v4845_v49, %v4309_v50  ;;  %v3583_v33 = vpop.f32.mrf.mxu1  ;;  %v10172_v12 = vadd.f32 %v5479_v19, %v4945_v11  ;;  %5825 = vmatpush.msra.mxu1 %v5736_v34  ;;  %v5728_v11 = vmax.f32 %v5651_v42, 0.0  ;;  %v5725_v8 = vmax.f32 %v5648_v27, 0.0  ;;  %v5751_v27 = vld [vmem:[%s10286_s2] sm:$0xff] }
 0x59b   :  { %v3676_v25 = vadd.f32 %v3583_v33, %v3039_v15  ;;  %v5723_v61 = vmax.f32 %v5646_v47, 0.0  ;;  %5780 = vmatmul.f32.vlgmr.msrb.gmra.mxu1 %v5751_v27 }
 0x59c   :  { %5826 = vmatpush.msra.mxu1 %v5735_v41 }
 0x59e   :  { %5827 = vmatpush.msra.mxu1 %v5734_v43 }
 0x5a0   :  { %v4217_v3 = vpop.f32.mrf.mxu2  ;;  %5828 = vmatpush.msra.mxu1 %v5733_v35 }
 0x5a1   :  { %v4312_v50 = vadd.f32 %v4217_v3, %v3675_v9  ;;  %v4848_v20 = vpop.f32.mrf.mxu3  ;;  %v5482_v63 = vpop.f32.mrf.mxu0 }
 0x5a2   :  { %v4947_v31 = vadd.f32 %v4848_v20, %v4310_v52  ;;  %v10180_v18 = vadd.f32 %v5482_v63, %v4946_v51  ;;  %5829 = vmatpush.msra.mxu1 %v5732_v39  ;;  %v10631_v52 = vld [vmem:[#allocation49_spill] sm:$0xff]  ;;  %v10205_v54 = vpop.f32.mrf.mxu1 }
 0x5a3   :  { %v5568_v58 = vadd.f32 %v10631_v52, %v9917_v32  ;;  %v10635_v32 = vld [vmem:[#allocation43_spill] sm:$0xff] }
 0x5a4   :  { %5830 = vmatpush.msra.mxu1 %v5731_v45  ;;  %v5566_v46 = vadd.f32 %v10635_v32, %v10634_v24  ;;  %v10642_v24 = vld [vmem:[#allocation25_spill] sm:$0xff]  ;;  %v10643_v32 = vld [vmem:[#allocation130_spill] sm:$0xff] }
 0x5a5   :  { %v5647_v22 = vadd.f32 %v9862_v26, %v5568_v58  ;;  %v5752_v58 = vld [vmem:[%s10286_s2 + $0x8] sm:$0xff] }
 0x5a6   :  { %5831 = vmatpush.msra.mxu1 %v5730_v6  ;;  %v5645_v7 = vadd.f32 %v9862_v26, %v5566_v46  ;;  %5800 = vmatmul.f32.vlgmr.msrb.gmra.mxu2 %v5752_v58  ;;  %v3043_v46 = vadd.f32 %v10643_v32, %v10642_v24  ;;  %v10648_v58 = vld [vmem:[#allocation19_spill] sm:$0xff] }
 0x5a7   :  { %v5724_v30 = vmax.f32 %v5647_v22, 0.0 }
 0x5a8   :  { %v4220_v1 = vpop.f32.mrf.mxu2  ;;  %5832 = vmatpush.msra.mxu1 %v5729_v5  ;;  %v5722_v40 = vmax.f32 %v5645_v7, 0.0  ;;  %v10637_v5 = vld [vmem:[#allocation29_spill] sm:$0xff] }
 0x5a9   :  { %v4313_v62 = vadd.f32 %v4220_v1, %v3676_v25  ;;  %v4851_v57 = vpop.f32.mrf.mxu3  ;;  %v5485_v29 = vpop.f32.mrf.mxu0  ;;  %v3045_v52 = vadd.f32 %v10637_v5, %v10636_v16  ;;  %v10638_v1 = vld [vmem:[#allocation27_spill] sm:$0xff]  ;;  %v10645_v7 = vld [vmem:[#allocation129_spill] sm:$0xff] }
 0x5aa   :  { %v4948_v60 = vadd.f32 %v4851_v57, %v4311_v37  ;;  %v10196_v9 = vadd.f32 %v5485_v29, %v4947_v31  ;;  %5833 = vmatpush.msra.mxu1 %v5728_v11  ;;  %v3589_v19 = vpop.f32.mrf.mxu1  ;;  %v3044_v28 = vadd.f32 %v10639_v38, %v10638_v1 }
 0x5ac   :  { %5834 = vmatpush.msra.mxu1 %v5727_v2  ;;  %v5753_v2 = vld [vmem:[%s10286_s2 + $0x10] sm:$0xff] }
 0x5ad   :  { %5820 = vmatmul.f32.vlgmr.msrb.gmra.mxu3 %v5753_v2 }
 0x5ae   :  { %5835 = vmatpush.msra.mxu1 %v5726_v56 }
 0x5b0   :  { %5836 = vmatpush.msra.mxu1 %v5725_v8  ;;  %v10644_v8 = vld [vmem:[#allocation23_spill] sm:$0xff] }
 0x5b1   :  { %v4854_v48 = vpop.f32.mrf.mxu3  ;;  %v5488_v10 = vpop.f32.mrf.mxu0 }
 0x5b2   :  { %v4949_v53 = vadd.f32 %v4854_v48, %v4312_v50  ;;  %5837 = vmatpush.msra.mxu1 %v5724_v30  ;;  %v10203_v34 = vadd.f32 %v5488_v10, %v4948_v60  ;;  %v10207_v44 = vpop.f32.mrf.mxu2  ;;  %v3592_v36 = vpop.f32.mrf.mxu1  ;;  %v3042_v30 = vadd.f32 %v10645_v7, %v10644_v8 }
 0x5b4   :  { %5838 = vmatpush.msra.mxu1 %v5723_v61  ;;  %v5664_v32 = vadd.f32 %v9862_v26, %v10203_v34 }
 0x5b6   :  { %5839 = vmatpush.msra.mxu1 %v5722_v40 }
 0x5b9   :  { %v4857_v15 = vpop.f32.mrf.mxu3  ;;  %v5491_v37 = vpop.f32.mrf.mxu0 }
 0x5ba   :  { %v4950_v0 = vadd.f32 %v4857_v15, %v4313_v62  ;;  %v10209_v49 = vadd.f32 %v5491_v37, %v4949_v53  ;;  %v4226_v41 = vpop.f32.mrf.mxu2  ;;  %v3595_v39 = vpop.f32.mrf.mxu1  ;;  %v10641_v62 = vld [vmem:[#allocation131_spill] sm:$0xff]  ;;  %v10646_v15 = vld [vmem:[#allocation21_spill] sm:$0xff] }
 0x5bb   :  { %v3046_v57 = vadd.f32 %v10641_v62, %v10640_v55  ;;  %v3680_v53 = vadd.f32 %v3595_v39, %v3043_v46  ;;  %v5754_v39 = vld [vmem:[%s10286_s2 + $0x18] sm:$0xff] }
 0x5bc   :  { %5840 = vmatmul.f32.vlgmr.msra.gmra.mxu1 %v5754_v39 }
 0x5c1   :  { %v10211_v14 = vpop.f32.mrf.mxu3  ;;  %v5494_v51 = vpop.f32.mrf.mxu0 }
 0x5c2   :  { %v10213_v33 = vadd.f32 %v5494_v51, %v4950_v0  ;;  %v4229_v23 = vpop.f32.mrf.mxu2  ;;  %v3598_v63 = vpop.f32.mrf.mxu1  ;;  %v10647_v0 = vld [vmem:[#allocation128_spill] sm:$0xff]  ;;  %v3679_v51 = vadd.f32 %v3592_v36, %v3042_v30 }
 0x5c3   :  { %v3681_v22 = vadd.f32 %v3598_v63, %v3044_v28  ;;  %v3041_v37 = vadd.f32 %v10647_v0, %v10646_v15  ;;  %v10649_v63 = vld [vmem:[#allocation127_spill] sm:$0xff]  ;;  %v6605_v0 = vld [vmem:[%s10284_s1 + $0x25] ss:$0 sm:$0xff] }
 0x5c9   :  { %v10215_v25 = vpop.f32.mrf.mxu3  ;;  %v10217_v43 = vpop.f32.mrf.mxu0 }
 0x5ca   :  { %v4232_v3 = vpop.f32.mrf.mxu2  ;;  %v3601_v59 = vpop.f32.mrf.mxu1 }
 0x5cb   :  { %v3682_v29 = vadd.f32 %v3601_v59, %v3045_v52  ;;  %v4317_v59 = vadd.f32 %v4232_v3, %v3680_v53 }
 0x5d1   :  { %v4866_v35 = vpop.f32.mrf.mxu3  ;;  %v10219_v21 = vpop.f32.mrf.mxu0 }
 0x5d2   :  { %v4235_v4 = vpop.f32.mrf.mxu2  ;;  %v3604_v13 = vpop.f32.mrf.mxu1 }
 0x5d3   :  { %v3683_v56 = vadd.f32 %v3604_v13, %v3046_v57  ;;  %v4318_v10 = vadd.f32 %v4235_v4, %v3681_v22  ;;  %v3040_v13 = vadd.f32 %v10649_v63, %v10648_v58  ;;  %v4316_v4 = vadd.f32 %v4229_v23, %v3679_v51 }
 0x5d4   :  { %v5663_v22 = vadd.f32 %v9862_v26, %v10196_v9  ;;  %v5755_v9 = vld [vmem:[%s10286_s2 + $0x20] sm:$0xff] }
 0x5d5   :  { %v3677_v55 = vadd.f32 %v10205_v54, %v3040_v13  ;;  %v4953_v3 = vadd.f32 %v4866_v35, %v4316_v4 }
 0x5d6   :  { %v5740_v8 = vmax.f32 %v5663_v22, 0.0 }
 0x5d9   :  { %v4869_v50 = vpop.f32.mrf.mxu3  ;;  %v5503_v20 = vpop.f32.mrf.mxu0 }
 0x5da   :  { %v4238_v42 = vpop.f32.mrf.mxu2  ;;  %v4954_v38 = vadd.f32 %v4869_v50, %v4317_v59 }
 0x5db   :  { %v4319_v47 = vadd.f32 %v4238_v42, %v3682_v29  ;;  %v3678_v42 = vadd.f32 %v3589_v19, %v3041_v37  ;;  %v4314_v19 = vadd.f32 %v10207_v44, %v3677_v55  ;;  %v5590_v29 = vadd.f32 %v5503_v20, %v4953_v3 }
 0x5dd   :  { %v4315_v36 = vadd.f32 %v4226_v41, %v3678_v42  ;;  %v5669_v27 = vadd.f32 %v9862_v26, %v5590_v29 }
 0x5df   :  { %v4952_v57 = vadd.f32 %v10215_v25, %v4315_v36 }
 0x5e1   :  { %v4872_v45 = vpop.f32.mrf.mxu3  ;;  %v5506_v31 = vpop.f32.mrf.mxu0  ;;  %v5589_v54 = vadd.f32 %v10219_v21, %v4952_v57 }
 0x5e2   :  { %v4241_v60 = vpop.f32.mrf.mxu2  ;;  %v4955_v16 = vadd.f32 %v4872_v45, %v4318_v10  ;;  %v5591_v45 = vadd.f32 %v5506_v31, %v4954_v38 }
 0x5e3   :  { %v4320_v61 = vadd.f32 %v4241_v60, %v3683_v56  ;;  %v5668_v25 = vadd.f32 %v9862_v26, %v5589_v54  ;;  %v5746_v60 = vmax.f32 %v5669_v27, 0.0 }
 0x5e4   :  { %v5670_v41 = vadd.f32 %v9862_v26, %v5591_v45 }
 0x5e5   :  { %v5745_v21 = vmax.f32 %v5668_v25, 0.0 }
 0x5e6   :  { %v5747_v20 = vmax.f32 %v5670_v41, 0.0 }
 0x5e9   :  { %v5509_v6 = vpop.f32.mrf.mxu0  ;;  %v4875_v17 = vpop.f32.mrf.mxu3 }
 0x5ea   :  { %v4956_v40 = vadd.f32 %v4875_v17, %v4319_v47  ;;  %v5592_v17 = vadd.f32 %v5509_v6, %v4955_v16  ;;  %v4951_v6 = vadd.f32 %v10211_v14, %v4314_v19  ;;  %v5666_v14 = vadd.f32 %v9862_v26, %v10213_v33 }
 0x5eb   :  { %v5662_v33 = vadd.f32 %v9862_v26, %v10180_v18  ;;  %v5741_v47 = vmax.f32 %v5664_v32, 0.0  ;;  %v5864_v18 = vld [vmem:[%s10284_s1 + $0x28] sm:$0xff] }
 0x5ec   :  { %v5671_v23 = vadd.f32 %v9862_v26, %v5592_v17  ;;  %v5588_v31 = vadd.f32 %v10217_v43, %v4951_v6  ;;  %v5665_v43 = vadd.f32 %v9862_v26, %v10209_v49  ;;  %v5743_v46 = vmax.f32 %v5666_v14, 0.0  ;;  %5886 = vmatpush.msra.mxu3 %v5864_v18 }
 0x5ed   :  { %v5661_v49 = vadd.f32 %v9862_v26, %v10172_v12  ;;  %v5739_v7 = vmax.f32 %v5662_v33, 0.0 }
 0x5ee   :  { %v5748_v44 = vmax.f32 %v5671_v23, 0.0  ;;  %v5667_v2 = vadd.f32 %v9862_v26, %v5588_v31  ;;  %v5742_v56 = vmax.f32 %v5665_v43, 0.0 }
 0x5ef   :  { %v5738_v34 = vmax.f32 %v5661_v49, 0.0 }
 0x5f0   :  { %v5744_v24 = vmax.f32 %v5667_v2, 0.0 }
 0x5f1   :  { %v5512_v11 = vpop.f32.mrf.mxu0  ;;  %v4878_v48 = vpop.f32.mrf.mxu3 }
 0x5f2   :  { %v4957_v5 = vadd.f32 %v4878_v48, %v4320_v61  ;;  %v5593_v52 = vadd.f32 %v5512_v11, %v4956_v40 }
 0x5f4   :  { %v5672_v11 = vadd.f32 %v9862_v26, %v5593_v52 }
 0x5f6   :  { %v5749_v35 = vmax.f32 %v5672_v11, 0.0 }
 0x5f9   :  { %v5515_v1 = vpop.f32.mrf.mxu0 }
 0x5fa   :  { %v5594_v28 = vadd.f32 %v5515_v1, %v4957_v5 }
 0x5fc   :  { %v5673_v62 = vadd.f32 %v9862_v26, %v5594_v28 }
 0x5fe   :  { %v5750_v50 = vmax.f32 %v5673_v62, 0.0 }
 0x600   :  { %6598 = vmatpush.msk.msra.mxu2 %vm5760_vm2, %v5750_v50 }
 0x602   :  { %5848 = vmatpush.msra.mxu2 %v5749_v35 }
 0x604   :  { %5849 = vmatpush.msra.mxu2 %v5748_v44 }
 0x606   :  { %5850 = vmatpush.msra.mxu2 %v5747_v20 }
 0x608   :  { %5851 = vmatpush.msra.mxu2 %v5746_v60 }
 0x60a   :  { %5852 = vmatpush.msra.mxu2 %v5745_v21 }
 0x60c   :  { %5853 = vmatpush.msra.mxu2 %v5744_v24 }
 0x60e   :  { %5854 = vmatpush.msra.mxu2 %v5743_v46 }
 0x610   :  { %5855 = vmatpush.msra.mxu2 %v5742_v56 }
 0x612   :  { %5856 = vmatpush.msra.mxu2 %v5741_v47 }
 0x614   :  { %5857 = vmatpush.msra.mxu2 %v5740_v8 }
 0x616   :  { %5858 = vmatpush.msra.mxu2 %v5739_v7 }
 0x618   :  { %5859 = vmatpush.msra.mxu2 %v5738_v34  ;;  %v5781_v30 = vpop.f32.mrf.mxu1 }
 0x619   :  { %6599 = vmatmul.msk.f32.vlgmr.msra.gmra.mxu2 %vm5756_vm3, %v5755_v9 }
 0x629   :  { %v5801_v26 = vpop.f32.mrf.mxu2 }
 0x62a   :  { %v5802_v12 = vadd.f32 %v5801_v26, %v5781_v30 }
 0x630   :  { %v5821_v48 = vpop.f32.mrf.mxu3 }
 0x631   :  { %v5822_v53 = vadd.f32 %v5821_v48, %v5802_v12 }
 0x639   :  { %v5841_v10 = vpop.f32.mrf.mxu1 }
 0x63a   :  { %v5842_v61 = vadd.f32 %v5841_v10, %v5822_v53 }
 0x69c   :  { %v5861_v40 = vpop.f32.mrf.mxu2 }
 0x69d   :  { %v5862_v15 = vadd.f32 %v5861_v40, %v5842_v61 }
 0x69f   :  { %6600 = vmatmul.msk.f32.vlgmr.msra.gmra.mxu3 %vm5867_vm4, %v5862_v15 }
 0x722   :  { %v5888_v37 = vpop.f32.mrf.mxu3 }
 0x723   :  { %v5889_v51 = vadd.f32 %v6605_v0, %v5888_v37 }
 0x725   :  { %5891 = vst [vmem:[%s10287_s3] sm:$0xff] %v5889_v51 }

</bundles_post_ra>
